<compile_context>
chip_gen: v7x
topology: tpu7x:2x2x1
jax: 0.10.0
libtpu: 0.0.40
codegen_flags: <defaults>
</compile_context>

<pallas_src>
import functools

import jax
import jax.numpy as jnp
from jax.experimental import pallas as pl
from jax.experimental.pallas import tpu as pltpu

# ---------------- configuration (small shapes consistent with the module) ----
DIM = 32
HEADS = 4
HEAD_DIM = DIM // HEADS
FFN_DIM = 4 * DIM
MAX_SEQ_LEN = 128
BATCH = 2
SEQ = 16          # decoder sequence length
MEM_SEQ = 16      # encoder-memory sequence length


# ------------------------------- fused kernel --------------------------------
def _nat_decoder_layer_kernel(x_ref, mem_ref, pos_ref, w_ref, b_ref, out_ref):
    """Three multi-head attentions + feed-forward, whole batch, one invocation.

    w_ref: (5, D, 4D)  rows 0..2 = [Wq*scale | Wk | Wv | Wo] per attention module,
                       row 3 = ffn_W1 (D,4D), row 4 = ffn_W2^T (D,4D)
    b_ref: (5, 4D)     rows 0..2 = [bq*scale | bk | bv | bo], row 3 = ffn_b1,
                       row 4 = [ffn_b2 | zeros]
    """
    B, S, D = x_ref.shape
    Sm = mem_ref.shape[1]
    N = B * S
    Nm = B * Sm
    D3 = 3 * D

    x2 = x_ref[...].reshape(N, D)           # (N, D)  leading-dim collapse (free)
    mem2 = mem_ref[...].reshape(Nm, D)      # (Nm, D)
    pos = pos_ref[...]                      # (S, D)  shared across batch
    b_all = b_ref[...]                      # (5, 4D) tiny, load once

    def softmax_last(s):
        s = s - jnp.max(s, axis=-1, keepdims=True)
        p = jnp.exp(s)
        return p * pl.reciprocal(jnp.sum(p, axis=-1, keepdims=True), approx=True)

    def attend_batched(q, kv, sq, sk, wo, bo):
        # q: (B*sq, D) pre-scaled query; kv: (B*sk, 2D) = [K | V]
        q3 = q.reshape(B, sq, D)
        kv3 = kv.reshape(B, sk, 2 * D)
        outs = []
        for h in range(HEADS):              # static unroll; single-batch-dim einsums
            lo = h * HEAD_DIM
            qh = q3[:, :, lo:lo + HEAD_DIM]
            kh = kv3[:, :, lo:lo + HEAD_DIM]
            vh = kv3[:, :, D + lo:D + lo + HEAD_DIM]
            p = softmax_last(jnp.einsum('bqd,bkd->bqk', qh, kh,
                                        preferred_element_type=jnp.float32))
            outs.append(jnp.einsum('bqk,bkd->bqd', p, vh,
                                   preferred_element_type=jnp.float32))
        # one lane-concat + ONE K=D output projection (no per-head accumulation matmuls)
        o = jnp.concatenate(outs, axis=-1).reshape(B * sq, D)
        return jnp.dot(o, wo, preferred_element_type=jnp.float32) + bo

    def attend_shared(q, kv, wo, bo):
        # q: (N, D) pre-scaled; kv: (sk, 2D) shared across the batch -> pure 2-D math
        outs = []
        for h in range(HEADS):
            lo = h * HEAD_DIM
            qh = q[:, lo:lo + HEAD_DIM]                 # (N, Hd)
            kh = kv[:, lo:lo + HEAD_DIM]                # (sk, Hd)
            vh = kv[:, D + lo:D + lo + HEAD_DIM]        # (sk, Hd)
            p = softmax_last(jnp.einsum('nd,kd->nk', qh, kh,
                                        preferred_element_type=jnp.float32))
            outs.append(jnp.dot(p, vh, preferred_element_type=jnp.float32))
        o = jnp.concatenate(outs, axis=-1)              # (N, D)
        return jnp.dot(o, wo, preferred_element_type=jnp.float32) + bo

    # ---- module 0: self attention (q == kv input -> fully fused QKV matmul) ----
    w0 = w_ref[0]                                       # (D, 4D)
    qkv0 = jnp.dot(x2, w0[:, :D3],
                   preferred_element_type=jnp.float32) + b_all[0:1, :D3]
    h1 = attend_batched(qkv0[:, :D], qkv0[:, D:D3], S, S,
                        w0[:, D3:], b_all[0:1, D3:])

    # ---- module 1: attention over positional state (K/V computed once, shared) ----
    w1 = w_ref[1]
    q1 = jnp.dot(h1, w1[:, :D],
                 preferred_element_type=jnp.float32) + b_all[1:2, :D]
    kv1 = jnp.dot(pos, w1[:, D:D3],
                  preferred_element_type=jnp.float32) + b_all[1:2, D:D3]   # (S, 2D)
    h2 = attend_shared(q1, kv1, w1[:, D3:], b_all[1:2, D3:])

    # ---- module 2: cross attention over encoder memory ----
    w2 = w_ref[2]
    q_m = jnp.dot(h2, w2[:, :D],
                  preferred_element_type=jnp.float32) + b_all[2:3, :D]
    kv_m = jnp.dot(mem2, w2[:, D:D3],
                   preferred_element_type=jnp.float32) + b_all[2:3, D:D3]  # (Nm, 2D)
    h3 = attend_batched(q_m, kv_m, S, Sm, w2[:, D3:], b_all[2:3, D3:])

    # ---- feed-forward: Linear(D,4D) + ReLU + Linear(4D,D)  (dropout = identity) ----
    ff = jnp.dot(h3, w_ref[3], preferred_element_type=jnp.float32) + b_all[3:4, :]
    ff = jnp.maximum(ff, 0.0)
    out = jnp.einsum('nf,df->nd', ff, w_ref[4],            # w_ref[4] = W2^T
                     preferred_element_type=jnp.float32) + b_all[4:5, :D]
    out_ref[...] = out                                      # flat (B*S, D) store


# ------------------------------- wrapper --------------------------------------
def nat_decoder_layer_forward(packed, x, memory, mask=None):
    assert mask is None  # TODO(synk): additive attention mask not implemented
    B, S, D = x.shape
    pos = packed["pos_table"][:S]                            # (S, D)
    vmem = pl.BlockSpec(memory_space=pltpu.MemorySpace.VMEM)
    out_flat = pl.pallas_call(
        _nat_decoder_layer_kernel,
        out_shape=jax.ShapeDtypeStruct((B * S, D), jnp.float32),
        in_specs=[vmem, vmem, vmem, vmem, vmem],
        out_specs=vmem,
        compiler_params=pltpu.CompilerParams(vmem_limit_bytes=32 * 1024 * 1024),
        # no grid: single invocation, all ~120 KB of operands VMEM-resident.
    )(x, memory, pos, packed["weights"], packed["biases"])
    return out_flat.reshape(B, S, D)


# ------------------------------- params ---------------------------------------
def init_params(key):
    keys = iter(jax.random.split(key, 32))

    def dense(shape, scale=0.05):
        return (scale * jax.random.normal(next(keys), shape)).astype(jnp.float32)

    # canonical params, order per module = [wq, wk, wv, wo] for
    # modules [self_attention, pos_embed, mask_attn]
    attn_w = jnp.stack([dense((DIM, DIM)) for _ in range(12)])     # (12, D, D)
    attn_b = jnp.stack([dense((DIM,), 0.01) for _ in range(12)])   # (12, D)
    return dict(
        attn_w=attn_w,
        attn_b=attn_b,
        ffn_w1=dense((DIM, FFN_DIM)),
        ffn_b1=dense((FFN_DIM,), 0.01),
        ffn_w2=dense((FFN_DIM, DIM)),
        ffn_b2=dense((DIM,), 0.01),
        pos_table=dense((MAX_SEQ_LEN, DIM)),                        # nn.Embedding
    )


def pack_params(p):
    """Pack canonical params into 2 lane-dense kernel operands; fold 1/sqrt(Hd) into Wq/bq."""
    scale = 1.0 / (HEAD_DIM ** 0.5)
    aw, ab = p["attn_w"], p["attn_b"]
    w_rows, b_rows = [], []
    for m in range(3):
        wq, wk, wv, wo = (aw[4 * m + 0] * scale, aw[4 * m + 1],
                          aw[4 * m + 2], aw[4 * m + 3])
        bq, bk, bv, bo = (ab[4 * m + 0] * scale, ab[4 * m + 1],
                          ab[4 * m + 2], ab[4 * m + 3])
        w_rows.append(jnp.concatenate([wq, wk, wv, wo], axis=1))    # (D, 4D)
        b_rows.append(jnp.concatenate([bq, bk, bv, bo], axis=0))    # (4D,)
    w_rows.append(p["ffn_w1"])                                      # (D, 4D)
    w_rows.append(p["ffn_w2"].T)                                    # W2^T: (D, 4D)
    b_rows.append(p["ffn_b1"])                                      # (4D,)
    b_rows.append(jnp.concatenate([p["ffn_b2"],
                                   jnp.zeros((3 * DIM,), jnp.float32)], axis=0))
    return dict(weights=jnp.stack(w_rows),                          # (5, D, 4D)
                biases=jnp.stack(b_rows),                           # (5, 4D)
                pos_table=p["pos_table"])


# ------------------------------- pure-JAX reference ----------------------------
def _ref_mha(q_in, kv_in, wq, bq, wk, bk, wv, bv, wo, bo):
    q = q_in @ wq + bq
    k = kv_in @ wk + bk
    v = kv_in @ wv + bv
    B, Sq, D = q.shape
    Sk = k.shape[1]
    qh = q.reshape(B, Sq, HEADS, HEAD_DIM).transpose(0, 2, 1, 3)
    kh = k.reshape(B, Sk, HEADS, HEAD_DIM).transpose(0, 2, 1, 3)
    vh = v.reshape(B, Sk, HEADS, HEAD_DIM).transpose(0, 2, 1, 3)
    s = jnp.einsum('bhqd,bhkd->bhqk', qh, kh) / (HEAD_DIM ** 0.5)
    p = jax.nn.softmax(s, axis=-1)
    o = jnp.einsum('bhqk,bhkd->bhqd', p, vh)
    o = o.transpose(0, 2, 1, 3).reshape(B, Sq, D)
    return o @ wo + bo


def _ref_forward(params, x, memory):
    B, S, D = x.shape
    pos = jnp.broadcast_to(params["pos_table"][:S][None], (B, S, D))
    aw, ab = params["attn_w"], params["attn_b"]

    def m(i, q_in, kv_in):
        return _ref_mha(q_in, kv_in,
                        aw[4 * i + 0], ab[4 * i + 0], aw[4 * i + 1], ab[4 * i + 1],
                        aw[4 * i + 2], ab[4 * i + 2], aw[4 * i + 3], ab[4 * i + 3])

    h = m(0, x, x)
    h = m(1, h, pos)
    h = m(2, h, memory)
    ff = jnp.maximum(h @ params["ffn_w1"] + params["ffn_b1"], 0.0)
    return ff @ params["ffn_w2"] + params["ffn_b2"]


# ----------------------------------- main --------------------------------------
if __name__ == "__main__":
    key = jax.random.PRNGKey(0)
    pkey, xkey, mkey = jax.random.split(key, 3)
    params = init_params(pkey)
    packed = pack_params(params)
    x = jax.random.normal(xkey, (BATCH, SEQ, DIM), jnp.float32)
    memory = jax.random.normal(mkey, (BATCH, MEM_SEQ, DIM), jnp.float32)

    fwd = jax.jit(functools.partial(nat_decoder_layer_forward, packed))
    out = fwd(x, memory)
    jax.block_until_ready(out)

    assert out.shape == (BATCH, SEQ, DIM)
    ref = _ref_forward(params, x, memory)
    err = float(jnp.max(jnp.abs(out - ref)))
    assert err < 2e-3, f"kernel mismatch vs pure-JAX reference: max|diff|={err}"
    print("KERNEL_OK")
</pallas_src>

<mosaic_0001>
module attributes {stable_mosaic.version = 11 : i64} {
  func.func @_nat_decoder_layer_kernel(%arg0: memref<2x16x32xf32, #tpu.memory_space<vmem>>, %arg1: memref<2x16x32xf32, #tpu.memory_space<vmem>>, %arg2: memref<16x32xf32, #tpu.memory_space<vmem>>, %arg3: memref<5x32x128xf32, #tpu.memory_space<vmem>>, %arg4: memref<5x128xf32, #tpu.memory_space<vmem>>, %arg5: memref<32x32xf32, #tpu.memory_space<vmem>>) attributes {dimension_semantics = [], scalar_prefetch = 0 : i64, scratch_operands = 0 : i64, tpu.core_type = #tpu.core_type<tc>} {
    %c0 = arith.constant 0 : index
    %c0_0 = arith.constant 0 : index
    %c0_1 = arith.constant 0 : index
    %0 = vector.load %arg0[%c0, %c0_0, %c0_1] : memref<2x16x32xf32, #tpu.memory_space<vmem>>, vector<2x16x32xf32>
    %1 = vector.shape_cast %0 : vector<2x16x32xf32> to vector<32x32xf32>
    %c0_2 = arith.constant 0 : index
    %c0_3 = arith.constant 0 : index
    %c0_4 = arith.constant 0 : index
    %2 = vector.load %arg1[%c0_2, %c0_3, %c0_4] : memref<2x16x32xf32, #tpu.memory_space<vmem>>, vector<2x16x32xf32>
    %3 = vector.shape_cast %2 : vector<2x16x32xf32> to vector<32x32xf32>
    %c0_5 = arith.constant 0 : index
    %c0_6 = arith.constant 0 : index
    %4 = vector.load %arg2[%c0_5, %c0_6] : memref<16x32xf32, #tpu.memory_space<vmem>>, vector<16x32xf32>
    %c0_7 = arith.constant 0 : index
    %c0_8 = arith.constant 0 : index
    %5 = vector.load %arg4[%c0_7, %c0_8] : memref<5x128xf32, #tpu.memory_space<vmem>>, vector<5x128xf32>
    %c0_9 = arith.constant 0 : index
    %c0_10 = arith.constant 0 : index
    %c0_11 = arith.constant 0 : index
    %6 = vector.load %arg3[%c0_9, %c0_10, %c0_11] : memref<5x32x128xf32, #tpu.memory_space<vmem>>, vector<1x32x128xf32>
    %7 = vector.shape_cast %6 : vector<1x32x128xf32> to vector<32x128xf32>
    %8 = vector.extract_strided_slice %7 {offsets = [0, 0], sizes = [32, 96], strides = [1, 1]} : vector<32x128xf32> to vector<32x96xf32>
    %cst = arith.constant dense<0.000000e+00> : vector<32x96xf32>
    %9 = tpu.matmul %1, %8, %cst {dimension_numbers = #tpu.dot_dimension_numbers<[1], [0], [0], [1], [0, 0, 1, 1], [], []>} : vector<32x32xf32>, vector<32x96xf32>, vector<32x96xf32> -> vector<32x96xf32>
    %10 = vector.extract_strided_slice %5 {offsets = [0, 0], sizes = [1, 96], strides = [1, 1]} : vector<5x128xf32> to vector<1x96xf32>
    %11 = vector.broadcast %10 : vector<1x96xf32> to vector<32x96xf32>
    %12 = arith.addf %9, %11 : vector<32x96xf32>
    %13 = vector.extract_strided_slice %12 {offsets = [0, 0], sizes = [32, 32], strides = [1, 1]} : vector<32x96xf32> to vector<32x32xf32>
    %14 = vector.extract_strided_slice %12 {offsets = [0, 32], sizes = [32, 64], strides = [1, 1]} : vector<32x96xf32> to vector<32x64xf32>
    %15 = vector.extract_strided_slice %7 {offsets = [0, 96], sizes = [32, 32], strides = [1, 1]} : vector<32x128xf32> to vector<32x32xf32>
    %16 = vector.extract_strided_slice %5 {offsets = [0, 96], sizes = [1, 32], strides = [1, 1]} : vector<5x128xf32> to vector<1x32xf32>
    %17 = vector.shape_cast %13 : vector<32x32xf32> to vector<2x16x32xf32>
    %18 = vector.shape_cast %14 : vector<32x64xf32> to vector<2x16x64xf32>
    %19 = vector.extract_strided_slice %17 {offsets = [0, 0, 0], sizes = [2, 16, 8], strides = [1, 1, 1]} : vector<2x16x32xf32> to vector<2x16x8xf32>
    %20 = vector.extract_strided_slice %18 {offsets = [0, 0, 0], sizes = [2, 16, 8], strides = [1, 1, 1]} : vector<2x16x64xf32> to vector<2x16x8xf32>
    %21 = vector.extract_strided_slice %18 {offsets = [0, 0, 32], sizes = [2, 16, 8], strides = [1, 1, 1]} : vector<2x16x64xf32> to vector<2x16x8xf32>
    "tpu.trace_start"() <{level = 10 : i32, message = "bqd,bkd->bqk"}> : () -> ()
    %cst_12 = arith.constant dense<0.000000e+00> : vector<2x16x16xf32>
    %22 = tpu.matmul %19, %20, %cst_12 {dimension_numbers = #tpu.dot_dimension_numbers<[2], [2], [1], [1], [0, 0, 0, 1, 1, 1], [0], [0]>} : vector<2x16x8xf32>, vector<2x16x8xf32>, vector<2x16x16xf32> -> vector<2x16x16xf32>
    "tpu.trace_stop"() : () -> ()
    %cst_13 = arith.constant dense<0xFF800000> : vector<2x16xf32>
    %23 = vector.multi_reduction <maximumf>, %22, %cst_13 [2] : vector<2x16x16xf32> to vector<2x16xf32>
    %24 = vector.shape_cast %23 : vector<2x16xf32> to vector<2x16x1xf32>
    %25 = vector.broadcast %24 : vector<2x16x1xf32> to vector<2x16x16xf32>
    %26 = arith.subf %22, %25 : vector<2x16x16xf32>
    %27 = math.exp %26 : vector<2x16x16xf32>
    %cst_14 = arith.constant dense<0.000000e+00> : vector<2x16xf32>
    %28 = vector.multi_reduction <add>, %27, %cst_14 [2] : vector<2x16x16xf32> to vector<2x16xf32>
    %29 = vector.shape_cast %28 : vector<2x16xf32> to vector<2x16x1xf32>
    %30 = tpu.reciprocal %29 {approx = true} : vector<2x16x1xf32> -> vector<2x16x1xf32>
    %31 = vector.broadcast %30 : vector<2x16x1xf32> to vector<2x16x16xf32>
    %32 = arith.mulf %27, %31 : vector<2x16x16xf32>
    "tpu.trace_start"() <{level = 10 : i32, message = "bqk,bkd->bqd"}> : () -> ()
    %cst_15 = arith.constant dense<0.000000e+00> : vector<2x16x8xf32>
    %33 = tpu.matmul %32, %21, %cst_15 {dimension_numbers = #tpu.dot_dimension_numbers<[2], [1], [1], [2], [0, 0, 0, 1, 1, 2], [0], [0]>} : vector<2x16x16xf32>, vector<2x16x8xf32>, vector<2x16x8xf32> -> vector<2x16x8xf32>
    "tpu.trace_stop"() : () -> ()
    %34 = vector.extract_strided_slice %17 {offsets = [0, 0, 8], sizes = [2, 16, 8], strides = [1, 1, 1]} : vector<2x16x32xf32> to vector<2x16x8xf32>
    %35 = vector.extract_strided_slice %18 {offsets = [0, 0, 8], sizes = [2, 16, 8], strides = [1, 1, 1]} : vector<2x16x64xf32> to vector<2x16x8xf32>
    %36 = vector.extract_strided_slice %18 {offsets = [0, 0, 40], sizes = [2, 16, 8], strides = [1, 1, 1]} : vector<2x16x64xf32> to vector<2x16x8xf32>
    "tpu.trace_start"() <{level = 10 : i32, message = "bqd,bkd->bqk"}> : () -> ()
    %cst_16 = arith.constant dense<0.000000e+00> : vector<2x16x16xf32>
    %37 = tpu.matmul %34, %35, %cst_16 {dimension_numbers = #tpu.dot_dimension_numbers<[2], [2], [1], [1], [0, 0, 0, 1, 1, 1], [0], [0]>} : vector<2x16x8xf32>, vector<2x16x8xf32>, vector<2x16x16xf32> -> vector<2x16x16xf32>
    "tpu.trace_stop"() : () -> ()
    %cst_17 = arith.constant dense<0xFF800000> : vector<2x16xf32>
    %38 = vector.multi_reduction <maximumf>, %37, %cst_17 [2] : vector<2x16x16xf32> to vector<2x16xf32>
    %39 = vector.shape_cast %38 : vector<2x16xf32> to vector<2x16x1xf32>
    %40 = vector.broadcast %39 : vector<2x16x1xf32> to vector<2x16x16xf32>
    %41 = arith.subf %37, %40 : vector<2x16x16xf32>
    %42 = math.exp %41 : vector<2x16x16xf32>
    %cst_18 = arith.constant dense<0.000000e+00> : vector<2x16xf32>
    %43 = vector.multi_reduction <add>, %42, %cst_18 [2] : vector<2x16x16xf32> to vector<2x16xf32>
    %44 = vector.shape_cast %43 : vector<2x16xf32> to vector<2x16x1xf32>
    %45 = tpu.reciprocal %44 {approx = true} : vector<2x16x1xf32> -> vector<2x16x1xf32>
    %46 = vector.broadcast %45 : vector<2x16x1xf32> to vector<2x16x16xf32>
    %47 = arith.mulf %42, %46 : vector<2x16x16xf32>
    "tpu.trace_start"() <{level = 10 : i32, message = "bqk,bkd->bqd"}> : () -> ()
    %cst_19 = arith.constant dense<0.000000e+00> : vector<2x16x8xf32>
    %48 = tpu.matmul %47, %36, %cst_19 {dimension_numbers = #tpu.dot_dimension_numbers<[2], [1], [1], [2], [0, 0, 0, 1, 1, 2], [0], [0]>} : vector<2x16x16xf32>, vector<2x16x8xf32>, vector<2x16x8xf32> -> vector<2x16x8xf32>
    "tpu.trace_stop"() : () -> ()
    %49 = vector.extract_strided_slice %17 {offsets = [0, 0, 16], sizes = [2, 16, 8], strides = [1, 1, 1]} : vector<2x16x32xf32> to vector<2x16x8xf32>
    %50 = vector.extract_strided_slice %18 {offsets = [0, 0, 16], sizes = [2, 16, 8], strides = [1, 1, 1]} : vector<2x16x64xf32> to vector<2x16x8xf32>
    %51 = vector.extract_strided_slice %18 {offsets = [0, 0, 48], sizes = [2, 16, 8], strides = [1, 1, 1]} : vector<2x16x64xf32> to vector<2x16x8xf32>
    "tpu.trace_start"() <{level = 10 : i32, message = "bqd,bkd->bqk"}> : () -> ()
    %cst_20 = arith.constant dense<0.000000e+00> : vector<2x16x16xf32>
    %52 = tpu.matmul %49, %50, %cst_20 {dimension_numbers = #tpu.dot_dimension_numbers<[2], [2], [1], [1], [0, 0, 0, 1, 1, 1], [0], [0]>} : vector<2x16x8xf32>, vector<2x16x8xf32>, vector<2x16x16xf32> -> vector<2x16x16xf32>
    "tpu.trace_stop"() : () -> ()
    %cst_21 = arith.constant dense<0xFF800000> : vector<2x16xf32>
    %53 = vector.multi_reduction <maximumf>, %52, %cst_21 [2] : vector<2x16x16xf32> to vector<2x16xf32>
    %54 = vector.shape_cast %53 : vector<2x16xf32> to vector<2x16x1xf32>
    %55 = vector.broadcast %54 : vector<2x16x1xf32> to vector<2x16x16xf32>
    %56 = arith.subf %52, %55 : vector<2x16x16xf32>
    %57 = math.exp %56 : vector<2x16x16xf32>
    %cst_22 = arith.constant dense<0.000000e+00> : vector<2x16xf32>
    %58 = vector.multi_reduction <add>, %57, %cst_22 [2] : vector<2x16x16xf32> to vector<2x16xf32>
    %59 = vector.shape_cast %58 : vector<2x16xf32> to vector<2x16x1xf32>
    %60 = tpu.reciprocal %59 {approx = true} : vector<2x16x1xf32> -> vector<2x16x1xf32>
    %61 = vector.broadcast %60 : vector<2x16x1xf32> to vector<2x16x16xf32>
    %62 = arith.mulf %57, %61 : vector<2x16x16xf32>
    "tpu.trace_start"() <{level = 10 : i32, message = "bqk,bkd->bqd"}> : () -> ()
    %cst_23 = arith.constant dense<0.000000e+00> : vector<2x16x8xf32>
    %63 = tpu.matmul %62, %51, %cst_23 {dimension_numbers = #tpu.dot_dimension_numbers<[2], [1], [1], [2], [0, 0, 0, 1, 1, 2], [0], [0]>} : vector<2x16x16xf32>, vector<2x16x8xf32>, vector<2x16x8xf32> -> vector<2x16x8xf32>
    "tpu.trace_stop"() : () -> ()
    %64 = vector.extract_strided_slice %17 {offsets = [0, 0, 24], sizes = [2, 16, 8], strides = [1, 1, 1]} : vector<2x16x32xf32> to vector<2x16x8xf32>
    %65 = vector.extract_strided_slice %18 {offsets = [0, 0, 24], sizes = [2, 16, 8], strides = [1, 1, 1]} : vector<2x16x64xf32> to vector<2x16x8xf32>
    %66 = vector.extract_strided_slice %18 {offsets = [0, 0, 56], sizes = [2, 16, 8], strides = [1, 1, 1]} : vector<2x16x64xf32> to vector<2x16x8xf32>
    "tpu.trace_start"() <{level = 10 : i32, message = "bqd,bkd->bqk"}> : () -> ()
    %cst_24 = arith.constant dense<0.000000e+00> : vector<2x16x16xf32>
    %67 = tpu.matmul %64, %65, %cst_24 {dimension_numbers = #tpu.dot_dimension_numbers<[2], [2], [1], [1], [0, 0, 0, 1, 1, 1], [0], [0]>} : vector<2x16x8xf32>, vector<2x16x8xf32>, vector<2x16x16xf32> -> vector<2x16x16xf32>
    "tpu.trace_stop"() : () -> ()
    %cst_25 = arith.constant dense<0xFF800000> : vector<2x16xf32>
    %68 = vector.multi_reduction <maximumf>, %67, %cst_25 [2] : vector<2x16x16xf32> to vector<2x16xf32>
    %69 = vector.shape_cast %68 : vector<2x16xf32> to vector<2x16x1xf32>
    %70 = vector.broadcast %69 : vector<2x16x1xf32> to vector<2x16x16xf32>
    %71 = arith.subf %67, %70 : vector<2x16x16xf32>
    %72 = math.exp %71 : vector<2x16x16xf32>
    %cst_26 = arith.constant dense<0.000000e+00> : vector<2x16xf32>
    %73 = vector.multi_reduction <add>, %72, %cst_26 [2] : vector<2x16x16xf32> to vector<2x16xf32>
    %74 = vector.shape_cast %73 : vector<2x16xf32> to vector<2x16x1xf32>
    %75 = tpu.reciprocal %74 {approx = true} : vector<2x16x1xf32> -> vector<2x16x1xf32>
    %76 = vector.broadcast %75 : vector<2x16x1xf32> to vector<2x16x16xf32>
    %77 = arith.mulf %72, %76 : vector<2x16x16xf32>
    "tpu.trace_start"() <{level = 10 : i32, message = "bqk,bkd->bqd"}> : () -> ()
    %cst_27 = arith.constant dense<0.000000e+00> : vector<2x16x8xf32>
    %78 = tpu.matmul %77, %66, %cst_27 {dimension_numbers = #tpu.dot_dimension_numbers<[2], [1], [1], [2], [0, 0, 0, 1, 1, 2], [0], [0]>} : vector<2x16x16xf32>, vector<2x16x8xf32>, vector<2x16x8xf32> -> vector<2x16x8xf32>
    "tpu.trace_stop"() : () -> ()
    %79 = tpu.concatenate %33, %48, %63, %78 in 2 : vector<2x16x8xf32>, vector<2x16x8xf32>, vector<2x16x8xf32>, vector<2x16x8xf32> -> vector<2x16x32xf32>
    %80 = vector.shape_cast %79 : vector<2x16x32xf32> to vector<32x32xf32>
    %cst_28 = arith.constant dense<0.000000e+00> : vector<32x32xf32>
    %81 = tpu.matmul %80, %15, %cst_28 {dimension_numbers = #tpu.dot_dimension_numbers<[1], [0], [0], [1], [0, 0, 1, 1], [], []>} : vector<32x32xf32>, vector<32x32xf32>, vector<32x32xf32> -> vector<32x32xf32>
    %82 = vector.broadcast %16 : vector<1x32xf32> to vector<32x32xf32>
    %83 = arith.addf %81, %82 : vector<32x32xf32>
    %c1 = arith.constant 1 : index
    %c0_29 = arith.constant 0 : index
    %c0_30 = arith.constant 0 : index
    %84 = vector.load %arg3[%c1, %c0_29, %c0_30] : memref<5x32x128xf32, #tpu.memory_space<vmem>>, vector<1x32x128xf32>
    %85 = vector.shape_cast %84 : vector<1x32x128xf32> to vector<32x128xf32>
    %86 = vector.extract_strided_slice %85 {offsets = [0, 0], sizes = [32, 32], strides = [1, 1]} : vector<32x128xf32> to vector<32x32xf32>
    %cst_31 = arith.constant dense<0.000000e+00> : vector<32x32xf32>
    %87 = tpu.matmul %83, %86, %cst_31 {dimension_numbers = #tpu.dot_dimension_numbers<[1], [0], [0], [1], [0, 0, 1, 1], [], []>} : vector<32x32xf32>, vector<32x32xf32>, vector<32x32xf32> -> vector<32x32xf32>
    %88 = vector.extract_strided_slice %5 {offsets = [1, 0], sizes = [1, 32], strides = [1, 1]} : vector<5x128xf32> to vector<1x32xf32>
    %89 = vector.broadcast %88 : vector<1x32xf32> to vector<32x32xf32>
    %90 = arith.addf %87, %89 : vector<32x32xf32>
    %91 = vector.extract_strided_slice %85 {offsets = [0, 32], sizes = [32, 64], strides = [1, 1]} : vector<32x128xf32> to vector<32x64xf32>
    %cst_32 = arith.constant dense<0.000000e+00> : vector<16x64xf32>
    %92 = tpu.matmul %4, %91, %cst_32 {dimension_numbers = #tpu.dot_dimension_numbers<[1], [0], [0], [1], [0, 0, 1, 1], [], []>} : vector<16x32xf32>, vector<32x64xf32>, vector<16x64xf32> -> vector<16x64xf32>
    %93 = vector.extract_strided_slice %5 {offsets = [1, 32], sizes = [1, 64], strides = [1, 1]} : vector<5x128xf32> to vector<1x64xf32>
    %94 = vector.broadcast %93 : vector<1x64xf32> to vector<16x64xf32>
    %95 = arith.addf %92, %94 : vector<16x64xf32>
    %96 = vector.extract_strided_slice %85 {offsets = [0, 96], sizes = [32, 32], strides = [1, 1]} : vector<32x128xf32> to vector<32x32xf32>
    %97 = vector.extract_strided_slice %5 {offsets = [1, 96], sizes = [1, 32], strides = [1, 1]} : vector<5x128xf32> to vector<1x32xf32>
    %98 = vector.extract_strided_slice %90 {offsets = [0, 0], sizes = [32, 8], strides = [1, 1]} : vector<32x32xf32> to vector<32x8xf32>
    %99 = vector.extract_strided_slice %95 {offsets = [0, 0], sizes = [16, 8], strides = [1, 1]} : vector<16x64xf32> to vector<16x8xf32>
    %100 = vector.extract_strided_slice %95 {offsets = [0, 32], sizes = [16, 8], strides = [1, 1]} : vector<16x64xf32> to vector<16x8xf32>
    "tpu.trace_start"() <{level = 10 : i32, message = "nd,kd->nk"}> : () -> ()
    %cst_33 = arith.constant dense<0.000000e+00> : vector<32x16xf32>
    %101 = tpu.matmul %98, %99, %cst_33 {dimension_numbers = #tpu.dot_dimension_numbers<[1], [1], [0], [0], [0, 0, 1, 0], [], []>} : vector<32x8xf32>, vector<16x8xf32>, vector<32x16xf32> -> vector<32x16xf32>
    "tpu.trace_stop"() : () -> ()
    %cst_34 = arith.constant dense<0xFF800000> : vector<32xf32>
    %102 = vector.multi_reduction <maximumf>, %101, %cst_34 [1] : vector<32x16xf32> to vector<32xf32>
    %103 = vector.shape_cast %102 : vector<32xf32> to vector<32x1xf32>
    %104 = vector.broadcast %103 : vector<32x1xf32> to vector<32x16xf32>
    %105 = arith.subf %101, %104 : vector<32x16xf32>
    %106 = math.exp %105 : vector<32x16xf32>
    %cst_35 = arith.constant dense<0.000000e+00> : vector<32xf32>
    %107 = vector.multi_reduction <add>, %106, %cst_35 [1] : vector<32x16xf32> to vector<32xf32>
    %108 = vector.shape_cast %107 : vector<32xf32> to vector<32x1xf32>
    %109 = tpu.reciprocal %108 {approx = true} : vector<32x1xf32> -> vector<32x1xf32>
    %110 = vector.broadcast %109 : vector<32x1xf32> to vector<32x16xf32>
    %111 = arith.mulf %106, %110 : vector<32x16xf32>
    %cst_36 = arith.constant dense<0.000000e+00> : vector<32x8xf32>
    %112 = tpu.matmul %111, %100, %cst_36 {dimension_numbers = #tpu.dot_dimension_numbers<[1], [0], [0], [1], [0, 0, 1, 1], [], []>} : vector<32x16xf32>, vector<16x8xf32>, vector<32x8xf32> -> vector<32x8xf32>
    %113 = vector.extract_strided_slice %90 {offsets = [0, 8], sizes = [32, 8], strides = [1, 1]} : vector<32x32xf32> to vector<32x8xf32>
    %114 = vector.extract_strided_slice %95 {offsets = [0, 8], sizes = [16, 8], strides = [1, 1]} : vector<16x64xf32> to vector<16x8xf32>
    %115 = vector.extract_strided_slice %95 {offsets = [0, 40], sizes = [16, 8], strides = [1, 1]} : vector<16x64xf32> to vector<16x8xf32>
    "tpu.trace_start"() <{level = 10 : i32, message = "nd,kd->nk"}> : () -> ()
    %cst_37 = arith.constant dense<0.000000e+00> : vector<32x16xf32>
    %116 = tpu.matmul %113, %114, %cst_37 {dimension_numbers = #tpu.dot_dimension_numbers<[1], [1], [0], [0], [0, 0, 1, 0], [], []>} : vector<32x8xf32>, vector<16x8xf32>, vector<32x16xf32> -> vector<32x16xf32>
    "tpu.trace_stop"() : () -> ()
    %cst_38 = arith.constant dense<0xFF800000> : vector<32xf32>
    %117 = vector.multi_reduction <maximumf>, %116, %cst_38 [1] : vector<32x16xf32> to vector<32xf32>
    %118 = vector.shape_cast %117 : vector<32xf32> to vector<32x1xf32>
    %119 = vector.broadcast %118 : vector<32x1xf32> to vector<32x16xf32>
    %120 = arith.subf %116, %119 : vector<32x16xf32>
    %121 = math.exp %120 : vector<32x16xf32>
    %cst_39 = arith.constant dense<0.000000e+00> : vector<32xf32>
    %122 = vector.multi_reduction <add>, %121, %cst_39 [1] : vector<32x16xf32> to vector<32xf32>
    %123 = vector.shape_cast %122 : vector<32xf32> to vector<32x1xf32>
    %124 = tpu.reciprocal %123 {approx = true} : vector<32x1xf32> -> vector<32x1xf32>
    %125 = vector.broadcast %124 : vector<32x1xf32> to vector<32x16xf32>
    %126 = arith.mulf %121, %125 : vector<32x16xf32>
    %cst_40 = arith.constant dense<0.000000e+00> : vector<32x8xf32>
    %127 = tpu.matmul %126, %115, %cst_40 {dimension_numbers = #tpu.dot_dimension_numbers<[1], [0], [0], [1], [0, 0, 1, 1], [], []>} : vector<32x16xf32>, vector<16x8xf32>, vector<32x8xf32> -> vector<32x8xf32>
    %128 = vector.extract_strided_slice %90 {offsets = [0, 16], sizes = [32, 8], strides = [1, 1]} : vector<32x32xf32> to vector<32x8xf32>
    %129 = vector.extract_strided_slice %95 {offsets = [0, 16], sizes = [16, 8], strides = [1, 1]} : vector<16x64xf32> to vector<16x8xf32>
    %130 = vector.extract_strided_slice %95 {offsets = [0, 48], sizes = [16, 8], strides = [1, 1]} : vector<16x64xf32> to vector<16x8xf32>
    "tpu.trace_start"() <{level = 10 : i32, message = "nd,kd->nk"}> : () -> ()
    %cst_41 = arith.constant dense<0.000000e+00> : vector<32x16xf32>
    %131 = tpu.matmul %128, %129, %cst_41 {dimension_numbers = #tpu.dot_dimension_numbers<[1], [1], [0], [0], [0, 0, 1, 0], [], []>} : vector<32x8xf32>, vector<16x8xf32>, vector<32x16xf32> -> vector<32x16xf32>
    "tpu.trace_stop"() : () -> ()
    %cst_42 = arith.constant dense<0xFF800000> : vector<32xf32>
    %132 = vector.multi_reduction <maximumf>, %131, %cst_42 [1] : vector<32x16xf32> to vector<32xf32>
    %133 = vector.shape_cast %132 : vector<32xf32> to vector<32x1xf32>
    %134 = vector.broadcast %133 : vector<32x1xf32> to vector<32x16xf32>
    %135 = arith.subf %131, %134 : vector<32x16xf32>
    %136 = math.exp %135 : vector<32x16xf32>
    %cst_43 = arith.constant dense<0.000000e+00> : vector<32xf32>
    %137 = vector.multi_reduction <add>, %136, %cst_43 [1] : vector<32x16xf32> to vector<32xf32>
    %138 = vector.shape_cast %137 : vector<32xf32> to vector<32x1xf32>
    %139 = tpu.reciprocal %138 {approx = true} : vector<32x1xf32> -> vector<32x1xf32>
    %140 = vector.broadcast %139 : vector<32x1xf32> to vector<32x16xf32>
    %141 = arith.mulf %136, %140 : vector<32x16xf32>
    %cst_44 = arith.constant dense<0.000000e+00> : vector<32x8xf32>
    %142 = tpu.matmul %141, %130, %cst_44 {dimension_numbers = #tpu.dot_dimension_numbers<[1], [0], [0], [1], [0, 0, 1, 1], [], []>} : vector<32x16xf32>, vector<16x8xf32>, vector<32x8xf32> -> vector<32x8xf32>
    %143 = vector.extract_strided_slice %90 {offsets = [0, 24], sizes = [32, 8], strides = [1, 1]} : vector<32x32xf32> to vector<32x8xf32>
    %144 = vector.extract_strided_slice %95 {offsets = [0, 24], sizes = [16, 8], strides = [1, 1]} : vector<16x64xf32> to vector<16x8xf32>
    %145 = vector.extract_strided_slice %95 {offsets = [0, 56], sizes = [16, 8], strides = [1, 1]} : vector<16x64xf32> to vector<16x8xf32>
    "tpu.trace_start"() <{level = 10 : i32, message = "nd,kd->nk"}> : () -> ()
    %cst_45 = arith.constant dense<0.000000e+00> : vector<32x16xf32>
    %146 = tpu.matmul %143, %144, %cst_45 {dimension_numbers = #tpu.dot_dimension_numbers<[1], [1], [0], [0], [0, 0, 1, 0], [], []>} : vector<32x8xf32>, vector<16x8xf32>, vector<32x16xf32> -> vector<32x16xf32>
    "tpu.trace_stop"() : () -> ()
    %cst_46 = arith.constant dense<0xFF800000> : vector<32xf32>
    %147 = vector.multi_reduction <maximumf>, %146, %cst_46 [1] : vector<32x16xf32> to vector<32xf32>
    %148 = vector.shape_cast %147 : vector<32xf32> to vector<32x1xf32>
    %149 = vector.broadcast %148 : vector<32x1xf32> to vector<32x16xf32>
    %150 = arith.subf %146, %149 : vector<32x16xf32>
    %151 = math.exp %150 : vector<32x16xf32>
    %cst_47 = arith.constant dense<0.000000e+00> : vector<32xf32>
    %152 = vector.multi_reduction <add>, %151, %cst_47 [1] : vector<32x16xf32> to vector<32xf32>
    %153 = vector.shape_cast %152 : vector<32xf32> to vector<32x1xf32>
    %154 = tpu.reciprocal %153 {approx = true} : vector<32x1xf32> -> vector<32x1xf32>
    %155 = vector.broadcast %154 : vector<32x1xf32> to vector<32x16xf32>
    %156 = arith.mulf %151, %155 : vector<32x16xf32>
    %cst_48 = arith.constant dense<0.000000e+00> : vector<32x8xf32>
    %157 = tpu.matmul %156, %145, %cst_48 {dimension_numbers = #tpu.dot_dimension_numbers<[1], [0], [0], [1], [0, 0, 1, 1], [], []>} : vector<32x16xf32>, vector<16x8xf32>, vector<32x8xf32> -> vector<32x8xf32>
    %158 = tpu.concatenate %112, %127, %142, %157 in 1 : vector<32x8xf32>, vector<32x8xf32>, vector<32x8xf32>, vector<32x8xf32> -> vector<32x32xf32>
    %cst_49 = arith.constant dense<0.000000e+00> : vector<32x32xf32>
    %159 = tpu.matmul %158, %96, %cst_49 {dimension_numbers = #tpu.dot_dimension_numbers<[1], [0], [0], [1], [0, 0, 1, 1], [], []>} : vector<32x32xf32>, vector<32x32xf32>, vector<32x32xf32> -> vector<32x32xf32>
    %160 = vector.broadcast %97 : vector<1x32xf32> to vector<32x32xf32>
    %161 = arith.addf %159, %160 : vector<32x32xf32>
    %c2 = arith.constant 2 : index
    %c0_50 = arith.constant 0 : index
    %c0_51 = arith.constant 0 : index
    %162 = vector.load %arg3[%c2, %c0_50, %c0_51] : memref<5x32x128xf32, #tpu.memory_space<vmem>>, vector<1x32x128xf32>
    %163 = vector.shape_cast %162 : vector<1x32x128xf32> to vector<32x128xf32>
    %164 = vector.extract_strided_slice %163 {offsets = [0, 0], sizes = [32, 32], strides = [1, 1]} : vector<32x128xf32> to vector<32x32xf32>
    %cst_52 = arith.constant dense<0.000000e+00> : vector<32x32xf32>
    %165 = tpu.matmul %161, %164, %cst_52 {dimension_numbers = #tpu.dot_dimension_numbers<[1], [0], [0], [1], [0, 0, 1, 1], [], []>} : vector<32x32xf32>, vector<32x32xf32>, vector<32x32xf32> -> vector<32x32xf32>
    %166 = vector.extract_strided_slice %5 {offsets = [2, 0], sizes = [1, 32], strides = [1, 1]} : vector<5x128xf32> to vector<1x32xf32>
    %167 = vector.broadcast %166 : vector<1x32xf32> to vector<32x32xf32>
    %168 = arith.addf %165, %167 : vector<32x32xf32>
    %169 = vector.extract_strided_slice %163 {offsets = [0, 32], sizes = [32, 64], strides = [1, 1]} : vector<32x128xf32> to vector<32x64xf32>
    %cst_53 = arith.constant dense<0.000000e+00> : vector<32x64xf32>
    %170 = tpu.matmul %3, %169, %cst_53 {dimension_numbers = #tpu.dot_dimension_numbers<[1], [0], [0], [1], [0, 0, 1, 1], [], []>} : vector<32x32xf32>, vector<32x64xf32>, vector<32x64xf32> -> vector<32x64xf32>
    %171 = vector.extract_strided_slice %5 {offsets = [2, 32], sizes = [1, 64], strides = [1, 1]} : vector<5x128xf32> to vector<1x64xf32>
    %172 = vector.broadcast %171 : vector<1x64xf32> to vector<32x64xf32>
    %173 = arith.addf %170, %172 : vector<32x64xf32>
    %174 = vector.extract_strided_slice %163 {offsets = [0, 96], sizes = [32, 32], strides = [1, 1]} : vector<32x128xf32> to vector<32x32xf32>
    %175 = vector.extract_strided_slice %5 {offsets = [2, 96], sizes = [1, 32], strides = [1, 1]} : vector<5x128xf32> to vector<1x32xf32>
    %176 = vector.shape_cast %168 : vector<32x32xf32> to vector<2x16x32xf32>
    %177 = vector.shape_cast %173 : vector<32x64xf32> to vector<2x16x64xf32>
    %178 = vector.extract_strided_slice %176 {offsets = [0, 0, 0], sizes = [2, 16, 8], strides = [1, 1, 1]} : vector<2x16x32xf32> to vector<2x16x8xf32>
    %179 = vector.extract_strided_slice %177 {offsets = [0, 0, 0], sizes = [2, 16, 8], strides = [1, 1, 1]} : vector<2x16x64xf32> to vector<2x16x8xf32>
    %180 = vector.extract_strided_slice %177 {offsets = [0, 0, 32], sizes = [2, 16, 8], strides = [1, 1, 1]} : vector<2x16x64xf32> to vector<2x16x8xf32>
    "tpu.trace_start"() <{level = 10 : i32, message = "bqd,bkd->bqk"}> : () -> ()
    %cst_54 = arith.constant dense<0.000000e+00> : vector<2x16x16xf32>
    %181 = tpu.matmul %178, %179, %cst_54 {dimension_numbers = #tpu.dot_dimension_numbers<[2], [2], [1], [1], [0, 0, 0, 1, 1, 1], [0], [0]>} : vector<2x16x8xf32>, vector<2x16x8xf32>, vector<2x16x16xf32> -> vector<2x16x16xf32>
    "tpu.trace_stop"() : () -> ()
    %cst_55 = arith.constant dense<0xFF800000> : vector<2x16xf32>
    %182 = vector.multi_reduction <maximumf>, %181, %cst_55 [2] : vector<2x16x16xf32> to vector<2x16xf32>
    %183 = vector.shape_cast %182 : vector<2x16xf32> to vector<2x16x1xf32>
    %184 = vector.broadcast %183 : vector<2x16x1xf32> to vector<2x16x16xf32>
    %185 = arith.subf %181, %184 : vector<2x16x16xf32>
    %186 = math.exp %185 : vector<2x16x16xf32>
    %cst_56 = arith.constant dense<0.000000e+00> : vector<2x16xf32>
    %187 = vector.multi_reduction <add>, %186, %cst_56 [2] : vector<2x16x16xf32> to vector<2x16xf32>
    %188 = vector.shape_cast %187 : vector<2x16xf32> to vector<2x16x1xf32>
    %189 = tpu.reciprocal %188 {approx = true} : vector<2x16x1xf32> -> vector<2x16x1xf32>
    %190 = vector.broadcast %189 : vector<2x16x1xf32> to vector<2x16x16xf32>
    %191 = arith.mulf %186, %190 : vector<2x16x16xf32>
    "tpu.trace_start"() <{level = 10 : i32, message = "bqk,bkd->bqd"}> : () -> ()
    %cst_57 = arith.constant dense<0.000000e+00> : vector<2x16x8xf32>
    %192 = tpu.matmul %191, %180, %cst_57 {dimension_numbers = #tpu.dot_dimension_numbers<[2], [1], [1], [2], [0, 0, 0, 1, 1, 2], [0], [0]>} : vector<2x16x16xf32>, vector<2x16x8xf32>, vector<2x16x8xf32> -> vector<2x16x8xf32>
    "tpu.trace_stop"() : () -> ()
    %193 = vector.extract_strided_slice %176 {offsets = [0, 0, 8], sizes = [2, 16, 8], strides = [1, 1, 1]} : vector<2x16x32xf32> to vector<2x16x8xf32>
    %194 = vector.extract_strided_slice %177 {offsets = [0, 0, 8], sizes = [2, 16, 8], strides = [1, 1, 1]} : vector<2x16x64xf32> to vector<2x16x8xf32>
    %195 = vector.extract_strided_slice %177 {offsets = [0, 0, 40], sizes = [2, 16, 8], strides = [1, 1, 1]} : vector<2x16x64xf32> to vector<2x16x8xf32>
    "tpu.trace_start"() <{level = 10 : i32, message = "bqd,bkd->bqk"}> : () -> ()
    %cst_58 = arith.constant dense<0.000000e+00> : vector<2x16x16xf32>
    %196 = tpu.matmul %193, %194, %cst_58 {dimension_numbers = #tpu.dot_dimension_numbers<[2], [2], [1], [1], [0, 0, 0, 1, 1, 1], [0], [0]>} : vector<2x16x8xf32>, vector<2x16x8xf32>, vector<2x16x16xf32> -> vector<2x16x16xf32>
    "tpu.trace_stop"() : () -> ()
    %cst_59 = arith.constant dense<0xFF800000> : vector<2x16xf32>
    %197 = vector.multi_reduction <maximumf>, %196, %cst_59 [2] : vector<2x16x16xf32> to vector<2x16xf32>
    %198 = vector.shape_cast %197 : vector<2x16xf32> to vector<2x16x1xf32>
    %199 = vector.broadcast %198 : vector<2x16x1xf32> to vector<2x16x16xf32>
    %200 = arith.subf %196, %199 : vector<2x16x16xf32>
    %201 = math.exp %200 : vector<2x16x16xf32>
    %cst_60 = arith.constant dense<0.000000e+00> : vector<2x16xf32>
    %202 = vector.multi_reduction <add>, %201, %cst_60 [2] : vector<2x16x16xf32> to vector<2x16xf32>
    %203 = vector.shape_cast %202 : vector<2x16xf32> to vector<2x16x1xf32>
    %204 = tpu.reciprocal %203 {approx = true} : vector<2x16x1xf32> -> vector<2x16x1xf32>
    %205 = vector.broadcast %204 : vector<2x16x1xf32> to vector<2x16x16xf32>
    %206 = arith.mulf %201, %205 : vector<2x16x16xf32>
    "tpu.trace_start"() <{level = 10 : i32, message = "bqk,bkd->bqd"}> : () -> ()
    %cst_61 = arith.constant dense<0.000000e+00> : vector<2x16x8xf32>
    %207 = tpu.matmul %206, %195, %cst_61 {dimension_numbers = #tpu.dot_dimension_numbers<[2], [1], [1], [2], [0, 0, 0, 1, 1, 2], [0], [0]>} : vector<2x16x16xf32>, vector<2x16x8xf32>, vector<2x16x8xf32> -> vector<2x16x8xf32>
    "tpu.trace_stop"() : () -> ()
    %208 = vector.extract_strided_slice %176 {offsets = [0, 0, 16], sizes = [2, 16, 8], strides = [1, 1, 1]} : vector<2x16x32xf32> to vector<2x16x8xf32>
    %209 = vector.extract_strided_slice %177 {offsets = [0, 0, 16], sizes = [2, 16, 8], strides = [1, 1, 1]} : vector<2x16x64xf32> to vector<2x16x8xf32>
    %210 = vector.extract_strided_slice %177 {offsets = [0, 0, 48], sizes = [2, 16, 8], strides = [1, 1, 1]} : vector<2x16x64xf32> to vector<2x16x8xf32>
    "tpu.trace_start"() <{level = 10 : i32, message = "bqd,bkd->bqk"}> : () -> ()
    %cst_62 = arith.constant dense<0.000000e+00> : vector<2x16x16xf32>
    %211 = tpu.matmul %208, %209, %cst_62 {dimension_numbers = #tpu.dot_dimension_numbers<[2], [2], [1], [1], [0, 0, 0, 1, 1, 1], [0], [0]>} : vector<2x16x8xf32>, vector<2x16x8xf32>, vector<2x16x16xf32> -> vector<2x16x16xf32>
    "tpu.trace_stop"() : () -> ()
    %cst_63 = arith.constant dense<0xFF800000> : vector<2x16xf32>
    %212 = vector.multi_reduction <maximumf>, %211, %cst_63 [2] : vector<2x16x16xf32> to vector<2x16xf32>
    %213 = vector.shape_cast %212 : vector<2x16xf32> to vector<2x16x1xf32>
    %214 = vector.broadcast %213 : vector<2x16x1xf32> to vector<2x16x16xf32>
    %215 = arith.subf %211, %214 : vector<2x16x16xf32>
    %216 = math.exp %215 : vector<2x16x16xf32>
    %cst_64 = arith.constant dense<0.000000e+00> : vector<2x16xf32>
    %217 = vector.multi_reduction <add>, %216, %cst_64 [2] : vector<2x16x16xf32> to vector<2x16xf32>
    %218 = vector.shape_cast %217 : vector<2x16xf32> to vector<2x16x1xf32>
    %219 = tpu.reciprocal %218 {approx = true} : vector<2x16x1xf32> -> vector<2x16x1xf32>
    %220 = vector.broadcast %219 : vector<2x16x1xf32> to vector<2x16x16xf32>
    %221 = arith.mulf %216, %220 : vector<2x16x16xf32>
    "tpu.trace_start"() <{level = 10 : i32, message = "bqk,bkd->bqd"}> : () -> ()
    %cst_65 = arith.constant dense<0.000000e+00> : vector<2x16x8xf32>
    %222 = tpu.matmul %221, %210, %cst_65 {dimension_numbers = #tpu.dot_dimension_numbers<[2], [1], [1], [2], [0, 0, 0, 1, 1, 2], [0], [0]>} : vector<2x16x16xf32>, vector<2x16x8xf32>, vector<2x16x8xf32> -> vector<2x16x8xf32>
    "tpu.trace_stop"() : () -> ()
    %223 = vector.extract_strided_slice %176 {offsets = [0, 0, 24], sizes = [2, 16, 8], strides = [1, 1, 1]} : vector<2x16x32xf32> to vector<2x16x8xf32>
    %224 = vector.extract_strided_slice %177 {offsets = [0, 0, 24], sizes = [2, 16, 8], strides = [1, 1, 1]} : vector<2x16x64xf32> to vector<2x16x8xf32>
    %225 = vector.extract_strided_slice %177 {offsets = [0, 0, 56], sizes = [2, 16, 8], strides = [1, 1, 1]} : vector<2x16x64xf32> to vector<2x16x8xf32>
    "tpu.trace_start"() <{level = 10 : i32, message = "bqd,bkd->bqk"}> : () -> ()
    %cst_66 = arith.constant dense<0.000000e+00> : vector<2x16x16xf32>
    %226 = tpu.matmul %223, %224, %cst_66 {dimension_numbers = #tpu.dot_dimension_numbers<[2], [2], [1], [1], [0, 0, 0, 1, 1, 1], [0], [0]>} : vector<2x16x8xf32>, vector<2x16x8xf32>, vector<2x16x16xf32> -> vector<2x16x16xf32>
    "tpu.trace_stop"() : () -> ()
    %cst_67 = arith.constant dense<0xFF800000> : vector<2x16xf32>
    %227 = vector.multi_reduction <maximumf>, %226, %cst_67 [2] : vector<2x16x16xf32> to vector<2x16xf32>
    %228 = vector.shape_cast %227 : vector<2x16xf32> to vector<2x16x1xf32>
    %229 = vector.broadcast %228 : vector<2x16x1xf32> to vector<2x16x16xf32>
    %230 = arith.subf %226, %229 : vector<2x16x16xf32>
    %231 = math.exp %230 : vector<2x16x16xf32>
    %cst_68 = arith.constant dense<0.000000e+00> : vector<2x16xf32>
    %232 = vector.multi_reduction <add>, %231, %cst_68 [2] : vector<2x16x16xf32> to vector<2x16xf32>
    %233 = vector.shape_cast %232 : vector<2x16xf32> to vector<2x16x1xf32>
    %234 = tpu.reciprocal %233 {approx = true} : vector<2x16x1xf32> -> vector<2x16x1xf32>
    %235 = vector.broadcast %234 : vector<2x16x1xf32> to vector<2x16x16xf32>
    %236 = arith.mulf %231, %235 : vector<2x16x16xf32>
    "tpu.trace_start"() <{level = 10 : i32, message = "bqk,bkd->bqd"}> : () -> ()
    %cst_69 = arith.constant dense<0.000000e+00> : vector<2x16x8xf32>
    %237 = tpu.matmul %236, %225, %cst_69 {dimension_numbers = #tpu.dot_dimension_numbers<[2], [1], [1], [2], [0, 0, 0, 1, 1, 2], [0], [0]>} : vector<2x16x16xf32>, vector<2x16x8xf32>, vector<2x16x8xf32> -> vector<2x16x8xf32>
    "tpu.trace_stop"() : () -> ()
    %238 = tpu.concatenate %192, %207, %222, %237 in 2 : vector<2x16x8xf32>, vector<2x16x8xf32>, vector<2x16x8xf32>, vector<2x16x8xf32> -> vector<2x16x32xf32>
    %239 = vector.shape_cast %238 : vector<2x16x32xf32> to vector<32x32xf32>
    %cst_70 = arith.constant dense<0.000000e+00> : vector<32x32xf32>
    %240 = tpu.matmul %239, %174, %cst_70 {dimension_numbers = #tpu.dot_dimension_numbers<[1], [0], [0], [1], [0, 0, 1, 1], [], []>} : vector<32x32xf32>, vector<32x32xf32>, vector<32x32xf32> -> vector<32x32xf32>
    %241 = vector.broadcast %175 : vector<1x32xf32> to vector<32x32xf32>
    %242 = arith.addf %240, %241 : vector<32x32xf32>
    %c3 = arith.constant 3 : index
    %c0_71 = arith.constant 0 : index
    %c0_72 = arith.constant 0 : index
    %243 = vector.load %arg3[%c3, %c0_71, %c0_72] : memref<5x32x128xf32, #tpu.memory_space<vmem>>, vector<1x32x128xf32>
    %244 = vector.shape_cast %243 : vector<1x32x128xf32> to vector<32x128xf32>
    %cst_73 = arith.constant dense<0.000000e+00> : vector<32x128xf32>
    %245 = tpu.matmul %242, %244, %cst_73 {dimension_numbers = #tpu.dot_dimension_numbers<[1], [0], [0], [1], [0, 0, 1, 1], [], []>} : vector<32x32xf32>, vector<32x128xf32>, vector<32x128xf32> -> vector<32x128xf32>
    %246 = vector.extract_strided_slice %5 {offsets = [3, 0], sizes = [1, 128], strides = [1, 1]} : vector<5x128xf32> to vector<1x128xf32>
    %247 = vector.broadcast %246 : vector<1x128xf32> to vector<32x128xf32>
    %248 = arith.addf %245, %247 : vector<32x128xf32>
    %cst_74 = arith.constant 0.000000e+00 : f32
    %249 = vector.broadcast %cst_74 : f32 to vector<32x128xf32>
    %250 = arith.maximumf %248, %249 : vector<32x128xf32>
    %c4 = arith.constant 4 : index
    %c0_75 = arith.constant 0 : index
    %c0_76 = arith.constant 0 : index
    %251 = vector.load %arg3[%c4, %c0_75, %c0_76] : memref<5x32x128xf32, #tpu.memory_space<vmem>>, vector<1x32x128xf32>
    %252 = vector.shape_cast %251 : vector<1x32x128xf32> to vector<32x128xf32>
    "tpu.trace_start"() <{level = 10 : i32, message = "nf,df->nd"}> : () -> ()
    %cst_77 = arith.constant dense<0.000000e+00> : vector<32x32xf32>
    %253 = tpu.matmul %250, %252, %cst_77 {dimension_numbers = #tpu.dot_dimension_numbers<[1], [1], [0], [0], [0, 0, 1, 0], [], []>} : vector<32x128xf32>, vector<32x128xf32>, vector<32x32xf32> -> vector<32x32xf32>
    "tpu.trace_stop"() : () -> ()
    %254 = vector.extract_strided_slice %5 {offsets = [4, 0], sizes = [1, 32], strides = [1, 1]} : vector<5x128xf32> to vector<1x32xf32>
    %255 = vector.broadcast %254 : vector<1x32xf32> to vector<32x32xf32>
    %256 = arith.addf %253, %255 : vector<32x32xf32>
    %c0_78 = arith.constant 0 : index
    %c0_79 = arith.constant 0 : index
    %257 = vector.load %arg5[%c0_78, %c0_79] : memref<32x32xf32, #tpu.memory_space<vmem>>, vector<32x32xf32>
    tpu.vector_store %arg5[%c0_78, %c0_79], %256 {strides = array<i32>} : memref<32x32xf32, #tpu.memory_space<vmem>>, vector<32x32xf32>,
    return
  }
}

</mosaic_0001>

<bundles_post_ra>
// kernel: nat_decoder_layer_forward.1
= control target key start
LH: loop header
LB: loop body
LE: loop exit
PB: predicated region body
PF: predicated region fallthrough
CT: control target
= control target key end

     0   :  { %10 = vsyncpa [#allocation3], 0  ;;  %s8254_s0 = inlined_call_operand.hbm [shape: f32[2,16,32], index: 0, kind: input, shape index: {}]   ;;  %s8255_s1 = inlined_call_operand.hbm [shape: f32[2,16,32], index: 1, kind: input, shape index: {}]   ;;  %s8256_s2 = inlined_call_operand.hbm [shape: f32[16,32], index: 2, kind: input, shape index: {}]   ;;  %s8257_s3 = inlined_call_operand.hbm [shape: f32[5,32,128], index: 3, kind: input, shape index: {}]   ;;  %s8258_s4 = inlined_call_operand.vmem [shape: f32[5,128], index: 4, kind: input, shape index: {}]   ;;  %s8259_s5 = inlined_call_operand.hbm [shape: f32[32,32], index: 5, kind: output, shape index: {}]  }
   0x1   :  { %11 = vsyncpa [#allocation6], 0 }
   0x2   :  { %12 = vsyncpa [#allocation9], 0 }
   0x3   :  { %13 = vsyncpa [#allocation4], 0  ;;  %s7293_s18 = smov [#allocation5]   ;;  %s7294_s20 = smov [#allocation2]  }
   0x4   :  { %s31_s19 = sshll.u32 %s7293_s18, 4  ;;  %s19_s21 = sshll.u32 %s7294_s20, 4  ;;  %s32_s19 = int_to_ptr.vmem [resolvable:$true] %s31_s19  ;;  %s7344_s21 = int_to_ptr.vmem [resolvable:$true] %s19_s21 }
   0x5   :  { %s7175_s24 = scalar_lea.hbm %s8255_s1, 512 }
   0x6   :  { %p7176_p0 = scmp.ne.s32.totalorder %s8255_s1, %s7175_s24  ;;  %p7179_p1 = scmp.lt.u32.totalorder %s7175_s24, %s8255_s1 }
   0x8   :  { %p7181_p2 = pnand %p7179_p1, %p7176_p0 }
   0xa   :  { %7184 = shalt.err (!%p7181_p2)
}
   0xb   :  { %s7185_s29 = scalar_lea.vmem %s32_s19, 512  ;;  %p7190_p4 = scmp.lt.s32.totalorder %s32_s19, %s32_s19 }
   0xc   :  { %p7186_p3 = scmp.ne.s32.totalorder %s32_s19, %s7185_s29  ;;  %p7191_p5 = scmp.lt.s32.totalorder %s7185_s29, %s7185_s29 }
   0xe   :  { %p7192_p6 = por %p7191_p5, %p7190_p4 }
  0x10   :  { %p7193_p7 = pnand %p7192_p6, %p7186_p3 }
  0x12   :  { %7196 = shalt.err (!%p7193_p7)
}
  0x13   :  { %s7295_s30 = smov 128   ;;  %s7296_s6 = smov 8  }
  0x14   :  { %37 = dma.hbm_to_vmem [thread:$0]  %s8255_s1, 512, %s32_s19, [#allocation6], %s7295_s30, %s7295_s30, %s7296_s6  }
  0x15   :  { %s7197_s11 = scalar_lea.hbm %s8254_s0, 512 }
  0x16   :  { %p7198_p8 = scmp.ne.s32.totalorder %s8254_s0, %s7197_s11  ;;  %p7201_p9 = scmp.lt.u32.totalorder %s7197_s11, %s8254_s0 }
  0x18   :  { %p7203_p10 = pnand %p7201_p9, %p7198_p8 }
  0x1a   :  { %7206 = shalt.err (!%p7203_p10)
}
  0x1b   :  { %s7207_s16 = scalar_lea.vmem %s7344_s21, 512  ;;  %p7212_p12 = scmp.lt.s32.totalorder %s7344_s21, %s7344_s21 }
  0x1c   :  { %p7208_p11 = scmp.ne.s32.totalorder %s7344_s21, %s7207_s16  ;;  %p7213_p13 = scmp.lt.s32.totalorder %s7207_s16, %s7207_s16 }
  0x1e   :  { %p7214_p0 = por %p7213_p13, %p7212_p12 }
  0x20   :  { %p7215_p1 = pnand %p7214_p0, %p7208_p11 }
  0x22   :  { %7218 = shalt.err (!%p7215_p1)
}
  0x23   :  { %25 = dma.hbm_to_vmem [thread:$0]  %s8254_s0, 512, %s7344_s21, [#allocation3], %s7295_s30, %s7295_s30, %s7296_s6  }
  0x24   :  { %s7297_s18 = smov [#allocation7]   ;;  %s7298_s20 = smov [#allocation8]  }
  0x25   :  { %s43_s19 = sshll.u32 %s7297_s18, 4  ;;  %s55_s22 = sshll.u32 %s7298_s20, 4  ;;  %s44_s19 = int_to_ptr.vmem [resolvable:$true] %s43_s19  ;;  %s7381_s22 = int_to_ptr.vmem [resolvable:$true] %s55_s22 }
  0x26   :  { %s7219_s25 = scalar_lea.hbm %s8256_s2, 256 }
  0x27   :  { %p7220_p2 = scmp.ne.s32.totalorder %s8256_s2, %s7219_s25  ;;  %p7223_p3 = scmp.lt.u32.totalorder %s7219_s25, %s8256_s2 }
  0x29   :  { %p7225_p4 = pnand %p7223_p3, %p7220_p2 }
  0x2b   :  { %7228 = shalt.err (!%p7225_p4)
}
  0x2c   :  { %s7229_s0 = scalar_lea.vmem %s44_s19, 256  ;;  %p7234_p6 = scmp.lt.s32.totalorder %s44_s19, %s44_s19 }
  0x2d   :  { %p7230_p5 = scmp.ne.s32.totalorder %s44_s19, %s7229_s0  ;;  %p7235_p7 = scmp.lt.s32.totalorder %s7229_s0, %s7229_s0 }
  0x2f   :  { %p7236_p8 = por %p7235_p7, %p7234_p6 }
  0x31   :  { %p7237_p9 = pnand %p7236_p8, %p7230_p5 }
  0x33   :  { %7240 = shalt.err (!%p7237_p9)
}
  0x34   :  { %49 = dma.hbm_to_vmem [thread:$0]  %s8256_s2, 256, %s44_s19, [#allocation6], %s7295_s30, %s7295_s30, %s7296_s6  }
  0x35   :  { %s7241_s10 = scalar_lea.hbm %s8257_s3, 2560 }
  0x36   :  { %p7242_p10 = scmp.ne.s32.totalorder %s8257_s3, %s7241_s10  ;;  %p7245_p11 = scmp.lt.u32.totalorder %s7241_s10, %s8257_s3 }
  0x38   :  { %p7247_p12 = pnand %p7245_p11, %p7242_p10 }
  0x3a   :  { %7250 = shalt.err (!%p7247_p12)
}
  0x3b   :  { %s7251_s15 = scalar_lea.vmem %s7381_s22, 2560  ;;  %p7256_p0 = scmp.lt.s32.totalorder %s7381_s22, %s7381_s22 }
  0x3c   :  { %p7252_p13 = scmp.ne.s32.totalorder %s7381_s22, %s7251_s15  ;;  %p7257_p1 = scmp.lt.s32.totalorder %s7251_s15, %s7251_s15 }
  0x3e   :  { %p7258_p2 = por %p7257_p1, %p7256_p0 }
  0x40   :  { %p7259_p3 = pnand %p7258_p2, %p7252_p13 }
  0x42   :  { %7262 = shalt.err (!%p7259_p3)
}
  0x43   :  { %61 = dma.hbm_to_vmem [thread:$0]  %s8257_s3, 2560, %s7381_s22, [#allocation9], %s7295_s30, %s7295_s30, %s7296_s6  }
  0x44   :  { %7285 = dma.done.wait [#allocation3], 512  }
  0x45   :  { %7286 = vsyncadd [#allocation3], 4294966784 }
  0x46   :  { %7287 = dma.done.wait [#allocation6], 768  }
  0x47   :  { %7288 = vsyncadd [#allocation6], 4294966528 }
  0x48   :  { %7289 = dma.done.wait [#allocation9], 2560  }
  0x49   :  { %7290 = vsyncadd [#allocation9], 4294964736  ;;  %vm95_vm0 = vcmask 261120   ;;  %v7418_v0 = vld [vmem:[#allocation8] sm:$0xff]  ;;  %v7420_v1 = vld [vmem:[#allocation8 + $0x8] sm:$0xff]  ;;  %v91_v11 = vlaneseq  ;;  %vm199_vm1 = vcmask 64512  }
  0x4a   :  { %v7422_v2 = vld [vmem:[#allocation8 + $0x10] sm:$0xff]  ;;  %v6826_v3 = vpack.i.bf16 %v7420_v1, %v7418_v0  ;;  %v6445_v4 = vpack.c.bf16 %v7420_v1, %v7418_v0  ;;  %v7428_v5 = vld [vmem:[#allocation8 + $0x18] sm:$0xff]  ;;  %v78_v9 = vld [vmem:[#allocation2 + $0x10] sm:$0xff]  ;;  %s7299_s17 = smov 96   ;;  %vm372_vm3 = vcmask 130048   ;;  %s7300_s18 = smov 64  }
  0x4b   :  { %v76_v6 = vld [vmem:[#allocation2] sm:$0xff]  ;;  %v6449_v7 = vpack.c.bf16 %v7428_v5, %v7422_v2  ;;  %v77_v8 = vld [vmem:[#allocation2 + $0x8] sm:$0xff]  ;;  %v79_v10 = vld [vmem:[#allocation2 + $0x18] sm:$0xff]  ;;  %v7436_v12 = vshrl.u32 %v91_v11, 7  ;;  %s7301_s19 = smov 88   ;;  %s7302_s20 = smov 120  }
  0x4c   :  { %6012 = vmatprep.mubr.msk.f32.mxu0 %vm95_vm0, %v76_v6  ;;  %6446 = vmatprep.subr.bf16.mxu0 %v6445_v4  ;;  %v86_v14 = vld [vmem:[%s8258_s4] sm:$0x1f]  ;;  %vm7472_vm2 = vmpackc.low %vm199_vm1, %vm199_vm1  ;;  %s7303_s22 = smov 56   ;;  %s7304_s23 = smov 80   ;;  %vm1847_vm4 = vcmask 195584  }
  0x4d   :  { %6448 = vmatpush3.bf16.msra.mxu0 %v6445_v4  ;;  %v93_v13 = vsub.s32 0, %v7436_v12  ;;  %s7305_s24 = smov 112   ;;  %s7306_s25 = smov 48  }
  0x4e   :  { %6450 = vmatprep.subr.bf16.mxu0 %v6449_v7  ;;  %s7307_s26 = smov 72   ;;  %s7308_s27 = smov 104  }
  0x4f   :  { %v7442_v15 = vrot.slane %v86_v14, %v93_v13  ;;  %s7309_s28 = smov 40   ;;  %s7310_s29 = smov 32  }
  0x50   :  { %s7311_s0 = smov 16   ;;  %s7312_s21 = smov 24  }
  0x51   :  { %6452 = vmatpush3.bf16.msra.mxu0 %v6449_v7 }
  0x54   :  { %6013 = vmatmul.mubr.msk.f32.vlgmr.msra.gmra.mrb[0].mxu0 %vm95_vm0, %v77_v8 }
  0x55   :  { %6015 = vmatprep.mubr.msk.f32.mxu0 %vm95_vm0, %v78_v9 }
  0x58   :  { %6016 = vmatmul.mubr.msk.f32.gmra.mrb[2].mxu0 %vm95_vm0, %v79_v10 }
 0x127   :  { %v6014_v16 = vpop.f32.mrb[0].mxu0 }
 0x128   :  { %v7445_v17 = vadd.f32 %v6014_v16, %v7442_v15  ;;  %v174_v18 = vpop.f32.mrb[1].mxu0 }
 0x129   :  { %v7448_v19 = vadd.f32 %v174_v18, %v7442_v15 }
 0x12b   :  { %6022 = vmatprep.mubr.msk.f32.mxu0 %vm199_vm1, %v7448_v19  ;;  %v7454_v20 = vpack.i.bf16 %v7445_v17, %v7448_v19  ;;  %v6017_v21 = vpop.f32.mrb[2].mxu0 }
 0x12c   :  { %v7457_v22 = vadd.f32 %v6017_v21, %v7442_v15  ;;  %v184_v23 = vpop.f32.mrb[3].mxu0 }
 0x12d   :  { %6747 = vrot.lane.b32.xlu0 %v7454_v20, %s7299_s17  ;;  %v7462_v24 = vadd.f32 %v184_v23, %v7442_v15 }
 0x12f   :  { %v7466_v25 = vpack.i.bf16 %v7457_v22, %v7462_v24 }
 0x131   :  { %6752 = vrot.lane.b32.xlu0 %v7466_v25, %s7299_s17 }
 0x19f   :  { %v6748_v26 = vpop.permute.xlu0 %6747 }
 0x1a0   :  { %v6750_v27 = vunpack.i.h.bf16 %v6748_v26  ;;  %v6749_v28 = vunpack.i.l.bf16 %v6748_v26 }
 0x1a2   :  { %v6453_v30 = vpack.c.bf16 %v6750_v27, %v6749_v28 }
 0x1a3   :  { %v6753_v31 = vpop.permute.xlu0 %6752 }
 0x1a4   :  { %6455 = vmatprep.subr.msk.bf16.mxu0 %vm7472_vm2, %v6453_v30  ;;  %v6755_v32 = vunpack.i.h.bf16 %v6753_v31  ;;  %v6754_v33 = vunpack.i.l.bf16 %v6753_v31 }
 0x1a5   :  { %6458 = vmatpush3.bf16.xpose.msk.msra.mxu0 %vm7472_vm2, %v6453_v30 }
 0x1a6   :  { %v6459_v34 = vpack.c.bf16 %v6755_v32, %v6754_v33 }
 0x1a8   :  { %6461 = vmatprep.subr.msk.bf16.mxu0 %vm7472_vm2, %v6459_v34 }
 0x1ac   :  { %6023 = vmatmul.mubr.msk.f32.vlgmr.msra.gmra.mrb[4].mxu0 %vm199_vm1, %v7445_v17 }
 0x1ad   :  { %6464 = vmatpush3.bf16.xpose.msk.msra.mxu0 %vm7472_vm2, %v6459_v34  ;;  %6029 = vmatprep.mubr.msk.f32.mxu0 %vm199_vm1, %v7462_v24 }
 0x1b4   :  { %6030 = vmatmul.mubr.msk.f32.vlgmr.msra.gmra.mrb[6].mxu0 %vm199_vm1, %v7457_v22 }
 0x27f   :  { %v6024_v35 = vpop.f32.mrb[4].mxu0 }
 0x280   :  { %v274_v36 = vpop.f32.mrb[5].mxu0  ;;  %v376_v38 = vsel %vm372_vm3, %v6024_v35, -inf }
 0x281   :  { %v373_v37 = vsel %vm372_vm3, %v274_v36, -inf }
 0x282   :  { %374 = vmax.xlane.f32.xlu1 %v373_v37 }
 0x286   :  { %377 = vmax.xlane.f32.xlu1 %v376_v38 }
 0x287   :  { %v6031_v39 = vpop.f32.mrb[6].mxu0 }
 0x288   :  { %v363_v40 = vpop.f32.mrb[7].mxu0  ;;  %v382_v41 = vsel %vm372_vm3, %v6031_v39, -inf }
 0x289   :  { %v379_v42 = vsel %vm372_vm3, %v363_v40, -inf }
 0x28a   :  { %383 = vmax.xlane.f32.xlu1 %v382_v41  ;;  %380 = vmax.xlane.f32.xlu0 %v379_v42 }
 0x29b   :  { %6757 = vrot.lane.b32.xlu1 %v7454_v20, %s7300_s18 }
 0x29f   :  { %6767 = vrot.lane.b32.xlu1 %v7454_v20, %s7301_s19 }
 0x2a0   :  { %6762 = vrot.lane.b32.xlu0 %v7466_v25, %s7300_s18 }
 0x2a3   :  { %6772 = vrot.lane.b32.xlu1 %v7466_v25, %s7301_s19 }
 0x2a4   :  { %682 = vrot.lane.b32.xlu0 %v7462_v24, %s7302_s20 }
 0x2a7   :  { %591 = vrot.lane.b32.xlu1 %v7448_v19, %s7302_s20 }
 0x2ab   :  { %593 = vrot.lane.b32.xlu1 %v7445_v17, %s7302_s20 }
 0x30f   :  { %v375_v43 = vpop.xlane.xlu1 %374 }
 0x310   :  { %v385_v44 = vsub.f32 %v274_v36, %v375_v43 }
 0x312   :  { %v389_v47 = vmul.f32 1.442695, %v385_v44 }
 0x313   :  { %v378_v45 = vpop.xlane.xlu1 %377 }
 0x314   :  { %v386_v46 = vsub.f32 %v6024_v35, %v378_v45 }
 0x316   :  { %v391_v48 = vmul.f32 1.442695, %v386_v46 }
 0x317   :  { %v384_v49 = vpop.xlane.xlu1 %383  ;;  %v381_v50 = vpop.xlane.xlu0 %380 }
 0x318   :  { %6981 = vpow2.f32 %v391_v48  ;;  %v388_v51 = vsub.f32 %v6031_v39, %v384_v49  ;;  %v387_v53 = vsub.f32 %v363_v40, %v381_v50 }
 0x319   :  { %6983 = vpow2.f32 %v389_v47 }
 0x31a   :  { %v395_v52 = vmul.f32 1.442695, %v388_v51  ;;  %v393_v60 = vmul.f32 1.442695, %v387_v53 }
 0x31b   :  { %v6758_v54 = vpop.permute.xlu1 %6757  ;;  %v6763_v55 = vpop.permute.xlu0 %6762 }
 0x31c   :  { %v6760_v56 = vunpack.i.h.bf16 %v6758_v54  ;;  %v6765_v57 = vunpack.i.h.bf16 %v6763_v55  ;;  %v6764_v58 = vunpack.i.l.bf16 %v6763_v55  ;;  %v6759_v59 = vunpack.i.l.bf16 %v6758_v54 }
 0x31d   :  { %6985 = vpow2.f32 %v395_v52 }
 0x31e   :  { %v6465_v62 = vpack.c.bf16 %v6760_v56, %v6759_v59  ;;  %v6469_v6 = vpack.c.bf16 %v6765_v57, %v6764_v58  ;;  %6987 = vpow2.f32 %v393_v60 }
 0x31f   :  { %v6768_v61 = vpop.permute.xlu1 %6767  ;;  %v683_v43 = vpop.permute.xlu0 %682 }
 0x320   :  { %v6770_v63 = vunpack.i.h.bf16 %v6768_v61  ;;  %v6769_v4 = vunpack.i.l.bf16 %v6768_v61  ;;  %6466 = vmatprep.subr.bf16.mxu1 %v6465_v62 }
 0x321   :  { %6468 = vmatpush3.bf16.msra.mxu1 %v6465_v62 }
 0x322   :  { %v6982_v7 = vpop.eup %6981  ;;  %v6473_v8 = vpack.c.bf16 %v6770_v63, %v6769_v4  ;;  %6470 = vmatprep.subr.bf16.mxu1 %v6469_v6 }
 0x323   :  { %v6773_v9 = vpop.permute.xlu1 %6772  ;;  %v400_v10 = vsel %vm372_vm3, %v6982_v7, 0.0  ;;  %v6984_v11 = vpop.eup %6983 }
 0x324   :  { %401 = vadd.xlane.f32.xlu1 %v400_v10  ;;  %6475 = vmatprep.subr.msk.bf16.mxu0 %vm7472_vm2, %v6473_v8  ;;  %v397_v14 = vsel %vm372_vm3, %v6984_v11, 0.0  ;;  %v6775_v34 = vunpack.i.h.bf16 %v6773_v9  ;;  %v6774_v35 = vunpack.i.l.bf16 %v6773_v9 }
 0x325   :  { %6478 = vmatpush3.bf16.xpose.msk.msra.mxu0 %vm7472_vm2, %v6473_v8 }
 0x326   :  { %v6479_v38 = vpack.c.bf16 %v6775_v34, %v6774_v35 }
 0x327   :  { %v592_v13 = vpop.permute.xlu1 %591  ;;  %v6986_v16 = vpop.eup %6985 }
 0x328   :  { %398 = vadd.xlane.f32.xlu1 %v397_v14  ;;  %6050 = vmatprep.mubr.msk.f32.mxu0 %vm199_vm1, %v592_v13  ;;  %v406_v21 = vsel %vm372_vm3, %v6986_v16, 0.0  ;;  %v6988_v23 = vpop.eup %6987 }
 0x329   :  { %v403_v26 = vsel %vm372_vm3, %v6988_v23, 0.0 }
 0x32b   :  { %v594_v18 = vpop.permute.xlu1 %593 }
 0x32c   :  { %407 = vadd.xlane.f32.xlu1 %v406_v21  ;;  %6051 = vmatmul.mubr.msk.f32.vlgmr.msra.gmra.mrb[8].mxu0 %vm199_vm1, %v594_v18 }
 0x330   :  { %404 = vadd.xlane.f32.xlu1 %v403_v26 }
 0x341   :  { %684 = vrot.lane.b32.xlu1 %v7457_v22, %s7302_s20 }
 0x3b1   :  { %v402_v27 = vpop.xlane.xlu1 %401 }
 0x3b2   :  { %6989 = vrcp.f32 %v402_v27 }
 0x3b5   :  { %v399_v28 = vpop.xlane.xlu1 %398 }
 0x3b6   :  { %6991 = vrcp.f32 %v399_v28 }
 0x3b9   :  { %v408_v30 = vpop.xlane.xlu1 %407 }
 0x3ba   :  { %6993 = vrcp.f32 %v408_v30 }
 0x3bc   :  { %v6990_v32 = vpop.eup %6989 }
 0x3bd   :  { %v405_v31 = vpop.xlane.xlu1 %404  ;;  %v414_v37 = vmul.f32 %v6990_v32, %v6982_v7 }
 0x3be   :  { %6995 = vrcp.f32 %v405_v31 }
 0x3c0   :  { %v6992_v33 = vpop.eup %6991 }
 0x3c1   :  { %v413_v36 = vmul.f32 %v6992_v33, %v6984_v11  ;;  %v685_v44 = vpop.permute.xlu1 %684 }
 0x3c3   :  { %6036 = vmatprep.mubr.msk.f32.mxu1 %vm372_vm3, %v413_v36 }
 0x3c4   :  { %6037 = vmatmul.mubr.msk.f32.vlgmr.msra.gmra.mrb[0].mxu1 %vm372_vm3, %v414_v37  ;;  %v6994_v39 = vpop.eup %6993 }
 0x3c5   :  { %6472 = vmatpush3.bf16.msra.mxu1 %v6469_v6  ;;  %v416_v42 = vmul.f32 %v6994_v39, %v6986_v16 }
 0x3c6   :  { %6481 = vmatprep.subr.msk.bf16.mxu1 %vm7472_vm2, %v6479_v38 }
 0x3c8   :  { %v6996_v40 = vpop.eup %6995 }
 0x3c9   :  { %v415_v41 = vmul.f32 %v6996_v40, %v6988_v23 }
 0x3cb   :  { %6043 = vmatprep.mubr.msk.f32.mxu1 %vm372_vm3, %v415_v41 }
 0x3cc   :  { %6044 = vmatmul.mubr.msk.f32.vlgmr.msra.gmra.mrb[2].mxu1 %vm372_vm3, %v416_v42 }
 0x3cd   :  { %6057 = vmatprep.mubr.msk.f32.mxu1 %vm199_vm1, %v683_v43 }
 0x3ce   :  { %6484 = vmatpush3.bf16.xpose.msk.msra.mxu1 %vm7472_vm2, %v6479_v38 }
 0x3d5   :  { %6058 = vmatmul.mubr.msk.f32.vlgmr.msra.gmra.mrb[4].mxu1 %vm199_vm1, %v685_v44 }
 0x3ff   :  { %v6052_v45 = vpop.f32.mrb[8].mxu0 }
 0x400   :  { %v673_v46 = vpop.f32.mrb[9].mxu0  ;;  %v776_v47 = vsel %vm372_vm3, %v6052_v45, -inf }
 0x401   :  { %777 = vmax.xlane.f32.xlu1 %v776_v47  ;;  %v773_v48 = vsel %vm372_vm3, %v673_v46, -inf }
 0x402   :  { %774 = vmax.xlane.f32.xlu0 %v773_v48 }
 0x48e   :  { %v778_v54 = vpop.xlane.xlu1 %777 }
 0x48f   :  { %v775_v49 = vpop.xlane.xlu0 %774  ;;  %v786_v55 = vsub.f32 %v6052_v45, %v778_v54 }
 0x490   :  { %v785_v50 = vsub.f32 %v673_v46, %v775_v49 }
 0x491   :  { %v791_v60 = vmul.f32 1.442695, %v786_v55 }
 0x492   :  { %v789_v51 = vmul.f32 1.442695, %v785_v50 }
 0x494   :  { %6997 = vpow2.f32 %v789_v51 }
 0x495   :  { %6999 = vpow2.f32 %v791_v60 }
 0x497   :  { %v7530_v52 = vpop.f32.mrb[0].mxu1 }
 0x498   :  { %v7532_v53 = vpop.f32.mrb[1].mxu1 }
 0x49e   :  { %v6998_v56 = vpop.eup %6997 }
 0x49f   :  { %v7534_v57 = vpop.f32.mrb[2].mxu1  ;;  %v797_v58 = vsel %vm372_vm3, %v6998_v56, 0.0  ;;  %v7000_v6 = vpop.eup %6999 }
 0x4a0   :  { %798 = vadd.xlane.f32.xlu1 %v797_v58  ;;  %v7537_v59 = vpop.f32.mrb[3].mxu1  ;;  %v800_v7 = vsel %vm372_vm3, %v7000_v6, 0.0 }
 0x4a8   :  { %v6059_v61 = vpop.f32.mrb[4].mxu1 }
 0x4a9   :  { %v764_v62 = vpop.f32.mrb[5].mxu1  ;;  %v782_v4 = vsel %vm372_vm3, %v6059_v61, -inf }
 0x4aa   :  { %v779_v63 = vsel %vm372_vm3, %v764_v62, -inf }
 0x4ab   :  { %780 = vmax.xlane.f32.xlu0 %v779_v63 }
 0x4af   :  { %783 = vmax.xlane.f32.xlu0 %v782_v4 }
 0x4b1   :  { %6777 = vrot.lane.b32.xlu1 %v7454_v20, %s7303_s22 }
 0x4b3   :  { %801 = vadd.xlane.f32.xlu0 %v800_v7 }
 0x4b5   :  { %6787 = vrot.lane.b32.xlu1 %v7454_v20, %s7304_s23 }
 0x4b9   :  { %6792 = vrot.lane.b32.xlu1 %v7466_v25, %s7304_s23 }
 0x4bd   :  { %993 = vrot.lane.b32.xlu1 %v7445_v17, %s7305_s24 }
 0x4c9   :  { %6782 = vrot.lane.b32.xlu0 %v7466_v25, %s7303_s22 }
 0x52d   :  { %v799_v8 = vpop.xlane.xlu1 %798 }
 0x52e   :  { %7001 = vrcp.f32 %v799_v8 }
 0x531   :  { %v6778_v9 = vpop.permute.xlu1 %6777 }
 0x532   :  { %v6780_v10 = vunpack.i.h.bf16 %v6778_v9  ;;  %v6779_v11 = vunpack.i.l.bf16 %v6778_v9 }
 0x534   :  { %v6485_v13 = vpack.c.bf16 %v6780_v10, %v6779_v11 }
 0x535   :  { %v6788_v14 = vpop.permute.xlu1 %6787 }
 0x536   :  { %v6790_v16 = vunpack.i.h.bf16 %v6788_v14  ;;  %v6789_v18 = vunpack.i.l.bf16 %v6788_v14  ;;  %6486 = vmatprep.subr.bf16.mxu0 %v6485_v13 }
 0x537   :  { %6488 = vmatpush3.bf16.msra.mxu0 %v6485_v13 }
 0x538   :  { %v7002_v21 = vpop.eup %7001  ;;  %v6493_v23 = vpack.c.bf16 %v6790_v16, %v6789_v18  ;;  %v781_v26 = vpop.xlane.xlu0 %780 }
 0x539   :  { %v787_v27 = vsub.f32 %v764_v62, %v781_v26  ;;  %v813_v28 = vmul.f32 %v7002_v21, %v6998_v56  ;;  %v6793_v35 = vpop.permute.xlu1 %6792 }
 0x53a   :  { %6495 = vmatprep.subr.msk.bf16.mxu0 %vm7472_vm2, %v6493_v23  ;;  %v6795_v37 = vunpack.i.h.bf16 %v6793_v35  ;;  %v6794_v38 = vunpack.i.l.bf16 %v6793_v35 }
 0x53b   :  { %v793_v30 = vmul.f32 1.442695, %v787_v27  ;;  %6064 = vmatprep.mubr.msk.f32.mxu0 %vm372_vm3, %v813_v28 }
 0x53c   :  { %v784_v31 = vpop.xlane.xlu0 %783  ;;  %v6499_v44 = vpack.c.bf16 %v6795_v37, %v6794_v38 }
 0x53d   :  { %7003 = vpow2.f32 %v793_v30  ;;  %v788_v32 = vsub.f32 %v6059_v61, %v784_v31  ;;  %v994_v49 = vpop.permute.xlu1 %993 }
 0x53f   :  { %v795_v33 = vmul.f32 1.442695, %v788_v32 }
 0x540   :  { %v802_v34 = vpop.xlane.xlu0 %801 }
 0x541   :  { %7005 = vpow2.f32 %v795_v33 }
 0x542   :  { %7007 = vrcp.f32 %v802_v34 }
 0x544   :  { %v6783_v36 = vpop.permute.xlu0 %6782 }
 0x545   :  { %v6785_v39 = vunpack.i.h.bf16 %v6783_v36  ;;  %v6784_v40 = vunpack.i.l.bf16 %v6783_v36 }
 0x547   :  { %v7004_v41 = vpop.eup %7003  ;;  %v6489_v42 = vpack.c.bf16 %v6785_v39, %v6784_v40 }
 0x548   :  { %v803_v43 = vsel %vm372_vm3, %v7004_v41, 0.0 }
 0x549   :  { %804 = vadd.xlane.f32.xlu1 %v803_v43  ;;  %6490 = vmatprep.subr.bf16.mxu1 %v6489_v42 }
 0x54a   :  { %6492 = vmatpush3.bf16.msra.mxu1 %v6489_v42 }
 0x54b   :  { %v7006_v45 = vpop.eup %7005  ;;  %6501 = vmatprep.subr.msk.bf16.mxu1 %vm7472_vm2, %v6499_v44 }
 0x54c   :  { %v7008_v46 = vpop.eup %7007  ;;  %v806_v47 = vsel %vm372_vm3, %v7006_v45, 0.0 }
 0x54d   :  { %807 = vadd.xlane.f32.xlu0 %v806_v47  ;;  %v814_v48 = vmul.f32 %v7008_v46, %v7000_v6 }
 0x54f   :  { %6065 = vmatmul.mubr.msk.f32.vlgmr.msra.gmra.mrb[10].mxu0 %vm372_vm3, %v814_v48 }
 0x550   :  { %6498 = vmatpush3.bf16.xpose.msk.msra.mxu0 %vm7472_vm2, %v6493_v23 }
 0x55a   :  { %1084 = vrot.lane.b32.xlu1 %v7457_v22, %s7305_s24 }
 0x563   :  { %991 = vrot.lane.b32.xlu0 %v7448_v19, %s7305_s24 }
 0x567   :  { %1082 = vrot.lane.b32.xlu0 %v7462_v24, %s7305_s24 }
 0x5d6   :  { %v805_v50 = vpop.xlane.xlu1 %804 }
 0x5d7   :  { %7009 = vrcp.f32 %v805_v50 }
 0x5da   :  { %v808_v51 = vpop.xlane.xlu0 %807  ;;  %v1085_v62 = vpop.permute.xlu1 %1084 }
 0x5db   :  { %7011 = vrcp.f32 %v808_v51 }
 0x5de   :  { %v992_v54 = vpop.permute.xlu0 %991 }
 0x5df   :  { %6078 = vmatprep.mubr.msk.f32.mxu0 %vm199_vm1, %v992_v54 }
 0x5e0   :  { %6079 = vmatmul.mubr.msk.f32.vlgmr.msra.gmra.mrb[12].mxu0 %vm199_vm1, %v994_v49 }
 0x5e1   :  { %v7010_v55 = vpop.eup %7009 }
 0x5e2   :  { %v815_v56 = vmul.f32 %v7010_v55, %v7004_v41  ;;  %v1083_v61 = vpop.permute.xlu0 %1082 }
 0x5e4   :  { %6071 = vmatprep.mubr.msk.f32.mxu1 %vm372_vm3, %v815_v56 }
 0x5e5   :  { %v7012_v58 = vpop.eup %7011 }
 0x5e6   :  { %v816_v60 = vmul.f32 %v7012_v58, %v7006_v45 }
 0x5e8   :  { %6072 = vmatmul.mubr.msk.f32.vlgmr.msra.gmra.mrb[6].mxu1 %vm372_vm3, %v816_v60 }
 0x5e9   :  { %6504 = vmatpush3.bf16.xpose.msk.msra.mxu1 %vm7472_vm2, %v6499_v44  ;;  %6085 = vmatprep.mubr.msk.f32.mxu1 %vm199_vm1, %v1083_v61 }
 0x5f0   :  { %6086 = vmatmul.mubr.msk.f32.vlgmr.msra.gmra.mrb[8].mxu1 %vm199_vm1, %v1085_v62 }
 0x622   :  { %v7574_v63 = vpop.f32.mrb[10].mxu0 }
 0x623   :  { %v7576_v4 = vpop.f32.mrb[11].mxu0 }
 0x6b3   :  { %v6080_v6 = vpop.f32.mrb[12].mxu0 }
 0x6b4   :  { %v1073_v7 = vpop.f32.mrb[13].mxu0  ;;  %v1176_v8 = vsel %vm372_vm3, %v6080_v6, -inf }
 0x6b5   :  { %1177 = vmax.xlane.f32.xlu1 %v1176_v8  ;;  %v1173_v9 = vsel %vm372_vm3, %v1073_v7, -inf }
 0x6b6   :  { %1174 = vmax.xlane.f32.xlu0 %v1173_v9 }
 0x6bb   :  { %v7580_v10 = vpop.f32.mrb[6].mxu1 }
 0x6bc   :  { %v7582_v11 = vpop.f32.mrb[7].mxu1 }
 0x6c3   :  { %v6087_v13 = vpop.f32.mrb[8].mxu1 }
 0x6c4   :  { %v1164_v14 = vpop.f32.mrb[9].mxu1  ;;  %v1182_v18 = vsel %vm372_vm3, %v6087_v13, -inf }
 0x6c5   :  { %v1179_v16 = vsel %vm372_vm3, %v1164_v14, -inf }
 0x6c6   :  { %1180 = vmax.xlane.f32.xlu0 %v1179_v16 }
 0x6ca   :  { %1183 = vmax.xlane.f32.xlu0 %v1182_v18 }
 0x742   :  { %v1178_v21 = vpop.xlane.xlu1 %1177 }
 0x743   :  { %v1186_v23 = vsub.f32 %v6080_v6, %v1178_v21  ;;  %v1175_v26 = vpop.xlane.xlu0 %1174 }
 0x744   :  { %v1185_v27 = vsub.f32 %v1073_v7, %v1175_v26 }
 0x745   :  { %v1191_v28 = vmul.f32 1.442695, %v1186_v23 }
 0x746   :  { %v1189_v30 = vmul.f32 1.442695, %v1185_v27 }
 0x747   :  { %7013 = vpow2.f32 %v1191_v28 }
 0x748   :  { %7015 = vpow2.f32 %v1189_v30 }
 0x751   :  { %v7014_v31 = vpop.eup %7013 }
 0x752   :  { %v7016_v32 = vpop.eup %7015  ;;  %v1200_v33 = vsel %vm372_vm3, %v7014_v31, 0.0 }
 0x753   :  { %1201 = vadd.xlane.f32.xlu0 %v1200_v33  ;;  %v1197_v34 = vsel %vm372_vm3, %v7016_v32, 0.0  ;;  %v1181_v35 = vpop.xlane.xlu0 %1180 }
 0x754   :  { %1198 = vadd.xlane.f32.xlu1 %v1197_v34  ;;  %v1187_v39 = vsub.f32 %v1164_v14, %v1181_v35 }
 0x756   :  { %v1193_v40 = vmul.f32 1.442695, %v1187_v39 }
 0x757   :  { %v1184_v36 = vpop.xlane.xlu0 %1183 }
 0x758   :  { %v1188_v37 = vsub.f32 %v6087_v13, %v1184_v36 }
 0x75a   :  { %v1195_v38 = vmul.f32 1.442695, %v1188_v37 }
 0x75c   :  { %7017 = vpow2.f32 %v1195_v38 }
 0x75d   :  { %7019 = vpow2.f32 %v1193_v40 }
 0x765   :  { %6797 = vrot.lane.b32.xlu1 %v7454_v20, %s7306_s25 }
 0x766   :  { %v7018_v41 = vpop.eup %7017 }
 0x767   :  { %v1206_v42 = vsel %vm372_vm3, %v7018_v41, 0.0  ;;  %v7020_v43 = vpop.eup %7019 }
 0x768   :  { %v1203_v44 = vsel %vm372_vm3, %v7020_v43, 0.0 }
 0x769   :  { %6807 = vrot.lane.b32.xlu1 %v7454_v20, %s7307_s26  ;;  %6802 = vrot.lane.b32.xlu0 %v7466_v25, %s7306_s25 }
 0x76d   :  { %6812 = vrot.lane.b32.xlu1 %v7466_v25, %s7307_s26 }
 0x771   :  { %1393 = vrot.lane.b32.xlu1 %v7445_v17, %s7308_s27 }
 0x788   :  { %1207 = vadd.xlane.f32.xlu0 %v1206_v42 }
 0x795   :  { %1204 = vadd.xlane.f32.xlu1 %v1203_v44 }
 0x79e   :  { %1391 = vrot.lane.b32.xlu0 %v7448_v19, %s7308_s27 }
 0x7a2   :  { %1482 = vrot.lane.b32.xlu0 %v7462_v24, %s7308_s27 }
 0x7a6   :  { %1484 = vrot.lane.b32.xlu1 %v7457_v22, %s7308_s27 }
 0x7e0   :  { %v1202_v17 = vpop.xlane.xlu0 %1201 }
 0x7e1   :  { %7021 = vrcp.f32 %v1202_v17  ;;  %v1199_v45 = vpop.xlane.xlu1 %1198 }
 0x7e2   :  { %7023 = vrcp.f32 %v1199_v45 }
 0x7e4   :  { %v6803_v46 = vpop.permute.xlu0 %6802 }
 0x7e5   :  { %v6805_v47 = vunpack.i.h.bf16 %v6803_v46  ;;  %v6804_v48 = vunpack.i.l.bf16 %v6803_v46  ;;  %v6798_v49 = vpop.permute.xlu1 %6797 }
 0x7e6   :  { %v6800_v50 = vunpack.i.h.bf16 %v6798_v49  ;;  %v6799_v51 = vunpack.i.l.bf16 %v6798_v49 }
 0x7e7   :  { %v6509_v54 = vpack.c.bf16 %v6805_v47, %v6804_v48 }
 0x7e8   :  { %v6505_v55 = vpack.c.bf16 %v6800_v50, %v6799_v51 }
 0x7e9   :  { %v6808_v56 = vpop.permute.xlu1 %6807  ;;  %6510 = vmatprep.subr.bf16.mxu1 %v6509_v54 }
 0x7ea   :  { %v6810_v19 = vunpack.i.h.bf16 %v6808_v56  ;;  %v6809_v58 = vunpack.i.l.bf16 %v6808_v56  ;;  %6506 = vmatprep.subr.bf16.mxu0 %v6505_v55  ;;  %6512 = vmatpush3.bf16.msra.mxu1 %v6509_v54 }
 0x7eb   :  { %v7022_v24 = vpop.eup %7021  ;;  %6508 = vmatpush3.bf16.msra.mxu0 %v6505_v55 }
 0x7ec   :  { %v7024_v22 = vpop.eup %7023  ;;  %v6513_v60 = vpack.c.bf16 %v6810_v19, %v6809_v58  ;;  %v1214_v8 = vmul.f32 %v7022_v24, %v7014_v31 }
 0x7ed   :  { %v6813_v61 = vpop.permute.xlu1 %6812  ;;  %v1213_v62 = vmul.f32 %v7024_v22, %v7016_v32 }
 0x7ee   :  { %v6815_v6 = vunpack.i.h.bf16 %v6813_v61  ;;  %v6814_v7 = vunpack.i.l.bf16 %v6813_v61  ;;  %6515 = vmatprep.subr.msk.bf16.mxu0 %vm7472_vm2, %v6513_v60 }
 0x7ef   :  { %6092 = vmatprep.mubr.msk.f32.mxu0 %vm372_vm3, %v1213_v62 }
 0x7f0   :  { %v6519_v9 = vpack.c.bf16 %v6815_v6, %v6814_v7  ;;  %6093 = vmatmul.mubr.msk.f32.vlgmr.msra.gmra.mrb[14].mxu0 %vm372_vm3, %v1214_v8  ;;  %v6831_v6 = vpack.i.bf16 %v7428_v5, %v7422_v2 }
 0x7f1   :  { %v1394_v16 = vpop.permute.xlu1 %1393 }
 0x7f2   :  { %6521 = vmatprep.subr.msk.bf16.mxu1 %vm7472_vm2, %v6519_v9 }
 0x7f4   :  { %6518 = vmatpush3.bf16.xpose.msk.msra.mxu0 %vm7472_vm2, %v6513_v60 }
 0x815   :  { %v1208_v13 = vpop.xlane.xlu0 %1207 }
 0x816   :  { %7025 = vrcp.f32 %v1208_v13 }
 0x819   :  { %v1392_v14 = vpop.permute.xlu0 %1391 }
 0x81a   :  { %6106 = vmatprep.mubr.msk.f32.mxu0 %vm199_vm1, %v1392_v14 }
 0x81b   :  { %6107 = vmatmul.mubr.msk.f32.vlgmr.msra.gmra.mrb[16].mxu0 %vm199_vm1, %v1394_v16 }
 0x81d   :  { %v1483_v28 = vpop.permute.xlu0 %1482 }
 0x820   :  { %v7026_v21 = vpop.eup %7025 }
 0x821   :  { %v1216_v27 = vmul.f32 %v7026_v21, %v7018_v41 }
 0x822   :  { %v1205_v18 = vpop.xlane.xlu1 %1204 }
 0x823   :  { %7027 = vrcp.f32 %v1205_v18 }
 0x826   :  { %v1485_v30 = vpop.permute.xlu1 %1484 }
 0x82d   :  { %v7028_v23 = vpop.eup %7027 }
 0x82e   :  { %v1215_v26 = vmul.f32 %v7028_v23, %v7020_v43 }
 0x830   :  { %6099 = vmatprep.mubr.msk.f32.mxu1 %vm372_vm3, %v1215_v26 }
 0x831   :  { %6100 = vmatmul.mubr.msk.f32.vlgmr.msra.gmra.mrb[10].mxu1 %vm372_vm3, %v1216_v27 }
 0x832   :  { %6524 = vmatpush3.bf16.xpose.msk.msra.mxu1 %vm7472_vm2, %v6519_v9  ;;  %6113 = vmatprep.mubr.msk.f32.mxu1 %vm199_vm1, %v1483_v28 }
 0x839   :  { %6114 = vmatmul.mubr.msk.f32.vlgmr.msra.gmra.mrb[12].mxu1 %vm199_vm1, %v1485_v30 }
 0x8c3   :  { %v6094_v31 = vpop.f32.mrb[14].mxu0 }
 0x8c4   :  { %v1295_v32 = vpop.f32.mrb[15].mxu0 }
 0x8ee   :  { %v6108_v33 = vpop.f32.mrb[16].mxu0 }
 0x8ef   :  { %v1473_v34 = vpop.f32.mrb[17].mxu0  ;;  %v1576_v35 = vsel %vm372_vm3, %v6108_v33, -inf }
 0x8f0   :  { %1577 = vmax.xlane.f32.xlu1 %v1576_v35  ;;  %v1573_v36 = vsel %vm372_vm3, %v1473_v34, -inf }
 0x8f1   :  { %1574 = vmax.xlane.f32.xlu0 %v1573_v36 }
 0x904   :  { %v7622_v37 = vpop.f32.mrb[10].mxu1 }
 0x905   :  { %v7624_v38 = vpop.f32.mrb[11].mxu1 }
 0x90c   :  { %v6115_v39 = vpop.f32.mrb[12].mxu1 }
 0x90d   :  { %v1564_v40 = vpop.f32.mrb[13].mxu1  ;;  %v1582_v42 = vsel %vm372_vm3, %v6115_v39, -inf }
 0x90e   :  { %v1579_v41 = vsel %vm372_vm3, %v1564_v40, -inf }
 0x90f   :  { %1580 = vmax.xlane.f32.xlu0 %v1579_v41 }
 0x913   :  { %1583 = vmax.xlane.f32.xlu0 %v1582_v42 }
 0x97d   :  { %v1578_v43 = vpop.xlane.xlu1 %1577 }
 0x97e   :  { %v1586_v44 = vsub.f32 %v6108_v33, %v1578_v43  ;;  %v1575_v17 = vpop.xlane.xlu0 %1574  ;;  %v1972_v43 = vld [vmem:[#allocation8 + $0x30] sm:$0xff] }
 0x97f   :  { %v1585_v45 = vsub.f32 %v1473_v34, %v1575_v17  ;;  %v1970_v17 = vld [vmem:[#allocation8 + $0x20] sm:$0xff] }
 0x980   :  { %v1591_v46 = vmul.f32 1.442695, %v1586_v44  ;;  %v1973_v44 = vld [vmem:[#allocation8 + $0x38] sm:$0xff] }
 0x981   :  { %v1589_v47 = vmul.f32 1.442695, %v1585_v45  ;;  %v1971_v45 = vld [vmem:[#allocation8 + $0x28] sm:$0xff] }
 0x982   :  { %7029 = vpow2.f32 %v1591_v46  ;;  %v7662_v46 = vpack.i.bf16 %v1973_v44, %v1972_v43 }
 0x983   :  { %7031 = vpow2.f32 %v1589_v47 }
 0x98c   :  { %v7030_v48 = vpop.eup %7029 }
 0x98d   :  { %v7032_v49 = vpop.eup %7031  ;;  %v1600_v50 = vsel %vm372_vm3, %v7030_v48, 0.0 }
 0x98e   :  { %1601 = vadd.xlane.f32.xlu0 %v1600_v50  ;;  %v1597_v51 = vsel %vm372_vm3, %v7032_v49, 0.0 }
 0x98f   :  { %1598 = vadd.xlane.f32.xlu1 %v1597_v51 }
 0x99c   :  { %v1581_v54 = vpop.xlane.xlu0 %1580 }
 0x99d   :  { %v1587_v55 = vsub.f32 %v1564_v40, %v1581_v54 }
 0x99f   :  { %v1593_v56 = vmul.f32 1.442695, %v1587_v55 }
 0x9a0   :  { %v1584_v19 = vpop.xlane.xlu0 %1583 }
 0x9a1   :  { %7033 = vpow2.f32 %v1593_v56  ;;  %v1588_v58 = vsub.f32 %v6115_v39, %v1584_v19 }
 0x9a3   :  { %v1595_v24 = vmul.f32 1.442695, %v1588_v58 }
 0x9a5   :  { %7035 = vpow2.f32 %v1595_v24 }
 0x9ab   :  { %v7034_v22 = vpop.eup %7033 }
 0x9ac   :  { %v1603_v60 = vsel %vm372_vm3, %v7034_v22, 0.0 }
 0x9ad   :  { %1604 = vadd.xlane.f32.xlu1 %v1603_v60 }
 0x9af   :  { %v7036_v61 = vpop.eup %7035 }
 0x9b0   :  { %v1606_v62 = vsel %vm372_vm3, %v7036_v61, 0.0 }
 0x9b1   :  { %1607 = vadd.xlane.f32.xlu0 %v1606_v62 }
 0x9be   :  { %6817 = vrot.lane.b32.xlu1 %v7454_v20, %s7309_s28 }
 0x9c2   :  { %6827 = vrot.lane.b32.xlu1 %v6826_v3, %s7310_s29 }
 0x9c6   :  { %6832 = vrot.lane.b32.xlu1 %v6831_v6, %s7310_s29 }
 0x9c7   :  { %6822 = vrot.lane.b32.xlu0 %v7466_v25, %s7309_s28 }
 0x9ca   :  { %1797 = vrot.lane.b32.xlu1 %v7574_v63, %s7296_s6 }
 0x9cb   :  { %1795 = vrot.lane.b32.xlu0 %v7576_v4, %s7296_s6 }
 0x9ce   :  { %1813 = vrot.lane.b32.xlu1 %v6094_v31, %s7311_s0 }
 0x9cf   :  { %1811 = vrot.lane.b32.xlu0 %v1295_v32, %s7311_s0 }
 0xa1b   :  { %v1602_v2 = vpop.xlane.xlu0 %1601 }
 0xa1c   :  { %v1599_v0 = vpop.xlane.xlu1 %1598 }
 0xa1d   :  { %7037 = vrcp.f32 %v1599_v0 }
 0xa1e   :  { %7039 = vrcp.f32 %v1602_v2 }
 0xa27   :  { %v7038_v1 = vpop.eup %7037 }
 0xa28   :  { %v1613_v3 = vmul.f32 %v7038_v1, %v7032_v49  ;;  %v7040_v8 = vpop.eup %7039 }
 0xa29   :  { %v1614_v18 = vmul.f32 %v7040_v8, %v7030_v48  ;;  %v85_v8 = vld [vmem:[#allocation7 + $0x8] sm:$0xff] }
 0xa2a   :  { %6120 = vmatprep.mubr.msk.f32.mxu0 %vm372_vm3, %v1613_v3  ;;  %v84_v3 = vld [vmem:[#allocation7] sm:$0xff] }
 0xa3a   :  { %v1605_v5 = vpop.xlane.xlu1 %1604 }
 0xa3b   :  { %7041 = vrcp.f32 %v1605_v5 }
 0xa3e   :  { %v6818_v20 = vpop.permute.xlu1 %6817  ;;  %v1608_v25 = vpop.xlane.xlu0 %1607 }
 0xa3f   :  { %v6820_v63 = vunpack.i.h.bf16 %v6818_v20  ;;  %v6819_v7 = vunpack.i.l.bf16 %v6818_v20  ;;  %7043 = vrcp.f32 %v1608_v25 }
 0xa41   :  { %v6525_v4 = vpack.c.bf16 %v6820_v63, %v6819_v7 }
 0xa42   :  { %v6823_v9 = vpop.permute.xlu0 %6822  ;;  %v6828_v28 = vpop.permute.xlu1 %6827 }
 0xa43   :  { %v6825_v13 = vunpack.i.h.bf16 %v6823_v9  ;;  %v6824_v14 = vunpack.i.l.bf16 %v6823_v9  ;;  %6526 = vmatprep.subr.bf16.mxu0 %v6525_v4  ;;  %v6830_v31 = vunpack.i.h.bf16 %v6828_v28  ;;  %v6829_v32 = vunpack.i.l.bf16 %v6828_v28 }
 0xa44   :  { %6528 = vmatpush3.bf16.msra.mxu0 %v6525_v4  ;;  %v6545_v9 = vpack.c.bf16 %v1973_v44, %v1972_v43 }
 0xa45   :  { %v7042_v16 = vpop.eup %7041  ;;  %v6529_v21 = vpack.c.bf16 %v6825_v13, %v6824_v14  ;;  %v6533_v35 = vpack.c.bf16 %v6830_v31, %v6829_v32  ;;  %v1976_v13 = vsub.s32 1, %v7436_v12  ;;  %v7699_v14 = vld [vmem:[%s8258_s4] sm:$0x1f] }
 0xa46   :  { %v1615_v23 = vmul.f32 %v7042_v16, %v7034_v22  ;;  %v6833_v30 = vpop.permute.xlu1 %6832 }
 0xa47   :  { %6121 = vmatmul.mubr.msk.f32.vlgmr.msra.gmra.mrb[18].mxu0 %vm372_vm3, %v1614_v18  ;;  %6530 = vmatprep.subr.bf16.mxu1 %v6529_v21  ;;  %v6835_v33 = vunpack.i.h.bf16 %v6833_v30  ;;  %v6834_v34 = vunpack.i.l.bf16 %v6833_v30  ;;  %v7702_v16 = vrot.slane %v7699_v14, %v1976_v13 }
 0xa48   :  { %6532 = vmatpush3.bf16.msra.mxu1 %v6529_v21  ;;  %6127 = vmatprep.mubr.msk.f32.mxu1 %vm372_vm3, %v1615_v23 }
 0xa49   :  { %v7044_v26 = vpop.eup %7043  ;;  %v6537_v36 = vpack.c.bf16 %v6835_v33, %v6834_v34  ;;  %6534 = vmatprep.subr.bf16.mxu0 %v6533_v35 }
 0xa4a   :  { %v1616_v27 = vmul.f32 %v7044_v26, %v7036_v61  ;;  %6536 = vmatpush3.bf16.msra.mxu0 %v6533_v35 }
 0xa4b   :  { %6538 = vmatprep.subr.bf16.mxu0 %v6537_v36 }
 0xa4c   :  { %6128 = vmatmul.mubr.msk.f32.vlgmr.msra.gmra.mrb[14].mxu1 %vm372_vm3, %v1616_v27 }
 0xa4e   :  { %6540 = vmatpush3.bf16.msra.mxu0 %v6537_v36 }
 0xb1a   :  { %v6122_v39 = vpop.f32.mrb[18].mxu0 }
 0xb1b   :  { %1829 = vrot.lane.b32.xlu1 %v6122_v39, %s7312_s21  ;;  %v1695_v40 = vpop.f32.mrb[19].mxu0 }
 0xb1c   :  { %1827 = vrot.lane.b32.xlu0 %v1695_v40, %s7312_s21 }
 0xb1f   :  { %1801 = vrot.lane.b32.xlu1 %v7580_v10, %s7296_s6  ;;  %v6129_v41 = vpop.f32.mrb[14].mxu1  ;;  %v7665_v10 = vpack.i.bf16 %v1971_v45, %v1970_v17 }
 0xb20   :  { %1799 = vrot.lane.b32.xlu0 %v7582_v11, %s7296_s6  ;;  %v1782_v42 = vpop.f32.mrb[15].mxu1  ;;  %v6541_v11 = vpack.c.bf16 %v1971_v45, %v1970_v17 }
 0xb22   :  { %6542 = vmatprep.subr.bf16.mxu1 %v6541_v11 }
 0xb23   :  { %1817 = vrot.lane.b32.xlu1 %v7622_v37, %s7311_s0  ;;  %6544 = vmatpush3.bf16.msra.mxu1 %v6541_v11  ;;  %v1798_v37 = vpop.permute.xlu1 %1797 }
 0xb24   :  { %1815 = vrot.lane.b32.xlu0 %v7624_v38, %s7311_s0  ;;  %v1796_v38 = vpop.permute.xlu0 %1795  ;;  %v1840_v51 = vsel %vm199_vm1, %v7530_v52, %v1798_v37  ;;  %6546 = vmatprep.subr.bf16.mxu1 %v6545_v9 }
 0xb25   :  { %v1839_v49 = vsel %vm199_vm1, %v7532_v53, %v1796_v38 }
 0xb27   :  { %1833 = vrot.lane.b32.xlu1 %v6129_v41, %s7312_s21  ;;  %v1814_v47 = vpop.permute.xlu1 %1813  ;;  %6548 = vmatpush3.bf16.msra.mxu1 %v6545_v9 }
 0xb28   :  { %1831 = vrot.lane.b32.xlu0 %v1782_v42, %s7312_s21  ;;  %v1812_v48 = vpop.permute.xlu0 %1811  ;;  %v1844_v56 = vsel %vm372_vm3, %v1840_v51, %v1814_v47 }
 0xb29   :  { %v1843_v54 = vsel %vm372_vm3, %v1839_v49, %v1812_v48 }
 0xb2b   :  { %6842 = vrot.lane.b32.xlu1 %v7662_v46, %s7299_s17 }
 0xb2c   :  { %6837 = vrot.lane.b32.xlu0 %v7665_v10, %s7299_s17 }
 0xb2f   :  { %2092 = vrot.lane.b32.xlu1 %v7702_v16, %s7299_s17 }
 0xb30   :  { %1869 = vrot.lane.b32.xlu0 %v7442_v15, %s7310_s29 }
 0xb8d   :  { %v1830_v50 = vpop.permute.xlu1 %1829 }
 0xb8e   :  { %v1828_v55 = vpop.permute.xlu0 %1827  ;;  %v1849_v15 = vsel %vm1847_vm4, %v1844_v56, %v1830_v50 }
 0xb8f   :  { %v1848_v19 = vsel %vm1847_vm4, %v1843_v54, %v1828_v55 }
 0xb90   :  { %6138 = vmatprep.mubr.msk.f32.mxu0 %vm95_vm0, %v1848_v19 }
 0xb91   :  { %v1802_v58 = vpop.permute.xlu1 %1801  ;;  %6139 = vmatmul.mubr.msk.f32.vlgmr.msra.gmra.mrb[20].mxu0 %vm95_vm0, %v1849_v15 }
 0xb92   :  { %v1800_v24 = vpop.permute.xlu0 %1799  ;;  %v1842_v61 = vsel %vm199_vm1, %v7534_v57, %v1802_v58 }
 0xb93   :  { %v1841_v52 = vsel %vm199_vm1, %v7537_v59, %v1800_v24 }
 0xb95   :  { %v1818_v53 = vpop.permute.xlu1 %1817 }
 0xb96   :  { %v1816_v22 = vpop.permute.xlu0 %1815  ;;  %v1846_v0 = vsel %vm372_vm3, %v1842_v61, %v1818_v53 }
 0xb97   :  { %v1845_v62 = vsel %vm372_vm3, %v1841_v52, %v1816_v22 }
 0xb99   :  { %v1834_v60 = vpop.permute.xlu1 %1833 }
 0xb9a   :  { %v1832_v6 = vpop.permute.xlu0 %1831  ;;  %v1851_v2 = vsel %vm1847_vm4, %v1846_v0, %v1834_v60 }
 0xb9b   :  { %v1850_v1 = vsel %vm1847_vm4, %v1845_v62, %v1832_v6 }
 0xb9c   :  { %6141 = vmatprep.mubr.msk.f32.mxu0 %vm95_vm0, %v1850_v1 }
 0xb9d   :  { %6142 = vmatmul.mubr.msk.f32.gmra.mrb[22].mxu0 %vm95_vm0, %v1851_v2  ;;  %v6843_v5 = vpop.permute.xlu1 %6842 }
 0xb9e   :  { %v6838_v59 = vpop.permute.xlu0 %6837  ;;  %v6845_v20 = vunpack.i.h.bf16 %v6843_v5  ;;  %v6844_v25 = vunpack.i.l.bf16 %v6843_v5  ;;  %6166 = vmatprep.mubr.msk.f32.mxu0 %vm95_vm0, %v84_v3 }
 0xb9f   :  { %v6840_v57 = vunpack.i.h.bf16 %v6838_v59  ;;  %v6839_v63 = vunpack.i.l.bf16 %v6838_v59 }
 0xba0   :  { %v6553_v4 = vpack.c.bf16 %v6845_v20, %v6844_v25 }
 0xba1   :  { %v6549_v7 = vpack.c.bf16 %v6840_v57, %v6839_v63  ;;  %v2093_v33 = vpop.permute.xlu1 %2092 }
 0xba2   :  { %v1870_v18 = vpop.permute.xlu0 %1869 }
 0xba3   :  { %6550 = vmatprep.subr.bf16.mxu0 %v6549_v7 }
 0xba4   :  { %6552 = vmatpush3.bf16.msra.mxu0 %v6549_v7 }
 0xba5   :  { %6554 = vmatprep.subr.bf16.mxu0 %v6553_v4 }
 0xba8   :  { %6556 = vmatpush3.bf16.msra.mxu0 %v6553_v4 }
 0xbab   :  { %6167 = vmatmul.mubr.msk.f32.vlgmr.msra.gmra.mrb[24].mxu0 %vm95_vm0, %v85_v8 }
 0xc64   :  { %v6140_v21 = vpop.f32.mrb[20].mxu0 }
 0xc65   :  { %v1950_v23 = vpop.f32.mrb[21].mxu0  ;;  %v1956_v27 = vadd.f32 %v6140_v21, %v1870_v18 }
 0xc66   :  { %v1951_v26 = vadd.f32 %v1950_v23, %v1870_v18 }
 0xc68   :  { %6152 = vmatprep.mubr.msk.f32.mxu1 %vm95_vm0, %v1951_v26 }
 0xc69   :  { %6153 = vmatmul.mubr.msk.f32.vlgmr.msra.gmra.mrb[16].mxu1 %vm95_vm0, %v1956_v27 }
 0xc70   :  { %v6143_v28 = vpop.f32.mrb[22].mxu0 }
 0xc71   :  { %v1960_v30 = vpop.f32.mrb[23].mxu0  ;;  %v1966_v32 = vadd.f32 %v6143_v28, %v1870_v18 }
 0xc72   :  { %v1961_v31 = vadd.f32 %v1960_v30, %v1870_v18 }
 0xc74   :  { %6155 = vmatprep.mubr.msk.f32.mxu1 %vm95_vm0, %v1961_v31 }
 0xc75   :  { %6156 = vmatmul.mubr.msk.f32.gmra.mrb[18].mxu1 %vm95_vm0, %v1966_v32 }
 0xc7e   :  { %v6168_v34 = vpop.f32.mrb[24].mxu0 }
 0xc7f   :  { %v2173_v35 = vadd.f32 %v6168_v34, %v2093_v33  ;;  %v2167_v36 = vpop.f32.mrb[25].mxu0 }
 0xc80   :  { %v2168_v39 = vadd.f32 %v2167_v36, %v2093_v33 }
 0xc82   :  { %v7710_v40 = vpack.i.bf16 %v2173_v35, %v2168_v39  ;;  %v6557_v41 = vpack.c.bf16 %v2173_v35, %v2168_v39 }
 0xc84   :  { %6847 = vrot.lane.b32.xlu0 %v7710_v40, %s7302_s20  ;;  %6559 = vmatprep.subr.msk.bf16.mxu1 %vm7472_vm2, %v6557_v41 }
 0xc85   :  { %6852 = vrot.lane.b32.xlu1 %v7710_v40, %s7305_s24  ;;  %6562 = vmatpush3.bf16.xpose.msk.msra.mxu1 %vm7472_vm2, %v6557_v41 }
 0xcf6   :  { %v6848_v42 = vpop.permute.xlu0 %6847 }
 0xcf7   :  { %v6850_v43 = vunpack.i.h.bf16 %v6848_v42  ;;  %v6849_v44 = vunpack.i.l.bf16 %v6848_v42  ;;  %v6853_v45 = vpop.permute.xlu1 %6852 }
 0xcf8   :  { %v6855_v11 = vunpack.i.h.bf16 %v6853_v45  ;;  %v6854_v37 = vunpack.i.l.bf16 %v6853_v45 }
 0xcf9   :  { %v6567_v17 = vpack.c.bf16 %v6850_v43, %v6849_v44 }
 0xcfa   :  { %v6577_v50 = vpack.c.bf16 %v6855_v11, %v6854_v37 }
 0xcfb   :  { %6569 = vmatprep.subr.msk.bf16.mxu1 %vm7472_vm2, %v6567_v17 }
 0xd3c   :  { %v6154_v38 = vpop.f32.mrb[16].mxu1 }
 0xd3d   :  { %v2062_v47 = vadd.f32 %v6154_v38, %v7702_v16  ;;  %v2056_v48 = vpop.f32.mrb[17].mxu1 }
 0xd3e   :  { %v2057_v49 = vadd.f32 %v2056_v48, %v7702_v16 }
 0xd3f   :  { %2428 = vrot.lane.b32.xlu1 %v2062_v47, %s7302_s20 }
 0xd40   :  { %6173 = vmatprep.mubr.msk.f32.mxu1 %vm199_vm1, %v2057_v49  ;;  %2426 = vrot.lane.b32.xlu0 %v2057_v49, %s7302_s20 }
 0xd41   :  { %6174 = vmatmul.mubr.msk.f32.vlgmr.msra.gmra.mrb[20].mxu1 %vm199_vm1, %v2062_v47 }
 0xd42   :  { %6572 = vmatpush3.bf16.xpose.msk.msra.mxu1 %vm7472_vm2, %v6567_v17 }
 0xd43   :  { %6579 = vmatprep.subr.msk.bf16.mxu1 %vm7472_vm2, %v6577_v50 }
 0xd48   :  { %v6157_v51 = vpop.f32.mrb[18].mxu1 }
 0xd49   :  { %v2072_v54 = vadd.f32 %v6157_v51, %v7702_v16  ;;  %v2066_v55 = vpop.f32.mrb[19].mxu1 }
 0xd4a   :  { %v2067_v56 = vadd.f32 %v2066_v55, %v7702_v16 }
 0xd4b   :  { %2432 = vrot.lane.b32.xlu1 %v2072_v54, %s7302_s20 }
 0xd4c   :  { %2430 = vrot.lane.b32.xlu0 %v2067_v56, %s7302_s20  ;;  %6176 = vmatprep.mubr.msk.f32.mxu1 %vm199_vm1, %v2067_v56 }
 0xd4d   :  { %6177 = vmatmul.mubr.msk.f32.gmra.mrb[22].mxu1 %vm199_vm1, %v2072_v54 }
 0xd4f   :  { %2682 = vrot.lane.b32.xlu1 %v2057_v49, %s7305_s24 }
 0xd50   :  { %6857 = vrot.lane.b32.xlu0 %v7710_v40, %s7308_s27 }
 0xd53   :  { %2686 = vrot.lane.b32.xlu1 %v2067_v56, %s7305_s24 }
 0xd54   :  { %2684 = vrot.lane.b32.xlu0 %v2062_v47, %s7305_s24 }
 0xd57   :  { %2938 = vrot.lane.b32.xlu1 %v2057_v49, %s7308_s27 }
 0xd58   :  { %2688 = vrot.lane.b32.xlu0 %v2072_v54, %s7305_s24 }
 0xd5b   :  { %2942 = vrot.lane.b32.xlu1 %v2067_v56, %s7308_s27 }
 0xd5c   :  { %2940 = vrot.lane.b32.xlu0 %v2062_v47, %s7308_s27 }
 0xd60   :  { %2944 = vrot.lane.b32.xlu0 %v2072_v54, %s7308_s27 }
 0xdb1   :  { %v2429_v15 = vpop.permute.xlu1 %2428 }
 0xdb2   :  { %v2427_v19 = vpop.permute.xlu0 %2426 }
 0xdb3   :  { %6193 = vmatprep.mubr.msk.f32.mxu1 %vm199_vm1, %v2427_v19 }
 0xdb4   :  { %6194 = vmatmul.mubr.msk.f32.vlgmr.msra.gmra.mrb[24].mxu1 %vm199_vm1, %v2429_v15 }
 0xdb5   :  { %6582 = vmatpush3.bf16.xpose.msk.msra.mxu1 %vm7472_vm2, %v6577_v50 }
 0xdbd   :  { %v2433_v58 = vpop.permute.xlu1 %2432 }
 0xdbe   :  { %v2431_v24 = vpop.permute.xlu0 %2430 }
 0xdbf   :  { %6196 = vmatprep.mubr.msk.f32.mxu1 %vm199_vm1, %v2431_v24 }
 0xdc0   :  { %6197 = vmatmul.mubr.msk.f32.gmra.mrb[26].mxu1 %vm199_vm1, %v2433_v58 }
 0xdc1   :  { %v2683_v53 = vpop.permute.xlu1 %2682 }
 0xdc2   :  { %v6858_v22 = vpop.permute.xlu0 %6857  ;;  %6213 = vmatprep.mubr.msk.f32.mxu1 %vm199_vm1, %v2683_v53 }
 0xdc3   :  { %v6860_v52 = vunpack.i.h.bf16 %v6858_v22  ;;  %v6859_v60 = vunpack.i.l.bf16 %v6858_v22 }
 0xdc5   :  { %v6587_v61 = vpack.c.bf16 %v6860_v52, %v6859_v60  ;;  %v2687_v62 = vpop.permute.xlu1 %2686 }
 0xdc6   :  { %v2685_v6 = vpop.permute.xlu0 %2684 }
 0xdc7   :  { %6214 = vmatmul.mubr.msk.f32.vlgmr.msra.gmra.mrb[28].mxu1 %vm199_vm1, %v2685_v6  ;;  %6589 = vmatprep.subr.msk.bf16.mxu1 %vm7472_vm2, %v6587_v61 }
 0xdc8   :  { %6216 = vmatprep.mubr.msk.f32.mxu1 %vm199_vm1, %v2687_v62  ;;  %6592 = vmatpush3.bf16.xpose.msk.msra.mxu1 %vm7472_vm2, %v6587_v61 }
 0xdc9   :  { %v2939_v0 = vpop.permute.xlu1 %2938 }
 0xdca   :  { %v2689_v1 = vpop.permute.xlu0 %2688 }
 0xdcb   :  { %6217 = vmatmul.mubr.msk.f32.gmra.mrb[30].mxu1 %vm199_vm1, %v2689_v1 }
 0xdcc   :  { %6233 = vmatprep.mubr.msk.f32.mxu1 %vm199_vm1, %v2939_v0 }
 0xdcd   :  { %v2943_v2 = vpop.permute.xlu1 %2942 }
 0xdce   :  { %v2941_v3 = vpop.permute.xlu0 %2940 }
 0xdcf   :  { %6234 = vmatmul.mubr.msk.f32.vlgmr.msra.gmra.mrb[32].mxu1 %vm199_vm1, %v2941_v3 }
 0xdd0   :  { %6236 = vmatprep.mubr.msk.f32.mxu1 %vm199_vm1, %v2943_v2 }
 0xdd2   :  { %v2945_v5 = vpop.permute.xlu0 %2944 }
 0xdd3   :  { %6237 = vmatmul.mubr.msk.f32.gmra.mrb[34].mxu1 %vm199_vm1, %v2945_v5 }
 0xe14   :  { %v6175_v59 = vpop.f32.mrb[20].mxu1 }
 0xe15   :  { %v2260_v20 = vpop.f32.mrb[21].mxu1  ;;  %v2282_v25 = vsel %vm372_vm3, %v6175_v59, -inf }
 0xe16   :  { %2283 = vmax.xlane.f32.xlu0 %v2282_v25  ;;  %v2279_v57 = vsel %vm372_vm3, %v2260_v20, -inf }
 0xe17   :  { %2280 = vmax.xlane.f32.xlu1 %v2279_v57 }
 0xe20   :  { %v7768_v63 = vpop.f32.mrb[22].mxu1 }
 0xe21   :  { %v7770_v7 = vpop.f32.mrb[23].mxu1  ;;  %v2288_v17 = vsel %vm372_vm3, %v7768_v63, -inf }
 0xe22   :  { %v2285_v45 = vsel %vm372_vm3, %v7770_v7, -inf }
 0xe87   :  { %v7772_v4 = vpop.f32.mrb[24].mxu1 }
 0xe88   :  { %v7774_v8 = vpop.f32.mrb[25].mxu1  ;;  %v2538_v11 = vsel %vm372_vm3, %v7772_v4, -inf }
 0xe89   :  { %v2535_v37 = vsel %vm372_vm3, %v7774_v8, -inf }
 0xe93   :  { %v7776_v9 = vpop.f32.mrb[26].mxu1 }
 0xe94   :  { %v7778_v13 = vpop.f32.mrb[27].mxu1  ;;  %v2544_v38 = vsel %vm372_vm3, %v7776_v9, -inf }
 0xe95   :  { %v2541_v47 = vsel %vm372_vm3, %v7778_v13, -inf }
 0xe9a   :  { %v7780_v18 = vpop.f32.mrb[28].mxu1 }
 0xe9b   :  { %v7782_v21 = vpop.f32.mrb[29].mxu1  ;;  %v2794_v48 = vsel %vm372_vm3, %v7780_v18, -inf }
 0xe9c   :  { %v2791_v49 = vsel %vm372_vm3, %v7782_v21, -inf }
 0xe9e   :  { %v7784_v23 = vpop.f32.mrb[30].mxu1 }
 0xe9f   :  { %v7786_v26 = vpop.f32.mrb[31].mxu1  ;;  %v2800_v50 = vsel %vm372_vm3, %v7784_v23, -inf }
 0xea0   :  { %v2797_v51 = vsel %vm372_vm3, %v7786_v26, -inf }
 0xea2   :  { %v7788_v27 = vpop.f32.mrb[32].mxu1 }
 0xea3   :  { %v2284_v28 = vpop.xlane.xlu0 %2283  ;;  %v7790_v30 = vpop.f32.mrb[33].mxu1  ;;  %v3050_v54 = vsel %vm372_vm3, %v7788_v27, -inf }
 0xea4   :  { %v2292_v31 = vsub.f32 %v6175_v59, %v2284_v28  ;;  %v2281_v32 = vpop.xlane.xlu1 %2280  ;;  %v3047_v55 = vsel %vm372_vm3, %v7790_v30, -inf }
 0xea5   :  { %v2291_v33 = vsub.f32 %v2260_v20, %v2281_v32 }
 0xea6   :  { %v2297_v34 = vmul.f32 1.442695, %v2292_v31  ;;  %v7792_v35 = vpop.f32.mrb[34].mxu1 }
 0xea7   :  { %v2295_v36 = vmul.f32 1.442695, %v2291_v33  ;;  %v7794_v39 = vpop.f32.mrb[35].mxu1  ;;  %v3056_v56 = vsel %vm372_vm3, %v7792_v35, -inf }
 0xea8   :  { %7045 = vpow2.f32 %v2297_v34  ;;  %v3053_v19 = vsel %vm372_vm3, %v7794_v39, -inf }
 0xea9   :  { %7047 = vpow2.f32 %v2295_v36 }
 0xeb2   :  { %v7796_v41 = vpop.eup %7045 }
 0xeb3   :  { %v7048_v42 = vpop.eup %7047  ;;  %v2306_v43 = vsel %vm372_vm3, %v7796_v41, 0.0 }
 0xeb4   :  { %2307 = vadd.xlane.f32.xlu1 %v2306_v43  ;;  %v2303_v44 = vsel %vm372_vm3, %v7048_v42, 0.0 }
 0xeb5   :  { %2304 = vadd.xlane.f32.xlu0 %v2303_v44 }
 0xeb8   :  { %2289 = vmax.xlane.f32.xlu1 %v2288_v17 }
 0xeb9   :  { %2286 = vmax.xlane.f32.xlu0 %v2285_v45 }
 0xebc   :  { %2539 = vmax.xlane.f32.xlu1 %v2538_v11 }
 0xebd   :  { %2536 = vmax.xlane.f32.xlu0 %v2535_v37 }
 0xec0   :  { %2545 = vmax.xlane.f32.xlu1 %v2544_v38 }
 0xec1   :  { %2542 = vmax.xlane.f32.xlu0 %v2541_v47 }
 0xec4   :  { %2795 = vmax.xlane.f32.xlu1 %v2794_v48 }
 0xec5   :  { %2792 = vmax.xlane.f32.xlu0 %v2791_v49 }
 0xec8   :  { %2801 = vmax.xlane.f32.xlu1 %v2800_v50 }
 0xec9   :  { %2798 = vmax.xlane.f32.xlu0 %v2797_v51 }
 0xecc   :  { %3051 = vmax.xlane.f32.xlu1 %v3050_v54 }
 0xecd   :  { %3048 = vmax.xlane.f32.xlu0 %v3047_v55 }
 0xed0   :  { %3057 = vmax.xlane.f32.xlu1 %v3056_v56 }
 0xed1   :  { %3054 = vmax.xlane.f32.xlu0 %v3053_v19 }
 0xee1   :  { %6867 = vrot.lane.b32.xlu1 %v7710_v40, %s7301_s19 }
 0xee7   :  { %6862 = vrot.lane.b32.xlu0 %v7710_v40, %s7299_s17 }
 0xf41   :  { %v2308_v15 = vpop.xlane.xlu1 %2307 }
 0xf42   :  { %v2305_v58 = vpop.xlane.xlu0 %2304 }
 0xf43   :  { %7049 = vrcp.f32 %v2305_v58 }
 0xf45   :  { %v2290_v24 = vpop.xlane.xlu1 %2289 }
 0xf46   :  { %v2294_v53 = vsub.f32 %v7768_v63, %v2290_v24  ;;  %v2287_v22 = vpop.xlane.xlu0 %2286 }
 0xf47   :  { %v2293_v52 = vsub.f32 %v7770_v7, %v2287_v22 }
 0xf48   :  { %v2301_v60 = vmul.f32 1.442695, %v2294_v53 }
 0xf49   :  { %v2299_v61 = vmul.f32 1.442695, %v2293_v52  ;;  %v2540_v62 = vpop.xlane.xlu1 %2539 }
 0xf4a   :  { %7051 = vpow2.f32 %v2301_v60  ;;  %v2548_v6 = vsub.f32 %v7772_v4, %v2540_v62  ;;  %v2537_v0 = vpop.xlane.xlu0 %2536 }
 0xf4b   :  { %7053 = vpow2.f32 %v2299_v61  ;;  %v2547_v1 = vsub.f32 %v7774_v8, %v2537_v0 }
 0xf4c   :  { %v2553_v3 = vmul.f32 1.442695, %v2548_v6 }
 0xf4d   :  { %v7050_v2 = vpop.eup %7049  ;;  %v2551_v5 = vmul.f32 1.442695, %v2547_v1  ;;  %v2546_v59 = vpop.xlane.xlu1 %2545 }
 0xf4e   :  { %7055 = vpow2.f32 %v2553_v3  ;;  %v2550_v20 = vsub.f32 %v7776_v9, %v2546_v59  ;;  %v2543_v25 = vpop.xlane.xlu0 %2542  ;;  %v2319_v57 = vmul.f32 %v7050_v2, %v7048_v42 }
 0xf4f   :  { %7057 = vpow2.f32 %v2551_v5  ;;  %v2549_v63 = vsub.f32 %v7778_v13, %v2543_v25 }
 0xf50   :  { %v2557_v7 = vmul.f32 1.442695, %v2550_v20  ;;  %6183 = vmatprep.mubr.msk.f32.mxu0 %vm372_vm3, %v2319_v57 }
 0xf51   :  { %v2555_v4 = vmul.f32 1.442695, %v2549_v63  ;;  %v2796_v28 = vpop.xlane.xlu1 %2795 }
 0xf52   :  { %7059 = vpow2.f32 %v2557_v7  ;;  %v2804_v8 = vsub.f32 %v7780_v18, %v2796_v28  ;;  %v2793_v31 = vpop.xlane.xlu0 %2792 }
 0xf53   :  { %7061 = vpow2.f32 %v2555_v4  ;;  %v2803_v32 = vsub.f32 %v7782_v21, %v2793_v31 }
 0xf54   :  { %v7842_v33 = vpop.eup %7051  ;;  %v2809_v9 = vmul.f32 1.442695, %v2804_v8 }
 0xf55   :  { %v7844_v34 = vpop.eup %7053  ;;  %v2807_v36 = vmul.f32 1.442695, %v2803_v32  ;;  %v2802_v42 = vpop.xlane.xlu1 %2801  ;;  %v2312_v13 = vsel %vm372_vm3, %v7842_v33, 0.0 }
 0xf56   :  { %7063 = vpow2.f32 %v2809_v9  ;;  %v2806_v43 = vsub.f32 %v7784_v23, %v2802_v42  ;;  %2313 = vadd.xlane.f32.xlu1 %v2312_v13  ;;  %v2799_v44 = vpop.xlane.xlu0 %2798  ;;  %v2309_v18 = vsel %vm372_vm3, %v7844_v34, 0.0 }
 0xf57   :  { %7065 = vpow2.f32 %v2807_v36  ;;  %v2805_v21 = vsub.f32 %v7786_v26, %v2799_v44  ;;  %2310 = vadd.xlane.f32.xlu0 %v2309_v18 }
 0xf58   :  { %v7852_v17 = vpop.eup %7055  ;;  %v2813_v45 = vmul.f32 1.442695, %v2806_v43 }
 0xf59   :  { %v7854_v11 = vpop.eup %7057  ;;  %v2811_v37 = vmul.f32 1.442695, %v2805_v21  ;;  %v3052_v38 = vpop.xlane.xlu1 %3051  ;;  %v2562_v47 = vsel %vm372_vm3, %v7852_v17, 0.0 }
 0xf5a   :  { %7067 = vpow2.f32 %v2813_v45  ;;  %v3060_v23 = vsub.f32 %v7788_v27, %v3052_v38  ;;  %2563 = vadd.xlane.f32.xlu1 %v2562_v47  ;;  %v3049_v48 = vpop.xlane.xlu0 %3048  ;;  %v2559_v49 = vsel %vm372_vm3, %v7854_v11, 0.0 }
 0xf5b   :  { %7069 = vpow2.f32 %v2811_v37  ;;  %v3059_v26 = vsub.f32 %v7790_v30, %v3049_v48  ;;  %2560 = vadd.xlane.f32.xlu0 %v2559_v49 }
 0xf5c   :  { %v7862_v50 = vpop.eup %7059  ;;  %7071 = vrcp.f32 %v2308_v15  ;;  %v3065_v51 = vmul.f32 1.442695, %v3060_v23 }
 0xf5d   :  { %v7864_v54 = vpop.eup %7061  ;;  %v3063_v55 = vmul.f32 1.442695, %v3059_v26  ;;  %v3058_v56 = vpop.xlane.xlu1 %3057  ;;  %v2568_v27 = vsel %vm372_vm3, %v7862_v50, 0.0 }
 0xf5e   :  { %7073 = vpow2.f32 %v3065_v51  ;;  %v3062_v19 = vsub.f32 %v7792_v35, %v3058_v56  ;;  %2569 = vadd.xlane.f32.xlu1 %v2568_v27  ;;  %v3055_v58 = vpop.xlane.xlu0 %3054  ;;  %v2565_v30 = vsel %vm372_vm3, %v7864_v54, 0.0 }
 0xf5f   :  { %v3061_v24 = vsub.f32 %v7794_v39, %v3055_v58  ;;  %2566 = vadd.xlane.f32.xlu0 %v2565_v30  ;;  %7075 = vpow2.f32 %v3063_v55 }
 0xf60   :  { %v7872_v15 = vpop.eup %7063  ;;  %v3069_v53 = vmul.f32 1.442695, %v3062_v19 }
 0xf61   :  { %v7874_v22 = vpop.eup %7065  ;;  %v3067_v52 = vmul.f32 1.442695, %v3061_v24  ;;  %v6868_v60 = vpop.permute.xlu1 %6867  ;;  %v2818_v61 = vsel %vm372_vm3, %v7872_v15, 0.0 }
 0xf62   :  { %v6870_v35 = vunpack.i.h.bf16 %v6868_v60  ;;  %2819 = vadd.xlane.f32.xlu1 %v2818_v61  ;;  %v6863_v62 = vpop.permute.xlu0 %6862  ;;  %v2815_v6 = vsel %vm372_vm3, %v7874_v22, 0.0  ;;  %v6869_v39 = vunpack.i.l.bf16 %v6868_v60 }
 0xf63   :  { %7077 = vpow2.f32 %v3067_v52  ;;  %v6865_v0 = vunpack.i.h.bf16 %v6863_v62  ;;  %v6864_v1 = vunpack.i.l.bf16 %v6863_v62  ;;  %2816 = vadd.xlane.f32.xlu0 %v2815_v6 }
 0xf64   :  { %v7880_v3 = vpop.eup %7067  ;;  %7079 = vpow2.f32 %v3069_v53  ;;  %v6573_v57 = vpack.c.bf16 %v6870_v35, %v6869_v39 }
 0xf65   :  { %v7882_v2 = vpop.eup %7069  ;;  %v2824_v5 = vsel %vm372_vm3, %v7880_v3, 0.0  ;;  %v6563_v59 = vpack.c.bf16 %v6865_v0, %v6864_v1 }
 0xf66   :  { %v7072_v20 = vpop.eup %7071  ;;  %2825 = vadd.xlane.f32.xlu1 %v2824_v5  ;;  %v2821_v25 = vsel %vm372_vm3, %v7882_v2, 0.0 }
 0xf67   :  { %2822 = vadd.xlane.f32.xlu0 %v2821_v25  ;;  %6564 = vmatprep.subr.bf16.mxu0 %v6563_v59  ;;  %v2320_v4 = vmul.f32 %v7072_v20, %v7796_v41 }
 0xf68   :  { %v7888_v63 = vpop.eup %7073  ;;  %6566 = vmatpush3.bf16.msra.mxu0 %v6563_v59 }
 0xf69   :  { %6574 = vmatprep.subr.bf16.mxu0 %v6573_v57  ;;  %v3074_v7 = vsel %vm372_vm3, %v7888_v63, 0.0  ;;  %v7893_v28 = vpop.eup %7075 }
 0xf6a   :  { %3075 = vadd.xlane.f32.xlu1 %v3074_v7  ;;  %v3071_v31 = vsel %vm372_vm3, %v7893_v28, 0.0 }
 0xf6b   :  { %6184 = vmatmul.mubr.msk.f32.vlgmr.msra.gmra.mrb[26].mxu0 %vm372_vm3, %v2320_v4 }
 0xf6c   :  { %6576 = vmatpush3.bf16.msra.mxu0 %v6573_v57 }
 0xf6d   :  { %v7896_v8 = vpop.eup %7077 }
 0xf6e   :  { %v7900_v32 = vpop.eup %7079  ;;  %3072 = vadd.xlane.f32.xlu1 %v3071_v31  ;;  %v3077_v9 = vsel %vm372_vm3, %v7896_v8, 0.0 }
 0xf6f   :  { %3078 = vadd.xlane.f32.xlu0 %v3077_v9  ;;  %v3080_v41 = vsel %vm372_vm3, %v7900_v32, 0.0 }
 0xf72   :  { %3081 = vadd.xlane.f32.xlu1 %v3080_v41 }
 0xf83   :  { %6877 = vrot.lane.b32.xlu1 %v7710_v40, %s7307_s26 }
 0xf85   :  { %6872 = vrot.lane.b32.xlu0 %v7710_v40, %s7304_s23 }
 0xf89   :  { %6882 = vrot.lane.b32.xlu0 %v7665_v10, %s7310_s29 }
 0xf8d   :  { %6887 = vrot.lane.b32.xlu0 %v7662_v46, %s7310_s29 }
 0xfe3   :  { %v2314_v36 = vpop.xlane.xlu1 %2313 }
 0xfe4   :  { %7081 = vrcp.f32 %v2314_v36  ;;  %v2311_v42 = vpop.xlane.xlu0 %2310 }
 0xfe5   :  { %7083 = vrcp.f32 %v2311_v42 }
 0xfe7   :  { %v2564_v13 = vpop.xlane.xlu1 %2563 }
 0xfe8   :  { %7085 = vrcp.f32 %v2564_v13  ;;  %v2561_v43 = vpop.xlane.xlu0 %2560 }
 0xfe9   :  { %7087 = vrcp.f32 %v2561_v43 }
 0xfeb   :  { %v2570_v44 = vpop.xlane.xlu1 %2569 }
 0xfec   :  { %7089 = vrcp.f32 %v2570_v44  ;;  %v2567_v18 = vpop.xlane.xlu0 %2566 }
 0xfed   :  { %7091 = vrcp.f32 %v2567_v18 }
 0xfee   :  { %v7082_v21 = vpop.eup %7081 }
 0xfef   :  { %v7084_v45 = vpop.eup %7083  ;;  %v2820_v37 = vpop.xlane.xlu1 %2819  ;;  %v2322_v10 = vmul.f32 %v7082_v21, %v7842_v33 }
 0xff0   :  { %v2817_v38 = vpop.xlane.xlu0 %2816  ;;  %v2321_v40 = vmul.f32 %v7084_v45, %v7844_v34 }
 0xff1   :  { %7093 = vrcp.f32 %v2817_v38 }
 0xff2   :  { %v7086_v47 = vpop.eup %7085  ;;  %6186 = vmatprep.mubr.msk.f32.mxu0 %vm372_vm3, %v2321_v40  ;;  %7095 = vrcp.f32 %v2820_v37 }
 0xff3   :  { %v7088_v23 = vpop.eup %7087  ;;  %v2826_v48 = vpop.xlane.xlu1 %2825  ;;  %6187 = vmatmul.mubr.msk.f32.gmra.mrb[28].mxu0 %vm372_vm3, %v2322_v10  ;;  %v2576_v26 = vmul.f32 %v7086_v47, %v7852_v17 }
 0xff4   :  { %v2575_v49 = vmul.f32 %v7088_v23, %v7854_v11  ;;  %v2823_v34 = vpop.xlane.xlu0 %2822 }
 0xff5   :  { %7097 = vrcp.f32 %v2823_v34 }
 0xff6   :  { %v7090_v51 = vpop.eup %7089  ;;  %6203 = vmatprep.mubr.msk.f32.mxu0 %vm372_vm3, %v2575_v49  ;;  %7099 = vrcp.f32 %v2826_v48  ;;  %v3369_v48 = vld [vmem:[#allocation8 + $0x50] sm:$0xff]  ;;  %v3370_v49 = vld [vmem:[#allocation8 + $0x58] sm:$0xff] }
 0xff7   :  { %v7092_v55 = vpop.eup %7091  ;;  %v3076_v56 = vpop.xlane.xlu1 %3075  ;;  %6204 = vmatmul.mubr.msk.f32.vlgmr.msra.gmra.mrb[30].mxu0 %vm372_vm3, %v2576_v26  ;;  %v2578_v27 = vmul.f32 %v7090_v51, %v7862_v50  ;;  %v3367_v26 = vld [vmem:[#allocation8 + $0x40] sm:$0xff]  ;;  %v3368_v51 = vld [vmem:[#allocation8 + $0x48] sm:$0xff] }
 0xff8   :  { %v2577_v33 = vmul.f32 %v7092_v55, %v7864_v54  ;;  %v7953_v55 = vpack.i.bf16 %v3370_v49, %v3369_v48  ;;  %v6605_v34 = vpack.c.bf16 %v3368_v51, %v3367_v26 }
 0xffa   :  { %6206 = vmatprep.mubr.msk.f32.mxu0 %vm372_vm3, %v2577_v33 }
 0xffb   :  { %v7094_v19 = vpop.eup %7093  ;;  %v3073_v11 = vpop.xlane.xlu1 %3072  ;;  %6207 = vmatmul.mubr.msk.f32.gmra.mrb[32].mxu0 %vm372_vm3, %v2578_v27 }
 0xffc   :  { %v3079_v17 = vpop.xlane.xlu0 %3078  ;;  %v2831_v58 = vmul.f32 %v7094_v19, %v7874_v22  ;;  %7101 = vrcp.f32 %v3073_v11  ;;  %v7096_v60 = vpop.eup %7095 }
 0xffd   :  { %7103 = vrcp.f32 %v3076_v56  ;;  %v2832_v22 = vmul.f32 %v7096_v60, %v7872_v15  ;;  %v7956_v56 = vpack.i.bf16 %v3368_v51, %v3367_v26 }
 0xffe   :  { %6223 = vmatprep.mubr.msk.f32.mxu0 %vm372_vm3, %v2831_v58  ;;  %7105 = vrcp.f32 %v3079_v17 }
 0xfff   :  { %v3082_v30 = vpop.xlane.xlu1 %3081  ;;  %v7098_v62 = vpop.eup %7097 }
0x1000   :  { %v6873_v24 = vpop.permute.xlu0 %6872  ;;  %7107 = vrcp.f32 %v3082_v30  ;;  %v7100_v39 = vpop.eup %7099  ;;  %v2833_v0 = vmul.f32 %v7098_v62, %v7882_v2 }
0x1001   :  { %v6875_v54 = vunpack.i.h.bf16 %v6873_v24  ;;  %v6874_v53 = vunpack.i.l.bf16 %v6873_v24  ;;  %v2834_v5 = vmul.f32 %v7100_v39, %v7880_v3 }
0x1003   :  { %v6583_v50 = vpack.c.bf16 %v6875_v54, %v6874_v53  ;;  %v6878_v52 = vpop.permute.xlu1 %6877 }
0x1004   :  { %v6880_v61 = vunpack.i.h.bf16 %v6878_v52  ;;  %v6879_v35 = vunpack.i.l.bf16 %v6878_v52 }
0x1005   :  { %6584 = vmatprep.subr.bf16.mxu0 %v6583_v50 }
0x1006   :  { %v6593_v6 = vpack.c.bf16 %v6880_v61, %v6879_v35  ;;  %6586 = vmatpush3.bf16.msra.mxu0 %v6583_v50  ;;  %v7102_v1 = vpop.eup %7101 }
0x1007   :  { %v7104_v59 = vpop.eup %7103  ;;  %v3087_v20 = vmul.f32 %v7102_v1, %v7893_v28  ;;  %v6883_v28 = vpop.permute.xlu0 %6882 }
0x1008   :  { %6594 = vmatprep.subr.bf16.mxu0 %v6593_v6  ;;  %v7106_v25 = vpop.eup %7105  ;;  %v3088_v15 = vmul.f32 %v7104_v59, %v7888_v63  ;;  %v6885_v31 = vunpack.i.h.bf16 %v6883_v28  ;;  %v6884_v9 = vunpack.i.l.bf16 %v6883_v28  ;;  %v80_v59 = vld [vmem:[#allocation5] sm:$0xff] }
0x1009   :  { %6224 = vmatmul.mubr.msk.f32.vlgmr.msra.gmra.mrb[34].mxu0 %vm372_vm3, %v2832_v22  ;;  %v3089_v2 = vmul.f32 %v7106_v25, %v7896_v8 }
0x100a   :  { %6226 = vmatprep.mubr.msk.f32.mxu0 %vm372_vm3, %v2833_v0  ;;  %6596 = vmatpush3.bf16.msra.mxu0 %v6593_v6  ;;  %v7108_v57 = vpop.eup %7107  ;;  %v6597_v63 = vpack.c.bf16 %v6885_v31, %v6884_v9  ;;  %v81_v31 = vld [vmem:[#allocation5 + $0x8] sm:$0xff]  ;;  %v82_v9 = vld [vmem:[#allocation5 + $0x10] sm:$0xff] }
0x100b   :  { %v3090_v7 = vmul.f32 %v7108_v57, %v7900_v32  ;;  %v6888_v8 = vpop.permute.xlu0 %6887  ;;  %6606 = vmatprep.subr.bf16.mxu0 %v6605_v34 }
0x100c   :  { %6598 = vmatprep.subr.bf16.mxu1 %v6597_v63  ;;  %v6890_v41 = vunpack.i.h.bf16 %v6888_v8  ;;  %v6889_v36 = vunpack.i.l.bf16 %v6888_v8  ;;  %v6609_v8 = vpack.c.bf16 %v3370_v49, %v3369_v48 }
0x100d   :  { %6227 = vmatmul.mubr.msk.f32.gmra.mrb[36].mxu0 %vm372_vm3, %v2834_v5  ;;  %6600 = vmatpush3.bf16.msra.mxu1 %v6597_v63  ;;  %v83_v63 = vld [vmem:[#allocation5 + $0x18] sm:$0xff] }
0x100e   :  { %6243 = vmatprep.mubr.msk.f32.mxu0 %vm372_vm3, %v3087_v20  ;;  %v6601_v42 = vpack.c.bf16 %v6890_v41, %v6889_v36  ;;  %v3373_v41 = vsub.s32 2, %v7436_v12 }
0x1010   :  { %6602 = vmatprep.subr.bf16.mxu1 %v6601_v42  ;;  %v7986_v36 = vrot.slane %v7699_v14, %v3373_v41 }
0x1011   :  { %6244 = vmatmul.mubr.msk.f32.vlgmr.msra.gmra.mrb[38].mxu0 %vm372_vm3, %v3088_v15  ;;  %6604 = vmatpush3.bf16.msra.mxu1 %v6601_v42 }
0x1012   :  { %6246 = vmatprep.mubr.msk.f32.mxu0 %vm372_vm3, %v3089_v2  ;;  %6608 = vmatpush3.bf16.msra.mxu0 %v6605_v34 }
0x1013   :  { %6610 = vmatprep.subr.bf16.mxu0 %v6609_v8 }
0x1015   :  { %6247 = vmatmul.mubr.msk.f32.gmra.mrb[40].mxu0 %vm372_vm3, %v3090_v7 }
0x1016   :  { %6612 = vmatpush3.bf16.msra.mxu0 %v6609_v8 }
0x103e   :  { %v6185_v3 = vpop.f32.mrb[26].mxu0 }
0x103f   :  { %v2407_v4 = vpop.f32.mrb[27].mxu0 }
0x10c6   :  { %v6188_v32 = vpop.f32.mrb[28].mxu0 }
0x10c7   :  { %v2417_v13 = vpop.f32.mrb[29].mxu0 }
0x10ca   :  { %v6205_v43 = vpop.f32.mrb[30].mxu0 }
0x10cb   :  { %3200 = vrot.lane.b32.xlu0 %v6205_v43, %s7296_s6  ;;  %v2663_v44 = vpop.f32.mrb[31].mxu0 }
0x10cc   :  { %3198 = vrot.lane.b32.xlu1 %v2663_v44, %s7296_s6 }
0x10ce   :  { %v6208_v46 = vpop.f32.mrb[32].mxu0 }
0x10cf   :  { %v2673_v18 = vpop.f32.mrb[33].mxu0 }
0x10dc   :  { %v6225_v21 = vpop.f32.mrb[34].mxu0 }
0x10dd   :  { %3216 = vrot.lane.b32.xlu0 %v6225_v21, %s7311_s0  ;;  %v2919_v45 = vpop.f32.mrb[35].mxu0 }
0x10de   :  { %3214 = vrot.lane.b32.xlu1 %v2919_v45, %s7311_s0 }
0x10e0   :  { %v6228_v37 = vpop.f32.mrb[36].mxu0 }
0x10e1   :  { %v2929_v38 = vpop.f32.mrb[37].mxu0 }
0x10e4   :  { %v6245_v40 = vpop.f32.mrb[38].mxu0 }
0x10e5   :  { %3232 = vrot.lane.b32.xlu0 %v6245_v40, %s7312_s21  ;;  %v3175_v10 = vpop.f32.mrb[39].mxu0 }
0x10e6   :  { %3230 = vrot.lane.b32.xlu1 %v3175_v10, %s7312_s21 }
0x10e8   :  { %v6248_v47 = vpop.f32.mrb[40].mxu0 }
0x10e9   :  { %3204 = vrot.lane.b32.xlu0 %v6208_v46, %s7296_s6  ;;  %v3185_v23 = vpop.f32.mrb[41].mxu0 }
0x10ea   :  { %3202 = vrot.lane.b32.xlu1 %v2673_v18, %s7296_s6 }
0x10ed   :  { %3220 = vrot.lane.b32.xlu0 %v6228_v37, %s7311_s0 }
0x10ee   :  { %3218 = vrot.lane.b32.xlu1 %v2929_v38, %s7311_s0 }
0x10f1   :  { %3236 = vrot.lane.b32.xlu0 %v6248_v47, %s7312_s21 }
0x10f2   :  { %3234 = vrot.lane.b32.xlu1 %v3185_v23, %s7312_s21 }
0x10f5   :  { %6897 = vrot.lane.b32.xlu0 %v7953_v55, %s7299_s17 }
0x10f6   :  { %6892 = vrot.lane.b32.xlu1 %v7956_v56, %s7299_s17 }
0x10f9   :  { %3489 = vrot.lane.b32.xlu0 %v7986_v36, %s7299_s17 }
0x10fa   :  { %3266 = vrot.lane.b32.xlu1 %v7702_v16, %s7310_s29 }
0x113d   :  { %v3201_v33 = vpop.permute.xlu0 %3200 }
0x113e   :  { %v3199_v27 = vpop.permute.xlu1 %3198  ;;  %v3243_v30 = vsel %vm199_vm1, %v6185_v3, %v3201_v33 }
0x113f   :  { %v3242_v17 = vsel %vm199_vm1, %v2407_v4, %v3199_v27 }
0x114f   :  { %v3217_v19 = vpop.permute.xlu0 %3216 }
0x1150   :  { %v3215_v11 = vpop.permute.xlu1 %3214  ;;  %v3247_v53 = vsel %vm372_vm3, %v3243_v30, %v3217_v19 }
0x1151   :  { %v3246_v24 = vsel %vm372_vm3, %v3242_v17, %v3215_v11 }
0x1157   :  { %v3233_v58 = vpop.permute.xlu0 %3232 }
0x1158   :  { %v3231_v54 = vpop.permute.xlu1 %3230  ;;  %v3251_v52 = vsel %vm1847_vm4, %v3247_v53, %v3233_v58 }
0x1159   :  { %v3250_v50 = vsel %vm1847_vm4, %v3246_v24, %v3231_v54 }
0x115a   :  { %6257 = vmatprep.mubr.msk.f32.mxu1 %vm95_vm0, %v3250_v50 }
0x115b   :  { %v3205_v16 = vpop.permute.xlu0 %3204  ;;  %6258 = vmatmul.mubr.msk.f32.vlgmr.msra.gmra.mrb[36].mxu1 %vm95_vm0, %v3251_v52 }
0x115c   :  { %v3203_v60 = vpop.permute.xlu1 %3202  ;;  %v3245_v22 = vsel %vm199_vm1, %v6188_v32, %v3205_v16 }
0x115d   :  { %v3244_v62 = vsel %vm199_vm1, %v2417_v13, %v3203_v60 }
0x115f   :  { %v3221_v61 = vpop.permute.xlu0 %3220 }
0x1160   :  { %v3219_v35 = vpop.permute.xlu1 %3218  ;;  %v3249_v1 = vsel %vm372_vm3, %v3245_v22, %v3221_v61 }
0x1161   :  { %v3248_v39 = vsel %vm372_vm3, %v3244_v62, %v3219_v35 }
0x1163   :  { %v3237_v6 = vpop.permute.xlu0 %3236 }
0x1164   :  { %v3235_v0 = vpop.permute.xlu1 %3234  ;;  %v3253_v20 = vsel %vm1847_vm4, %v3249_v1, %v3237_v6 }
0x1165   :  { %v3252_v5 = vsel %vm1847_vm4, %v3248_v39, %v3235_v0 }
0x1166   :  { %6260 = vmatprep.mubr.msk.f32.mxu1 %vm95_vm0, %v3252_v5 }
0x1167   :  { %6261 = vmatmul.mubr.msk.f32.gmra.mrb[38].mxu1 %vm95_vm0, %v3253_v20  ;;  %v6898_v25 = vpop.permute.xlu0 %6897 }
0x1168   :  { %v6893_v15 = vpop.permute.xlu1 %6892  ;;  %v6900_v57 = vunpack.i.h.bf16 %v6898_v25  ;;  %v6899_v2 = vunpack.i.l.bf16 %v6898_v25  ;;  %6285 = vmatprep.mubr.msk.f32.mxu1 %vm95_vm0, %v80_v59 }
0x1169   :  { %v6895_v7 = vunpack.i.h.bf16 %v6893_v15  ;;  %v6894_v3 = vunpack.i.l.bf16 %v6893_v15 }
0x116a   :  { %v6617_v28 = vpack.c.bf16 %v6900_v57, %v6899_v2 }
0x116b   :  { %v6613_v4 = vpack.c.bf16 %v6895_v7, %v6894_v3  ;;  %v3490_v14 = vpop.permute.xlu0 %3489 }
0x116c   :  { %v3267_v42 = vpop.permute.xlu1 %3266 }
0x116d   :  { %6614 = vmatprep.subr.bf16.mxu1 %v6613_v4 }
0x116e   :  { %6616 = vmatpush3.bf16.msra.mxu1 %v6613_v4 }
0x116f   :  { %6618 = vmatprep.subr.bf16.mxu1 %v6617_v28 }
0x1172   :  { %6620 = vmatpush3.bf16.msra.mxu1 %v6617_v28 }
0x1175   :  { %6286 = vmatmul.mubr.msk.f32.vlgmr.msra.gmra.mrb[40].mxu1 %vm95_vm0, %v81_v31 }
0x1176   :  { %6288 = vmatprep.mubr.msk.f32.mxu1 %vm95_vm0, %v82_v9 }
0x1179   :  { %6289 = vmatmul.mubr.msk.f32.gmra.mrb[42].mxu1 %vm95_vm0, %v83_v63 }
0x122e   :  { %v6259_v32 = vpop.f32.mrb[36].mxu1 }
0x122f   :  { %v3347_v13 = vpop.f32.mrb[37].mxu1  ;;  %v3353_v44 = vadd.f32 %v6259_v32, %v3267_v42 }
0x1230   :  { %v3348_v43 = vadd.f32 %v3347_v13, %v3267_v42 }
0x1232   :  { %6271 = vmatprep.mubr.msk.f32.mxu0 %vm95_vm0, %v3348_v43 }
0x1233   :  { %6272 = vmatmul.mubr.msk.f32.vlgmr.msra.gmra.mrb[42].mxu0 %vm95_vm0, %v3353_v44 }
0x123a   :  { %v6262_v46 = vpop.f32.mrb[38].mxu1 }
0x123b   :  { %v3357_v18 = vpop.f32.mrb[39].mxu1  ;;  %v3363_v45 = vadd.f32 %v6262_v46, %v3267_v42 }
0x123c   :  { %v3358_v21 = vadd.f32 %v3357_v18, %v3267_v42 }
0x123e   :  { %6274 = vmatprep.mubr.msk.f32.mxu0 %vm95_vm0, %v3358_v21 }
0x123f   :  { %6275 = vmatmul.mubr.msk.f32.gmra.mrb[44].mxu0 %vm95_vm0, %v3363_v45 }
0x1248   :  { %v6287_v37 = vpop.f32.mrb[40].mxu1 }
0x1249   :  { %v3576_v38 = vadd.f32 %v6287_v37, %v3490_v14  ;;  %v3570_v40 = vpop.f32.mrb[41].mxu1 }
0x124a   :  { %v3571_v10 = vadd.f32 %v3570_v40, %v3490_v14 }
0x124c   :  { %v6290_v47 = vpop.f32.mrb[42].mxu1  ;;  %v6621_v23 = vpack.c.bf16 %v3576_v38, %v3571_v10  ;;  %v7998_v34 = vpack.i.bf16 %v3576_v38, %v3571_v10 }
0x124d   :  { %v3580_v48 = vpop.f32.mrb[43].mxu1  ;;  %v3586_v49 = vadd.f32 %v6290_v47, %v3490_v14 }
0x124e   :  { %6623 = vmatprep.subr.msk.bf16.mxu0 %vm7472_vm2, %v6621_v23  ;;  %v3581_v26 = vadd.f32 %v3580_v48, %v3490_v14 }
0x124f   :  { %6626 = vmatpush3.bf16.xpose.msk.msra.mxu0 %vm7472_vm2, %v6621_v23 }
0x1250   :  { %v6627_v51 = vpack.c.bf16 %v3586_v49, %v3581_v26  ;;  %v8000_v33 = vpack.i.bf16 %v3586_v49, %v3581_v26 }
0x1252   :  { %6629 = vmatprep.subr.msk.bf16.mxu1 %vm7472_vm2, %v6627_v51 }
0x1253   :  { %6632 = vmatpush3.bf16.xpose.msk.msra.mxu1 %vm7472_vm2, %v6627_v51 }
0x1306   :  { %v6273_v27 = vpop.f32.mrb[42].mxu0 }
0x1307   :  { %v3453_v19 = vpop.f32.mrb[43].mxu0  ;;  %v8010_v17 = vadd.f32 %v6273_v27, %v7986_v36 }
0x1308   :  { %v8007_v11 = vadd.f32 %v3453_v19, %v7986_v36 }
0x130a   :  { %6295 = vmatprep.mubr.msk.f32.mxu0 %vm199_vm1, %v8007_v11 }
0x130b   :  { %6296 = vmatmul.mubr.msk.f32.vlgmr.msra.gmra.mrb[46].mxu0 %vm199_vm1, %v8010_v17 }
0x1312   :  { %v6276_v58 = vpop.f32.mrb[44].mxu0 }
0x1313   :  { %v3463_v30 = vpop.f32.mrb[45].mxu0  ;;  %v8020_v54 = vadd.f32 %v6276_v58, %v7986_v36 }
0x1314   :  { %v8017_v24 = vadd.f32 %v3463_v30, %v7986_v36 }
0x1316   :  { %6302 = vmatprep.mubr.msk.f32.mxu1 %vm199_vm1, %v8017_v24 }
0x1317   :  { %6303 = vmatmul.mubr.msk.f32.vlgmr.msra.gmra.mrb[44].mxu1 %vm199_vm1, %v8020_v54 }
0x13de   :  { %v6297_v53 = vpop.f32.mrb[46].mxu0 }
0x13df   :  { %v3667_v50 = vpop.f32.mrb[47].mxu0  ;;  %v3766_v52 = vsel %vm372_vm3, %v6297_v53, -inf }
0x13e0   :  { %3767 = vmax.xlane.f32.xlu0 %v3766_v52  ;;  %v3763_v16 = vsel %vm372_vm3, %v3667_v50, -inf }
0x13e1   :  { %3764 = vmax.xlane.f32.xlu1 %v3763_v16 }
0x13ea   :  { %v6304_v60 = vpop.f32.mrb[44].mxu1 }
0x13eb   :  { %v3754_v61 = vpop.f32.mrb[45].mxu1  ;;  %v3772_v35 = vsel %vm372_vm3, %v6304_v60, -inf }
0x13ec   :  { %3773 = vmax.xlane.f32.xlu1 %v3772_v35  ;;  %v3769_v62 = vsel %vm372_vm3, %v3754_v61, -inf }
0x13ed   :  { %3770 = vmax.xlane.f32.xlu0 %v3769_v62 }
0x13fd   :  { %6907 = vrot.lane.b32.xlu1 %v8000_v33, %s7299_s17 }
0x1401   :  { %6912 = vrot.lane.b32.xlu1 %v7998_v34, %s7302_s20 }
0x1403   :  { %6902 = vrot.lane.b32.xlu0 %v7998_v34, %s7299_s17 }
0x146d   :  { %v3768_v6 = vpop.xlane.xlu0 %3767 }
0x146e   :  { %v3776_v22 = vsub.f32 %v6297_v53, %v3768_v6  ;;  %v3765_v39 = vpop.xlane.xlu1 %3764 }
0x146f   :  { %v3775_v0 = vsub.f32 %v3667_v50, %v3765_v39 }
0x1470   :  { %v3781_v1 = vmul.f32 1.442695, %v3776_v22 }
0x1471   :  { %v3779_v5 = vmul.f32 1.442695, %v3775_v0 }
0x1472   :  { %7109 = vpow2.f32 %v3781_v1 }
0x1473   :  { %7111 = vpow2.f32 %v3779_v5 }
0x1479   :  { %v3774_v59 = vpop.xlane.xlu1 %3773 }
0x147a   :  { %v3771_v20 = vpop.xlane.xlu0 %3770  ;;  %v3778_v43 = vsub.f32 %v6304_v60, %v3774_v59 }
0x147b   :  { %v3777_v44 = vsub.f32 %v3754_v61, %v3771_v20 }
0x147c   :  { %v7110_v25 = vpop.eup %7109  ;;  %v3785_v46 = vmul.f32 1.442695, %v3778_v43 }
0x147d   :  { %v7112_v15 = vpop.eup %7111  ;;  %v6908_v57 = vpop.permute.xlu1 %6907  ;;  %v3790_v2 = vsel %vm372_vm3, %v7110_v25, 0.0  ;;  %v3783_v18 = vmul.f32 1.442695, %v3777_v44 }
0x147e   :  { %v6903_v7 = vpop.permute.xlu0 %6902  ;;  %3791 = vadd.xlane.f32.xlu1 %v3790_v2  ;;  %v3787_v3 = vsel %vm372_vm3, %v7112_v15, 0.0  ;;  %v6910_v4 = vunpack.i.h.bf16 %v6908_v57  ;;  %v6909_v28 = vunpack.i.l.bf16 %v6908_v57  ;;  %7113 = vpow2.f32 %v3785_v46 }
0x147f   :  { %v6905_v31 = vunpack.i.h.bf16 %v6903_v7  ;;  %v6904_v9 = vunpack.i.l.bf16 %v6903_v7  ;;  %3788 = vadd.xlane.f32.xlu0 %v3787_v3  ;;  %7115 = vpow2.f32 %v3783_v18 }
0x1480   :  { %v6637_v32 = vpack.c.bf16 %v6910_v4, %v6909_v28 }
0x1481   :  { %v6633_v63 = vpack.c.bf16 %v6905_v31, %v6904_v9  ;;  %v6913_v8 = vpop.permute.xlu1 %6912 }
0x1482   :  { %v6915_v41 = vunpack.i.h.bf16 %v6913_v8  ;;  %v6914_v42 = vunpack.i.l.bf16 %v6913_v8 }
0x1483   :  { %6634 = vmatprep.subr.bf16.mxu0 %v6633_v63 }
0x1484   :  { %v6641_v13 = vpack.c.bf16 %v6915_v41, %v6914_v42  ;;  %6636 = vmatpush3.bf16.msra.mxu0 %v6633_v63 }
0x1485   :  { %6638 = vmatprep.subr.bf16.mxu0 %v6637_v32 }
0x1486   :  { %6643 = vmatprep.subr.msk.bf16.mxu1 %vm7472_vm2, %v6641_v13 }
0x1487   :  { %6646 = vmatpush3.bf16.xpose.msk.msra.mxu1 %vm7472_vm2, %v6641_v13 }
0x1488   :  { %v7114_v21 = vpop.eup %7113 }
0x1489   :  { %v7116_v45 = vpop.eup %7115  ;;  %v3796_v14 = vsel %vm372_vm3, %v7114_v21, 0.0 }
0x148a   :  { %v3793_v37 = vsel %vm372_vm3, %v7116_v45, 0.0 }
0x148f   :  { %3981 = vrot.lane.b32.xlu1 %v8007_v11, %s7302_s20 }
0x1495   :  { %6917 = vrot.lane.b32.xlu0 %v8000_v33, %s7302_s20 }
0x14b3   :  { %3797 = vadd.xlane.f32.xlu1 %v3796_v14 }
0x14b4   :  { %3794 = vadd.xlane.f32.xlu0 %v3793_v37 }
0x14c4   :  { %4072 = vrot.lane.b32.xlu1 %v8017_v24, %s7302_s20 }
0x14ca   :  { %3983 = vrot.lane.b32.xlu0 %v8010_v17, %s7302_s20 }
0x14ce   :  { %4074 = vrot.lane.b32.xlu0 %v8020_v54, %s7302_s20 }
0x150b   :  { %v3792_v38 = vpop.xlane.xlu1 %3791 }
0x150c   :  { %7117 = vrcp.f32 %v3792_v38  ;;  %v3789_v40 = vpop.xlane.xlu0 %3788 }
0x150d   :  { %7119 = vrcp.f32 %v3789_v40 }
0x150f   :  { %v3982_v10 = vpop.permute.xlu1 %3981 }
0x1510   :  { %6323 = vmatprep.mubr.msk.f32.mxu1 %vm199_vm1, %v3982_v10  ;;  %v6918_v47 = vpop.permute.xlu0 %6917 }
0x1511   :  { %v6920_v49 = vunpack.i.h.bf16 %v6918_v47  ;;  %v6919_v26 = vunpack.i.l.bf16 %v6918_v47 }
0x1513   :  { %v6647_v19 = vpack.c.bf16 %v6920_v49, %v6919_v26 }
0x1516   :  { %v7118_v23 = vpop.eup %7117 }
0x1517   :  { %v7120_v48 = vpop.eup %7119  ;;  %v3804_v27 = vmul.f32 %v7118_v23, %v7110_v25 }
0x1518   :  { %v3803_v51 = vmul.f32 %v7120_v48, %v7112_v15 }
0x151a   :  { %6309 = vmatprep.mubr.msk.f32.mxu0 %vm372_vm3, %v3803_v51 }
0x151b   :  { %6310 = vmatmul.mubr.msk.f32.vlgmr.msra.gmra.mrb[48].mxu0 %vm372_vm3, %v3804_v27 }
0x151c   :  { %6640 = vmatpush3.bf16.msra.mxu0 %v6637_v32 }
0x151d   :  { %6649 = vmatprep.subr.msk.bf16.mxu0 %vm7472_vm2, %v6647_v19 }
0x1540   :  { %v3798_v58 = vpop.xlane.xlu1 %3797 }
0x1541   :  { %7121 = vrcp.f32 %v3798_v58  ;;  %v3795_v30 = vpop.xlane.xlu0 %3794 }
0x1542   :  { %7123 = vrcp.f32 %v3795_v30 }
0x1544   :  { %v4073_v61 = vpop.permute.xlu1 %4072 }
0x1545   :  { %v3984_v53 = vpop.permute.xlu0 %3983 }
0x1546   :  { %6324 = vmatmul.mubr.msk.f32.vlgmr.msra.gmra.mrb[46].mxu1 %vm199_vm1, %v3984_v53 }
0x1549   :  { %v4075_v35 = vpop.permute.xlu0 %4074 }
0x154b   :  { %v7122_v50 = vpop.eup %7121 }
0x154c   :  { %v7124_v52 = vpop.eup %7123  ;;  %v3806_v60 = vmul.f32 %v7122_v50, %v7114_v21 }
0x154d   :  { %v3805_v16 = vmul.f32 %v7124_v52, %v7116_v45 }
0x154f   :  { %6316 = vmatprep.mubr.msk.f32.mxu0 %vm372_vm3, %v3805_v16 }
0x1550   :  { %6317 = vmatmul.mubr.msk.f32.vlgmr.msra.gmra.mrb[50].mxu0 %vm372_vm3, %v3806_v60 }
0x1551   :  { %6652 = vmatpush3.bf16.xpose.msk.msra.mxu0 %vm7472_vm2, %v6647_v19  ;;  %6330 = vmatprep.mubr.msk.f32.mxu0 %vm199_vm1, %v4073_v61 }
0x1558   :  { %6331 = vmatmul.mubr.msk.f32.vlgmr.msra.gmra.mrb[52].mxu0 %vm199_vm1, %v4075_v35 }
0x15ee   :  { %v8066_v62 = vpop.f32.mrb[48].mxu0 }
0x15ef   :  { %v8068_v6 = vpop.f32.mrb[49].mxu0 }
0x1619   :  { %v6325_v22 = vpop.f32.mrb[46].mxu1 }
0x161a   :  { %v4063_v39 = vpop.f32.mrb[47].mxu1  ;;  %v4166_v0 = vsel %vm372_vm3, %v6325_v22, -inf }
0x161b   :  { %4167 = vmax.xlane.f32.xlu0 %v4166_v0  ;;  %v4163_v1 = vsel %vm372_vm3, %v4063_v39, -inf }
0x161c   :  { %4164 = vmax.xlane.f32.xlu1 %v4163_v1 }
0x1623   :  { %v8072_v5 = vpop.f32.mrb[50].mxu0 }
0x1624   :  { %v8074_v59 = vpop.f32.mrb[51].mxu0 }
0x162b   :  { %v6332_v20 = vpop.f32.mrb[52].mxu0 }
0x162c   :  { %v4154_v25 = vpop.f32.mrb[53].mxu0  ;;  %v4172_v15 = vsel %vm372_vm3, %v6332_v20, -inf }
0x162d   :  { %4173 = vmax.xlane.f32.xlu1 %v4172_v15  ;;  %v4169_v57 = vsel %vm372_vm3, %v4154_v25, -inf }
0x162e   :  { %4170 = vmax.xlane.f32.xlu0 %v4169_v57 }
0x16a8   :  { %v4168_v2 = vpop.xlane.xlu0 %4167 }
0x16a9   :  { %v4176_v7 = vsub.f32 %v6325_v22, %v4168_v2  ;;  %v4165_v3 = vpop.xlane.xlu1 %4164 }
0x16aa   :  { %v4175_v4 = vsub.f32 %v4063_v39, %v4165_v3 }
0x16ab   :  { %v4181_v28 = vmul.f32 1.442695, %v4176_v7 }
0x16ac   :  { %v4179_v31 = vmul.f32 1.442695, %v4175_v4 }
0x16ad   :  { %7125 = vpow2.f32 %v4181_v28 }
0x16ae   :  { %7127 = vpow2.f32 %v4179_v31 }
0x16b7   :  { %v7126_v9 = vpop.eup %7125 }
0x16b8   :  { %v7128_v63 = vpop.eup %7127  ;;  %v4190_v8 = vsel %vm372_vm3, %v7126_v9, 0.0 }
0x16b9   :  { %4191 = vadd.xlane.f32.xlu1 %v4190_v8  ;;  %v4187_v41 = vsel %vm372_vm3, %v7128_v63, 0.0 }
0x16ba   :  { %4188 = vadd.xlane.f32.xlu0 %v4187_v41  ;;  %v4174_v32 = vpop.xlane.xlu1 %4173 }
0x16bb   :  { %v4171_v42 = vpop.xlane.xlu0 %4170  ;;  %v4178_v43 = vsub.f32 %v6332_v20, %v4174_v32 }
0x16bc   :  { %v4177_v13 = vsub.f32 %v4154_v25, %v4171_v42 }
0x16bd   :  { %v4185_v46 = vmul.f32 1.442695, %v4178_v43 }
0x16be   :  { %v4183_v44 = vmul.f32 1.442695, %v4177_v13 }
0x16c0   :  { %7129 = vpow2.f32 %v4183_v44 }
0x16c1   :  { %7131 = vpow2.f32 %v4185_v46 }
0x16ca   :  { %6927 = vrot.lane.b32.xlu1 %v8000_v33, %s7301_s19  ;;  %v7130_v18 = vpop.eup %7129 }
0x16cb   :  { %v7132_v21 = vpop.eup %7131  ;;  %v4193_v45 = vsel %vm372_vm3, %v7130_v18, 0.0 }
0x16cc   :  { %v4196_v14 = vsel %vm372_vm3, %v7132_v21, 0.0 }
0x16ce   :  { %6932 = vrot.lane.b32.xlu1 %v7998_v34, %s7305_s24 }
0x16d0   :  { %6922 = vrot.lane.b32.xlu0 %v7998_v34, %s7301_s19 }
0x16d2   :  { %4381 = vrot.lane.b32.xlu1 %v8007_v11, %s7305_s24 }
0x16d4   :  { %6937 = vrot.lane.b32.xlu0 %v8000_v33, %s7305_s24 }
0x16f3   :  { %4194 = vadd.xlane.f32.xlu0 %v4193_v45 }
0x16f6   :  { %4197 = vadd.xlane.f32.xlu1 %v4196_v14 }
0x1707   :  { %4472 = vrot.lane.b32.xlu1 %v8017_v24, %s7305_s24 }
0x1709   :  { %4383 = vrot.lane.b32.xlu0 %v8010_v17, %s7305_s24 }
0x170d   :  { %4474 = vrot.lane.b32.xlu0 %v8020_v54, %s7305_s24 }
0x1746   :  { %v4192_v37 = vpop.xlane.xlu1 %4191 }
0x1747   :  { %7133 = vrcp.f32 %v4192_v37  ;;  %v4189_v38 = vpop.xlane.xlu0 %4188 }
0x1748   :  { %7135 = vrcp.f32 %v4189_v38 }
0x174a   :  { %v6928_v40 = vpop.permute.xlu1 %6927 }
0x174b   :  { %v6930_v10 = vunpack.i.h.bf16 %v6928_v40  ;;  %v6929_v47 = vunpack.i.l.bf16 %v6928_v40  ;;  %v6923_v23 = vpop.permute.xlu0 %6922 }
0x174c   :  { %v6925_v48 = vunpack.i.h.bf16 %v6923_v23  ;;  %v6924_v49 = vunpack.i.l.bf16 %v6923_v23 }
0x174d   :  { %v6657_v26 = vpack.c.bf16 %v6930_v10, %v6929_v47 }
0x174e   :  { %v6653_v51 = vpack.c.bf16 %v6925_v48, %v6924_v49  ;;  %v6933_v27 = vpop.permute.xlu1 %6932 }
0x174f   :  { %v6935_v19 = vunpack.i.h.bf16 %v6933_v27  ;;  %v6934_v58 = vunpack.i.l.bf16 %v6933_v27  ;;  %6658 = vmatprep.subr.bf16.mxu0 %v6657_v26  ;;  %v6938_v30 = vpop.permute.xlu0 %6937 }
0x1750   :  { %v6940_v53 = vunpack.i.h.bf16 %v6938_v30  ;;  %v6939_v50 = vunpack.i.l.bf16 %v6938_v30  ;;  %6654 = vmatprep.subr.bf16.mxu1 %v6653_v51  ;;  %6660 = vmatpush3.bf16.msra.mxu0 %v6657_v26 }
0x1751   :  { %v7134_v52 = vpop.eup %7133  ;;  %v6661_v16 = vpack.c.bf16 %v6935_v19, %v6934_v58  ;;  %6656 = vmatpush3.bf16.msra.mxu1 %v6653_v51 }
0x1752   :  { %v7136_v60 = vpop.eup %7135  ;;  %v6667_v61 = vpack.c.bf16 %v6940_v53, %v6939_v50  ;;  %v4204_v22 = vmul.f32 %v7134_v52, %v7126_v9  ;;  %v4382_v39 = vpop.permute.xlu1 %4381 }
0x1753   :  { %6663 = vmatprep.subr.msk.bf16.mxu1 %vm7472_vm2, %v6661_v16  ;;  %v4203_v35 = vmul.f32 %v7136_v60, %v7128_v63 }
0x1754   :  { %6669 = vmatprep.subr.msk.bf16.mxu0 %vm7472_vm2, %v6667_v61 }
0x1755   :  { %6337 = vmatprep.mubr.msk.f32.mxu1 %vm372_vm3, %v4203_v35 }
0x1756   :  { %6338 = vmatmul.mubr.msk.f32.vlgmr.msra.gmra.mrb[48].mxu1 %vm372_vm3, %v4204_v22 }
0x1757   :  { %6351 = vmatprep.mubr.msk.f32.mxu1 %vm199_vm1, %v4382_v39 }
0x175a   :  { %6666 = vmatpush3.bf16.xpose.msk.msra.mxu1 %vm7472_vm2, %v6661_v16 }
0x1780   :  { %v4195_v0 = vpop.xlane.xlu0 %4194 }
0x1781   :  { %7137 = vrcp.f32 %v4195_v0 }
0x1783   :  { %v4198_v1 = vpop.xlane.xlu1 %4197 }
0x1784   :  { %7139 = vrcp.f32 %v4198_v1  ;;  %v4384_v20 = vpop.permute.xlu0 %4383 }
0x1785   :  { %6352 = vmatmul.mubr.msk.f32.vlgmr.msra.gmra.mrb[50].mxu1 %vm199_vm1, %v4384_v20 }
0x1787   :  { %v4473_v7 = vpop.permute.xlu1 %4472 }
0x1788   :  { %v4475_v3 = vpop.permute.xlu0 %4474 }
0x178b   :  { %v7138_v25 = vpop.eup %7137 }
0x178c   :  { %v4205_v15 = vmul.f32 %v7138_v25, %v7130_v18 }
0x178e   :  { %v7140_v57 = vpop.eup %7139  ;;  %6344 = vmatprep.mubr.msk.f32.mxu0 %vm372_vm3, %v4205_v15 }
0x178f   :  { %v4206_v2 = vmul.f32 %v7140_v57, %v7132_v21 }
0x1791   :  { %6345 = vmatmul.mubr.msk.f32.vlgmr.msra.gmra.mrb[54].mxu0 %vm372_vm3, %v4206_v2 }
0x1792   :  { %6672 = vmatpush3.bf16.xpose.msk.msra.mxu0 %vm7472_vm2, %v6667_v61  ;;  %6358 = vmatprep.mubr.msk.f32.mxu0 %vm199_vm1, %v4473_v7 }
0x1799   :  { %6359 = vmatmul.mubr.msk.f32.vlgmr.msra.gmra.mrb[56].mxu0 %vm199_vm1, %v4475_v3 }
0x1829   :  { %v8114_v4 = vpop.f32.mrb[48].mxu1 }
0x182a   :  { %v8116_v28 = vpop.f32.mrb[49].mxu1 }
0x1858   :  { %v6353_v31 = vpop.f32.mrb[50].mxu1 }
0x1859   :  { %v4463_v9 = vpop.f32.mrb[51].mxu1  ;;  %v4566_v63 = vsel %vm372_vm3, %v6353_v31, -inf }
0x185a   :  { %4567 = vmax.xlane.f32.xlu0 %v4566_v63  ;;  %v4563_v8 = vsel %vm372_vm3, %v4463_v9, -inf }
0x185b   :  { %4564 = vmax.xlane.f32.xlu1 %v4563_v8 }
0x1864   :  { %v8120_v41 = vpop.f32.mrb[54].mxu0 }
0x1865   :  { %v8122_v42 = vpop.f32.mrb[55].mxu0 }
0x186c   :  { %v6360_v32 = vpop.f32.mrb[56].mxu0 }
0x186d   :  { %v4554_v13 = vpop.f32.mrb[57].mxu0  ;;  %v4572_v43 = vsel %vm372_vm3, %v6360_v32, -inf }
0x186e   :  { %4573 = vmax.xlane.f32.xlu1 %v4572_v43  ;;  %v4569_v44 = vsel %vm372_vm3, %v4554_v13, -inf }
0x186f   :  { %4570 = vmax.xlane.f32.xlu0 %v4569_v44 }
0x18e7   :  { %v4568_v46 = vpop.xlane.xlu0 %4567 }
0x18e8   :  { %v4576_v18 = vsub.f32 %v6353_v31, %v4568_v46  ;;  %v4565_v21 = vpop.xlane.xlu1 %4564 }
0x18e9   :  { %v4575_v45 = vsub.f32 %v4463_v9, %v4565_v21 }
0x18ea   :  { %v4581_v14 = vmul.f32 1.442695, %v4576_v18 }
0x18eb   :  { %v4579_v37 = vmul.f32 1.442695, %v4575_v45 }
0x18ec   :  { %7141 = vpow2.f32 %v4581_v14 }
0x18ed   :  { %7143 = vpow2.f32 %v4579_v37 }
0x18f6   :  { %v7142_v38 = vpop.eup %7141 }
0x18f7   :  { %v7144_v40 = vpop.eup %7143  ;;  %v4590_v10 = vsel %vm372_vm3, %v7142_v38, 0.0 }
0x18f8   :  { %4591 = vadd.xlane.f32.xlu1 %v4590_v10  ;;  %v4587_v47 = vsel %vm372_vm3, %v7144_v40, 0.0 }
0x18f9   :  { %4588 = vadd.xlane.f32.xlu0 %v4587_v47 }
0x18fb   :  { %v4574_v48 = vpop.xlane.xlu1 %4573 }
0x18fc   :  { %v4571_v23 = vpop.xlane.xlu0 %4570  ;;  %v4578_v26 = vsub.f32 %v6360_v32, %v4574_v48 }
0x18fd   :  { %v4577_v49 = vsub.f32 %v4554_v13, %v4571_v23 }
0x18fe   :  { %v4585_v27 = vmul.f32 1.442695, %v4578_v26 }
0x18ff   :  { %v4583_v51 = vmul.f32 1.442695, %v4577_v49 }
0x1901   :  { %7145 = vpow2.f32 %v4583_v51 }
0x1902   :  { %7147 = vpow2.f32 %v4585_v27 }
0x1909   :  { %6947 = vrot.lane.b32.xlu1 %v8000_v33, %s7304_s23 }
0x190b   :  { %v7146_v19 = vpop.eup %7145 }
0x190c   :  { %v7148_v58 = vpop.eup %7147  ;;  %v4593_v30 = vsel %vm372_vm3, %v7146_v19, 0.0 }
0x190d   :  { %6952 = vrot.lane.b32.xlu1 %v7998_v34, %s7308_s27  ;;  %v4596_v53 = vsel %vm372_vm3, %v7148_v58, 0.0 }
0x190f   :  { %6942 = vrot.lane.b32.xlu0 %v7998_v34, %s7304_s23 }
0x1911   :  { %4781 = vrot.lane.b32.xlu1 %v8007_v11, %s7308_s27 }
0x1913   :  { %6957 = vrot.lane.b32.xlu0 %v8000_v33, %s7308_s27 }
0x1932   :  { %4594 = vadd.xlane.f32.xlu0 %v4593_v30 }
0x1935   :  { %4597 = vadd.xlane.f32.xlu1 %v4596_v53 }
0x1946   :  { %4872 = vrot.lane.b32.xlu1 %v8017_v24, %s7308_s27 }
0x1948   :  { %4783 = vrot.lane.b32.xlu0 %v8010_v17, %s7308_s27 }
0x194c   :  { %4874 = vrot.lane.b32.xlu0 %v8020_v54, %s7308_s27 }
0x1985   :  { %v4592_v11 = vpop.xlane.xlu1 %4591 }
0x1986   :  { %7149 = vrcp.f32 %v4592_v11  ;;  %v4589_v50 = vpop.xlane.xlu0 %4588 }
0x1987   :  { %7151 = vrcp.f32 %v4589_v50 }
0x1989   :  { %v6948_v52 = vpop.permute.xlu1 %6947 }
0x198a   :  { %v6950_v16 = vunpack.i.h.bf16 %v6948_v52  ;;  %v6949_v60 = vunpack.i.l.bf16 %v6948_v52  ;;  %v6943_v61 = vpop.permute.xlu0 %6942 }
0x198b   :  { %v6945_v35 = vunpack.i.h.bf16 %v6943_v61  ;;  %v6944_v22 = vunpack.i.l.bf16 %v6943_v61 }
0x198c   :  { %v6677_v39 = vpack.c.bf16 %v6950_v16, %v6949_v60 }
0x198d   :  { %v6673_v0 = vpack.c.bf16 %v6945_v35, %v6944_v22  ;;  %v6953_v1 = vpop.permute.xlu1 %6952 }
0x198e   :  { %v6955_v24 = vunpack.i.h.bf16 %v6953_v1  ;;  %v6954_v20 = vunpack.i.l.bf16 %v6953_v1  ;;  %v6958_v25 = vpop.permute.xlu0 %6957  ;;  %6678 = vmatprep.subr.bf16.mxu0 %v6677_v39 }
0x198f   :  { %v6960_v17 = vunpack.i.h.bf16 %v6958_v25  ;;  %v6959_v15 = vunpack.i.l.bf16 %v6958_v25  ;;  %6674 = vmatprep.subr.bf16.mxu1 %v6673_v0  ;;  %6680 = vmatpush3.bf16.msra.mxu0 %v6677_v39 }
0x1990   :  { %v7150_v54 = vpop.eup %7149  ;;  %v6681_v57 = vpack.c.bf16 %v6955_v24, %v6954_v20  ;;  %6676 = vmatpush3.bf16.msra.mxu1 %v6673_v0 }
0x1991   :  { %v7152_v2 = vpop.eup %7151  ;;  %v6687_v7 = vpack.c.bf16 %v6960_v17, %v6959_v15  ;;  %v4604_v31 = vmul.f32 %v7150_v54, %v7142_v38  ;;  %v4782_v9 = vpop.permute.xlu1 %4781 }
0x1992   :  { %6683 = vmatprep.subr.msk.bf16.mxu1 %vm7472_vm2, %v6681_v57  ;;  %v4603_v3 = vmul.f32 %v7152_v2, %v7144_v40 }
0x1993   :  { %6689 = vmatprep.subr.msk.bf16.mxu0 %vm7472_vm2, %v6687_v7 }
0x1994   :  { %6365 = vmatprep.mubr.msk.f32.mxu1 %vm372_vm3, %v4603_v3 }
0x1995   :  { %6366 = vmatmul.mubr.msk.f32.vlgmr.msra.gmra.mrb[52].mxu1 %vm372_vm3, %v4604_v31 }
0x1996   :  { %6379 = vmatprep.mubr.msk.f32.mxu1 %vm199_vm1, %v4782_v9 }
0x1999   :  { %6686 = vmatpush3.bf16.xpose.msk.msra.mxu1 %vm7472_vm2, %v6681_v57 }
0x19bf   :  { %v4595_v63 = vpop.xlane.xlu0 %4594 }
0x19c0   :  { %7153 = vrcp.f32 %v4595_v63 }
0x19c2   :  { %v4598_v8 = vpop.xlane.xlu1 %4597 }
0x19c3   :  { %7155 = vrcp.f32 %v4598_v8  ;;  %v4784_v32 = vpop.permute.xlu0 %4783 }
0x19c4   :  { %6380 = vmatmul.mubr.msk.f32.vlgmr.msra.gmra.mrb[54].mxu1 %vm199_vm1, %v4784_v32 }
0x19c6   :  { %v4873_v18 = vpop.permute.xlu1 %4872 }
0x19c7   :  { %v4875_v21 = vpop.permute.xlu0 %4874 }
0x19ca   :  { %v7154_v13 = vpop.eup %7153 }
0x19cb   :  { %v4605_v43 = vmul.f32 %v7154_v13, %v7146_v19 }
0x19cd   :  { %v7156_v44 = vpop.eup %7155  ;;  %6372 = vmatprep.mubr.msk.f32.mxu0 %vm372_vm3, %v4605_v43 }
0x19ce   :  { %v4606_v46 = vmul.f32 %v7156_v44, %v7148_v58 }
0x19d0   :  { %6373 = vmatmul.mubr.msk.f32.vlgmr.msra.gmra.mrb[58].mxu0 %vm372_vm3, %v4606_v46 }
0x19d1   :  { %6692 = vmatpush3.bf16.xpose.msk.msra.mxu0 %vm7472_vm2, %v6687_v7  ;;  %6386 = vmatprep.mubr.msk.f32.mxu0 %vm199_vm1, %v4873_v18 }
0x19d8   :  { %6387 = vmatmul.mubr.msk.f32.vlgmr.msra.gmra.mrb[60].mxu0 %vm199_vm1, %v4875_v21 }
0x1a68   :  { %v6367_v45 = vpop.f32.mrb[52].mxu1 }
0x1a69   :  { %v4685_v14 = vpop.f32.mrb[53].mxu1 }
0x1a97   :  { %v6381_v37 = vpop.f32.mrb[54].mxu1 }
0x1a98   :  { %v4863_v38 = vpop.f32.mrb[55].mxu1  ;;  %v4966_v40 = vsel %vm372_vm3, %v6381_v37, -inf }
0x1a99   :  { %4967 = vmax.xlane.f32.xlu0 %v4966_v40  ;;  %v4963_v10 = vsel %vm372_vm3, %v4863_v38, -inf }
0x1a9a   :  { %4964 = vmax.xlane.f32.xlu1 %v4963_v10 }
0x1aa3   :  { %v8164_v47 = vpop.f32.mrb[58].mxu0 }
0x1aa4   :  { %v8166_v23 = vpop.f32.mrb[59].mxu0 }
0x1aab   :  { %v6388_v29 = vpop.f32.mrb[60].mxu0 }
0x1aac   :  { %v4954_v48 = vpop.f32.mrb[61].mxu0  ;;  %v4972_v49 = vsel %vm372_vm3, %v6388_v29, -inf }
0x1aad   :  { %4973 = vmax.xlane.f32.xlu1 %v4972_v49  ;;  %v4969_v26 = vsel %vm372_vm3, %v4954_v48, -inf  ;;  %v5354_v49 = vld [vmem:[#allocation8 + $0x60] sm:$0xff] }
0x1aae   :  { %4970 = vmax.xlane.f32.xlu0 %v4969_v26  ;;  %v5355_v26 = vld [vmem:[#allocation8 + $0x68] sm:$0xff] }
0x1b26   :  { %v4968_v51 = vpop.xlane.xlu0 %4967 }
0x1b27   :  { %v4976_v27 = vsub.f32 %v6381_v37, %v4968_v51  ;;  %v4965_v19 = vpop.xlane.xlu1 %4964  ;;  %v6709_v51 = vpack.c.bf16 %v5355_v26, %v5354_v49 }
0x1b28   :  { %v4975_v58 = vsub.f32 %v4863_v38, %v4965_v19 }
0x1b29   :  { %v4981_v30 = vmul.f32 1.442695, %v4976_v27 }
0x1b2a   :  { %v4979_v53 = vmul.f32 1.442695, %v4975_v58 }
0x1b2b   :  { %7157 = vpow2.f32 %v4981_v30 }
0x1b2c   :  { %7159 = vpow2.f32 %v4979_v53 }
0x1b35   :  { %v7158_v11 = vpop.eup %7157 }
0x1b36   :  { %v7160_v50 = vpop.eup %7159  ;;  %v4990_v52 = vsel %vm372_vm3, %v7158_v11, 0.0 }
0x1b37   :  { %4991 = vadd.xlane.f32.xlu1 %v4990_v52  ;;  %v4987_v16 = vsel %vm372_vm3, %v7160_v50, 0.0 }
0x1b38   :  { %4988 = vadd.xlane.f32.xlu0 %v4987_v16 }
0x1b3a   :  { %v4974_v60 = vpop.xlane.xlu1 %4973 }
0x1b3b   :  { %v4978_v61 = vsub.f32 %v6388_v29, %v4974_v60  ;;  %v4971_v35 = vpop.xlane.xlu0 %4970 }
0x1b3c   :  { %v4977_v22 = vsub.f32 %v4954_v48, %v4971_v35 }
0x1b3d   :  { %v4985_v39 = vmul.f32 1.442695, %v4978_v61 }
0x1b3e   :  { %v4983_v0 = vmul.f32 1.442695, %v4977_v22 }
0x1b3f   :  { %7161 = vpow2.f32 %v4985_v39 }
0x1b40   :  { %7163 = vpow2.f32 %v4983_v0 }
0x1b49   :  { %v7162_v1 = vpop.eup %7161 }
0x1b4a   :  { %v7164_v24 = vpop.eup %7163  ;;  %v4996_v20 = vsel %vm372_vm3, %v7162_v1, 0.0 }
0x1b4b   :  { %4997 = vadd.xlane.f32.xlu1 %v4996_v20  ;;  %v4993_v25 = vsel %vm372_vm3, %v7164_v24, 0.0  ;;  %v5356_v20 = vld [vmem:[#allocation8 + $0x70] sm:$0xff] }
0x1b4c   :  { %4994 = vadd.xlane.f32.xlu0 %v4993_v25  ;;  %v5357_v25 = vld [vmem:[#allocation8 + $0x78] sm:$0xff] }
0x1b5c   :  { %6967 = vrot.lane.b32.xlu1 %v8000_v33, %s7307_s26 }
0x1b60   :  { %6972 = vrot.lane.b32.xlu1 %v7956_v56, %s7310_s29 }
0x1b62   :  { %6962 = vrot.lane.b32.xlu0 %v7998_v34, %s7307_s26 }
0x1b64   :  { %5185 = vrot.lane.b32.xlu1 %v8116_v28, %s7296_s6 }
0x1b66   :  { %6977 = vrot.lane.b32.xlu0 %v7953_v55, %s7310_s29 }
0x1b68   :  { %5201 = vrot.lane.b32.xlu1 %v4685_v14, %s7311_s0 }
0x1b6a   :  { %5187 = vrot.lane.b32.xlu0 %v8114_v4, %s7296_s6 }
0x1b6e   :  { %5203 = vrot.lane.b32.xlu0 %v6367_v45, %s7311_s0 }
0x1bc4   :  { %v4992_v34 = vpop.xlane.xlu1 %4991 }
0x1bc5   :  { %v4989_v33 = vpop.xlane.xlu0 %4988 }
0x1bc6   :  { %7165 = vrcp.f32 %v4989_v33  ;;  %v5464_v33 = vld [vmem:[#allocation8 + $0x80] sm:$0xff] }
0x1bc7   :  { %7167 = vrcp.f32 %v4992_v34  ;;  %v5467_v34 = vld [vmem:[#allocation8 + $0x98] sm:$0xff] }
0x1bd0   :  { %v7166_v17 = vpop.eup %7165 }
0x1bd1   :  { %v5003_v56 = vmul.f32 %v7166_v17, %v7160_v50  ;;  %v7168_v63 = vpop.eup %7167  ;;  %v5466_v17 = vld [vmem:[#allocation8 + $0x90] sm:$0xff] }
0x1bd2   :  { %v5004_v45 = vmul.f32 %v7168_v63, %v7158_v11  ;;  %v7174_v63 = vld [vmem:[%s8258_s4] sm:$0x1f]  ;;  %s7313_s4 = smov [#allocation10]  }
0x1bd3   :  { %6393 = vmatprep.mubr.msk.f32.mxu1 %vm372_vm3, %v5003_v56  ;;  %s5566_s11 = sshll.u32 %s7313_s4, 4  ;;  %s5567_s11 = int_to_ptr.vmem [resolvable:$true] %s5566_s11 }
0x1bd4   :  { %s7263_s12 = scalar_lea.vmem %s5567_s11, 512  ;;  %p7268_p5 = scmp.lt.s32.totalorder %s5567_s11, %s5567_s11 }
0x1bd5   :  { %p7264_p4 = scmp.ne.s32.totalorder %s5567_s11, %s7263_s12  ;;  %p7269_p6 = scmp.lt.s32.totalorder %s7263_s12, %s7263_s12 }
0x1bd7   :  { %p7270_p7 = por %p7269_p6, %p7268_p5 }
0x1bd8   :  { %v4998_v15 = vpop.xlane.xlu1 %4997 }
0x1bd9   :  { %7169 = vrcp.f32 %v4998_v15  ;;  %v4995_v28 = vpop.xlane.xlu0 %4994  ;;  %v6721_v15 = vpack.c.bf16 %v5467_v34, %v5466_v17  ;;  %p7271_p8 = pnand %p7270_p7, %p7264_p4 }
0x1bda   :  { %7171 = vrcp.f32 %v4995_v28 }
0x1bdc   :  { %v6968_v55 = vpop.permute.xlu1 %6967 }
0x1bdd   :  { %v6970_v54 = vunpack.i.h.bf16 %v6968_v55  ;;  %v6969_v57 = vunpack.i.l.bf16 %v6968_v55  ;;  %v6963_v2 = vpop.permute.xlu0 %6962 }
0x1bde   :  { %v6965_v7 = vunpack.i.h.bf16 %v6963_v2  ;;  %v6964_v4 = vunpack.i.l.bf16 %v6963_v2 }
0x1bdf   :  { %v6697_v3 = vpack.c.bf16 %v6970_v54, %v6969_v57 }
0x1be0   :  { %v6693_v31 = vpack.c.bf16 %v6965_v7, %v6964_v4  ;;  %v6973_v9 = vpop.permute.xlu1 %6972 }
0x1be1   :  { %v6975_v8 = vunpack.i.h.bf16 %v6973_v9  ;;  %v6974_v32 = vunpack.i.l.bf16 %v6973_v9  ;;  %6698 = vmatprep.subr.bf16.mxu0 %v6697_v3  ;;  %v6978_v13 = vpop.permute.xlu0 %6977  ;;  %v5360_v9 = vsub.s32 3, %v7436_v12 }
0x1be2   :  { %v6980_v43 = vunpack.i.h.bf16 %v6978_v13  ;;  %v6979_v44 = vunpack.i.l.bf16 %v6978_v13  ;;  %6694 = vmatprep.subr.bf16.mxu1 %v6693_v31  ;;  %6700 = vmatpush3.bf16.msra.mxu0 %v6697_v3 }
0x1be3   :  { %v7170_v46 = vpop.eup %7169  ;;  %v6701_v18 = vpack.c.bf16 %v6975_v8, %v6974_v32  ;;  %6696 = vmatpush3.bf16.msra.mxu1 %v6693_v31  ;;  %6710 = vmatprep.subr.bf16.mxu0 %v6709_v51  ;;  %v5361_v8 = vrot.slane %v7174_v63, %v5360_v9 }
0x1be4   :  { %v7172_v21 = vpop.eup %7171  ;;  %v6705_v14 = vpack.c.bf16 %v6980_v43, %v6979_v44  ;;  %v5006_v38 = vmul.f32 %v7170_v46, %v7162_v1 }
0x1be5   :  { %v5005_v37 = vmul.f32 %v7172_v21, %v7164_v24  ;;  %6702 = vmatprep.subr.bf16.mxu1 %v6701_v18  ;;  %v5188_v27 = vpop.permute.xlu0 %5187 }
0x1be6   :  { %6394 = vmatmul.mubr.msk.f32.vlgmr.msra.gmra.mrb[56].mxu1 %vm372_vm3, %v5004_v45 }
0x1be7   :  { %6400 = vmatprep.mubr.msk.f32.mxu0 %vm372_vm3, %v5005_v37  ;;  %6704 = vmatpush3.bf16.msra.mxu1 %v6701_v18 }
0x1be8   :  { %6401 = vmatmul.mubr.msk.f32.vlgmr.msra.gmra.mrb[62].mxu0 %vm372_vm3, %v5006_v38  ;;  %6706 = vmatprep.subr.bf16.mxu1 %v6705_v14 }
0x1be9   :  { %6712 = vmatpush3.bf16.msra.mxu0 %v6709_v51  ;;  %v5204_v19 = vpop.permute.xlu0 %5203 }
0x1beb   :  { %6708 = vmatpush3.bf16.msra.mxu1 %v6705_v14 }
0x1cb9   :  { %v6395_v40 = vpop.f32.mrb[56].mxu1 }
0x1cba   :  { %5219 = vrot.lane.b32.xlu0 %v6395_v40, %s7312_s21  ;;  %v5085_v10 = vpop.f32.mrb[57].mxu1 }
0x1cbb   :  { %v6402_v29 = vpop.f32.mrb[62].mxu0  ;;  %5217 = vrot.lane.b32.xlu1 %v5085_v10, %s7312_s21  ;;  %v5470_v10 = vsub.s32 4, %v7436_v12 }
0x1cbc   :  { %v5172_v48 = vpop.f32.mrb[63].mxu0 }
0x1cbe   :  { %5191 = vrot.lane.b32.xlu0 %v8120_v41, %s7296_s6  ;;  %v5186_v41 = vpop.permute.xlu1 %5185 }
0x1cbf   :  { %5189 = vrot.lane.b32.xlu1 %v8122_v42, %s7296_s6  ;;  %v5229_v42 = vsel %vm199_vm1, %v8068_v6, %v5186_v41 }
0x1cc2   :  { %5207 = vrot.lane.b32.xlu0 %v8164_v47, %s7311_s0  ;;  %v5202_v58 = vpop.permute.xlu1 %5201  ;;  %v5230_v47 = vsel %vm199_vm1, %v8066_v62, %v5188_v27 }
0x1cc3   :  { %5205 = vrot.lane.b32.xlu1 %v8166_v23, %s7311_s0  ;;  %v5233_v23 = vsel %vm372_vm3, %v5229_v42, %v5202_v58  ;;  %v5234_v11 = vsel %vm372_vm3, %v5230_v47, %v5204_v19 }
0x1cc6   :  { %5223 = vrot.lane.b32.xlu0 %v6402_v29, %s7312_s21  ;;  %v5471_v29 = vrot.slane %v7174_v63, %v5470_v10 }
0x1cc7   :  { %5221 = vrot.lane.b32.xlu1 %v5172_v48, %s7312_s21 }
0x1ccb   :  { %5253 = vrot.lane.b32.xlu1 %v7986_v36, %s7310_s29 }
0x1d2c   :  { %v5220_v30 = vpop.permute.xlu0 %5219 }
0x1d2d   :  { %v5218_v53 = vpop.permute.xlu1 %5217  ;;  %v5238_v36 = vsel %vm1847_vm4, %v5234_v11, %v5220_v30 }
0x1d2e   :  { %v5237_v50 = vsel %vm1847_vm4, %v5233_v23, %v5218_v53 }
0x1d2f   :  { %6411 = vmatprep.mubr.msk.f32.mxu1 %vm95_vm0, %v5237_v50 }
0x1d30   :  { %v5192_v52 = vpop.permute.xlu0 %5191  ;;  %6412 = vmatmul.mubr.msk.f32.vlgmr.msra.gmra.mrb[58].mxu1 %vm95_vm0, %v5238_v36 }
0x1d31   :  { %v5190_v16 = vpop.permute.xlu1 %5189  ;;  %v5232_v35 = vsel %vm199_vm1, %v8072_v5, %v5192_v52  ;;  %v5465_v5 = vld [vmem:[#allocation8 + $0x88] sm:$0xff] }
0x1d32   :  { %v5231_v62 = vsel %vm199_vm1, %v8074_v59, %v5190_v16  ;;  %v6713_v59 = vpack.c.bf16 %v5357_v25, %v5356_v20  ;;  %v6717_v56 = vpack.c.bf16 %v5465_v5, %v5464_v33 }
0x1d34   :  { %v5208_v6 = vpop.permute.xlu0 %5207  ;;  %6714 = vmatprep.subr.bf16.mxu0 %v6713_v59  ;;  %6718 = vmatprep.subr.bf16.mxu1 %v6717_v56 }
0x1d35   :  { %v5206_v60 = vpop.permute.xlu1 %5205  ;;  %v5236_v0 = vsel %vm372_vm3, %v5232_v35, %v5208_v6  ;;  %6716 = vmatpush3.bf16.msra.mxu0 %v6713_v59  ;;  %6720 = vmatpush3.bf16.xpose.msra.mxu1 %v6717_v56 }
0x1d36   :  { %v5235_v22 = vsel %vm372_vm3, %v5231_v62, %v5206_v60  ;;  %6722 = vmatprep.subr.bf16.mxu1 %v6721_v15 }
0x1d38   :  { %v5224_v61 = vpop.permute.xlu0 %5223 }
0x1d39   :  { %v5222_v39 = vpop.permute.xlu1 %5221  ;;  %v5240_v24 = vsel %vm1847_vm4, %v5236_v0, %v5224_v61 }
0x1d3a   :  { %v5239_v1 = vsel %vm1847_vm4, %v5235_v22, %v5222_v39 }
0x1d3b   :  { %6414 = vmatprep.mubr.msk.f32.mxu1 %vm95_vm0, %v5239_v1 }
0x1d3c   :  { %6415 = vmatmul.mubr.msk.f32.gmra.mrb[60].mxu1 %vm95_vm0, %v5240_v24 }
0x1d3d   :  { %6724 = vmatpush3.bf16.xpose.msra.mxu1 %v6721_v15  ;;  %v5254_v28 = vpop.permute.xlu1 %5253 }
0x1e03   :  { %v6413_v55 = vpop.f32.mrb[58].mxu1 }
0x1e04   :  { %v5334_v54 = vpop.f32.mrb[59].mxu1  ;;  %v5340_v2 = vadd.f32 %v6413_v55, %v5254_v28 }
0x1e05   :  { %v5335_v57 = vadd.f32 %v5334_v54, %v5254_v28 }
0x1e07   :  { %6425 = vmatprep.mubr.msk.f32.mxu0 %vm95_vm0, %v5335_v57 }
0x1e08   :  { %6426 = vmatmul.mubr.msk.f32.vlgmr.msra.gmra.mrb[64].mxu0 %vm95_vm0, %v5340_v2 }
0x1e0f   :  { %v6416_v7 = vpop.f32.mrb[60].mxu1 }
0x1e10   :  { %v5344_v4 = vpop.f32.mrb[61].mxu1  ;;  %v5350_v31 = vadd.f32 %v6416_v7, %v5254_v28 }
0x1e11   :  { %v5345_v3 = vadd.f32 %v5344_v4, %v5254_v28 }
0x1e13   :  { %6428 = vmatprep.mubr.msk.f32.mxu0 %vm95_vm0, %v5345_v3 }
0x1e14   :  { %6429 = vmatmul.mubr.msk.f32.gmra.mrb[66].mxu0 %vm95_vm0, %v5350_v31 }
0x1edb   :  { %v6427_v32 = vpop.f32.mrb[64].mxu0 }
0x1edc   :  { %v5446_v13 = vadd.f32 %v6427_v32, %v5361_v8  ;;  %v5440_v43 = vpop.f32.mrb[65].mxu0 }
0x1edd   :  { %v5441_v44 = vadd.f32 %v5440_v43, %v5361_v8 }
0x1ede   :  { %v5460_v18 = vmax.f32 %v5446_v13, 0.0 }
0x1edf   :  { %v5459_v46 = vmax.f32 %v5441_v44, 0.0 }
0x1ee1   :  { %6439 = vmatprep.mubr.f32.mxu1 %v5459_v46 }
0x1ee2   :  { %6440 = vmatmul.mubr.f32.vlgmr.msra.gmra.mrb[62].mxu1 %v5460_v18 }
0x1ee7   :  { %v6430_v21 = vpop.f32.mrb[66].mxu0 }
0x1ee8   :  { %v5456_v45 = vadd.f32 %v6430_v21, %v5361_v8  ;;  %v5450_v14 = vpop.f32.mrb[67].mxu0 }
0x1ee9   :  { %v5451_v37 = vadd.f32 %v5450_v14, %v5361_v8 }
0x1eea   :  { %v5462_v40 = vmax.f32 %v5456_v45, 0.0 }
0x1eeb   :  { %v5461_v38 = vmax.f32 %v5451_v37, 0.0 }
0x1eed   :  { %6442 = vmatprep.mubr.f32.mxu1 %v5461_v38 }
0x1eee   :  { %6443 = vmatmul.mubr.f32.gmra.mrb[64].mxu1 %v5462_v40 }
0x1fb5   :  { %v6441_v48 = vpop.f32.mrb[62].mxu1 }
0x1fb6   :  { %v5544_v49 = vadd.f32 %v6441_v48, %v5471_v29  ;;  %v5538_v26 = vpop.f32.mrb[63].mxu1 }
0x1fb7   :  { %v5539_v51 = vadd.f32 %v5538_v26, %v5471_v29 }
0x1fb8   :  { %5558 = vst.msk [vmem:[#allocation10 + $0x8] sm:$0xff] %vm95_vm0, %v5544_v49 }
0x1fb9   :  { %5557 = vst.msk [vmem:[#allocation10] sm:$0xff] %vm95_vm0, %v5539_v51 }
0x1fc1   :  { %v6444_v27 = vpop.f32.mrb[64].mxu1 }
0x1fc2   :  { %v5554_v41 = vadd.f32 %v6444_v27, %v5471_v29  ;;  %v5548_v19 = vpop.f32.mrb[65].mxu1 }
0x1fc3   :  { %v5549_v58 = vadd.f32 %v5548_v19, %v5471_v29 }
0x1fc4   :  { %5560 = vst.msk [vmem:[#allocation10 + $0x18] sm:$0xff] %vm95_vm0, %v5554_v41 }
0x1fc5   :  { %5559 = vst.msk [vmem:[#allocation10 + $0x10] sm:$0xff] %vm95_vm0, %v5549_v58 }
0x1fc6   :  { %7274 = shalt.err (!%p7271_p8)
}
0x1fc7   :  { %s7275_s15 = scalar_lea.hbm %s8259_s5, 512 }
0x1fc8   :  { %p7276_p9 = scmp.ne.s32.totalorder %s8259_s5, %s7275_s15  ;;  %p7279_p10 = scmp.lt.u32.totalorder %s7275_s15, %s8259_s5 }
0x1fca   :  { %p7281_p11 = pnand %p7279_p10, %p7276_p9 }
0x1fcc   :  { %7284 = shalt.err (!%p7281_p11)
}
0x1fcd   :  { %5572 = dma.vmem_to_hbm [thread:$0]  %s5567_s11, 512, %s8259_s5, [#allocation4], %s7295_s30, %s7295_s30, %s7296_s6  }
0x1fce   :  { %7291 = dma.done.wait [#allocation4], 512  }
0x1fcf   :  { %7292 = vsyncadd [#allocation4], 4294966784 }
0x1fd0   :  { %5576 = vsyncpa [#allocation3], 1 }
0x1fd1   :  { %5577 = vsyncpa [#allocation6], 1 }
0x1fd2   :  { %5578 = vsyncpa [#allocation9], 1 }
0x1fd3   :  { %5579 = vsyncpa [#allocation4], 1 }

</bundles_post_ra>
